<compile_context>
chip_gen: v5e
topology: v5e:2x2
jax: 0.10.0
libtpu: 0.0.40
codegen_flags: <defaults>
</compile_context>

<pallas_src>
import functools

import jax
import jax.numpy as jnp
from jax import lax
from jax.experimental import pallas as pl
from jax.experimental.pallas import tpu as pltpu

# Neighbour shifts (shift_x, shift_y) in the exact PyTorch concatenation order:
# up, right_up, right, right_down, center, down, left_down, left, left_up.
SHIFTS = ((0, 1), (-1, 1), (-1, 0), (-1, -1), (0, 0),
          (0, -1), (1, -1), (1, 0), (1, 1))


def _agg_corr_kernel(m_ref, w_ref, o_ref, *, h, w, blocks_per_step):
    """Per p-block (w output rows): out = sum_k w[k, (y,x)] * shifted M rows.

    m_ref: full (hw, hw) correlation matrix, rows = source (p,q), cols = target (y,x).
    w_ref: (9, hw) per-target-pixel weights.
    o_ref: (tm, hw) output row tile for this grid step (tm = blocks_per_step * w).
    """
    hw = h * w

    # Edge-replication masks (tiny, boolean, computed once per grid step).
    q_ids = lax.broadcasted_iota(jnp.int32, (w, 1), 0)           # sublane = source q
    c_ids = lax.broadcasted_iota(jnp.int32, (1, hw), 1)          # lane    = y*w + x
    q_first = q_ids == 0
    q_last = q_ids == w - 1
    y_first = c_ids < w
    y_last = c_ids >= hw - w
    x_first = (c_ids % w) == 0
    x_last = (c_ids % w) == w - 1

    # Per-tap weight rows over the target (y, x) columns, hoisted out of the row loop.
    wk = [w_ref[pl.ds(k, 1), :] for k in range(9)]               # each (1, hw)

    p_base = pl.program_id(0) * blocks_per_step

    def body(j, carry):
        p = p_base + j                                           # global source p block
        acc = None
        for sy in (0, 1, -1):                                    # share work per sy group
            # p-shift: pure addressing into the resident M (no data movement).
            src_p = p if sy == 0 else jnp.clip(p - sy, 0, h - 1)
            row0 = pl.multiple_of(src_p * w, w)
            base = m_ref[pl.ds(row0, w), :]                      # (w, hw)

            # Target-y column shift by sy*w lanes: XLU roll + boolean edge blend.
            if sy == 0:
                ys = base
            else:
                rolled = pltpu.roll(base, shift=(sy * w) % hw, axis=1)
                ys = jnp.where(y_first if sy > 0 else y_last, base, rolled)

            for k, (sx, sy_k) in enumerate(SHIFTS):              # static unroll over taps
                if sy_k != sy:
                    continue
                if sx == 0:
                    tap = ys
                else:
                    # Source-q row shift by sx sublanes: roll + edge blend.
                    r_roll = pltpu.roll(ys, shift=sx % w, axis=0)
                    qs = jnp.where(q_first if sx > 0 else q_last, ys, r_roll)
                    # Target-x column shift by sx lanes: roll + edge blend.
                    c_roll = pltpu.roll(qs, shift=sx % hw, axis=1)
                    tap = jnp.where(x_first if sx > 0 else x_last, qs, c_roll)
                contrib = tap * wk[k]                            # (w, hw) * (1, hw)
                acc = contrib if acc is None else acc + contrib  # seeded by first tap
        o_ref[pl.ds(j * w, w), :] = acc
        return carry

    lax.fori_loop(0, blocks_per_step, body, 0, unroll=True)


def agg_corr_forward(corr, weights, *, row_tiles=2):
    """corr: (1, h*w, h, w) NCHW; weights: (1, 9, h*w).  Returns (1, h*w, h, w)."""
    b, c, h, w = corr.shape
    assert b == 1 and c == h * w and h == w, "agg_corr expects b=1, c=h*w, h==w"
    hw = h * w
    assert hw % row_tiles == 0 and (hw // row_tiles) % w == 0
    tm = hw // row_tiles
    blocks_per_step = tm // w

    m = corr.reshape(hw, hw).astype(jnp.float32)        # rows = (p,q), cols = (y,x)
    wmat = weights.reshape(9, hw).astype(jnp.float32)   # per-target-(y,x) weights

    # TODO(synk): if hw grows so that ~3*hw^2 f32 no longer fits scoped VMEM (v7x 64 MiB),
    # switch M to a row-blocked BlockSpec with a +/-(w+1)-row halo instead of full residence.
    kernel = functools.partial(_agg_corr_kernel, h=h, w=w,
                               blocks_per_step=blocks_per_step)
    out2d = pl.pallas_call(
        kernel,
        out_shape=jax.ShapeDtypeStruct((hw, hw), jnp.float32),
        grid_spec=pl.GridSpec(
            grid=(row_tiles,),
            in_specs=[
                pl.BlockSpec((hw, hw), lambda i: (0, 0)),   # full M, VMEM resident
                pl.BlockSpec((9, hw), lambda i: (0, 0)),    # weights
            ],
            out_specs=pl.BlockSpec((tm, hw), lambda i: (i, 0)),
        ),
        compiler_params=pltpu.CompilerParams(
            dimension_semantics=("parallel",),              # v7x: one row half per core
        ),
        cost_estimate=pl.CostEstimate(
            flops=2 * 9 * hw * hw,
            transcendentals=0,
            bytes_accessed=4 * (hw * hw + 9 * hw + hw * hw),
        ),
    )(m, wmat)

    return out2d.reshape(1, hw, h, w)


def _reference_agg_corr(corr, weights):
    """Pure-JAX reference with identical clamped-shift semantics."""
    _, c, h, w = corr.shape
    hw = h * w
    v = corr.reshape(h, w, h, w)
    wm = weights.reshape(9, h, w)
    out = jnp.zeros((h, w, h, w), jnp.float32)
    for k, (sx, sy) in enumerate(SHIFTS):
        pidx = jnp.clip(jnp.arange(h) - sy, 0, h - 1)
        qidx = jnp.clip(jnp.arange(w) - sx, 0, w - 1)
        shifted = v[pidx][:, qidx][:, :, pidx][:, :, :, qidx]
        out = out + shifted * wm[k][None, None, :, :]
    return out.reshape(1, hw, h, w)


if __name__ == "__main__":
    h = w = 16
    hw = h * w

    key = jax.random.PRNGKey(0)
    k1, k2 = jax.random.split(key)
    corr = jax.random.normal(k1, (1, hw, h, w), dtype=jnp.float32)   # NCHW correlation volume
    weights = jax.random.normal(k2, (1, 9, hw), dtype=jnp.float32)   # per-(y,x) neighbour weights

    out = agg_corr_forward(corr, weights)
    out = jax.block_until_ready(out)

    assert out.shape == (1, hw, h, w)
    ref = _reference_agg_corr(corr, weights)
    assert jnp.allclose(out, ref, rtol=1e-4, atol=1e-4), "mismatch vs reference"

    print("KERNEL_OK")
</pallas_src>

<mosaic_0001>
module attributes {stable_mosaic.version = 11 : i64} {
  func.func @_agg_corr_kernel(%arg0: i32, %arg1: memref<256x256xf32, #tpu.memory_space<vmem>>, %arg2: memref<9x256xf32, #tpu.memory_space<vmem>>, %arg3: memref<128x256xf32, #tpu.memory_space<vmem>>) attributes {dimension_semantics = [#tpu.dimension_semantics<parallel>], iteration_bounds = array<i64: 2>, scalar_prefetch = 0 : i64, scratch_operands = 0 : i64, tpu.core_type = #tpu.core_type<tc>, window_params = [{pipeline_mode = #tpu.pipeline_mode<synchronous>, transform_indices = @transform_0, window_bounds = array<i64: 256, 256>}, {pipeline_mode = #tpu.pipeline_mode<synchronous>, transform_indices = @transform_1, window_bounds = array<i64: 9, 256>}, {transform_indices = @transform_2, window_bounds = array<i64: 128, 256>}]} {
    %0 = tpu.iota {dimensions = array<i32: 0>} : vector<16x1xi32>
    %1 = tpu.iota {dimensions = array<i32: 1>} : vector<1x256xi32>
    %c0_i32 = arith.constant 0 : i32
    %2 = vector.broadcast %c0_i32 : i32 to vector<16x1xi32>
    %3 = arith.cmpi eq, %0, %2 : vector<16x1xi32>
    %c15_i32 = arith.constant 15 : i32
    %4 = vector.broadcast %c15_i32 : i32 to vector<16x1xi32>
    %5 = arith.cmpi eq, %0, %4 : vector<16x1xi32>
    %c16_i32 = arith.constant 16 : i32
    %6 = vector.broadcast %c16_i32 : i32 to vector<1x256xi32>
    %7 = arith.cmpi slt, %1, %6 : vector<1x256xi32>
    %c240_i32 = arith.constant 240 : i32
    %8 = vector.broadcast %c240_i32 : i32 to vector<1x256xi32>
    %9 = arith.cmpi sge, %1, %8 : vector<1x256xi32>
    %c16_i32_0 = arith.constant 16 : i32
    %c0_i32_1 = arith.constant 0 : i32
    %10 = arith.cmpi eq, %c16_i32_0, %c0_i32_1 : i32
    %c1_i32 = arith.constant 1 : i32
    %11 = arith.select %10, %c1_i32, %c16_i32_0 : i32
    %12 = vector.broadcast %11 : i32 to vector<1x256xi32>
    %13 = arith.remsi %1, %12 : vector<1x256xi32>
    %c0_i32_2 = arith.constant 0 : i32
    %14 = vector.broadcast %c0_i32_2 : i32 to vector<1x256xi32>
    %15 = arith.cmpi ne, %13, %14 : vector<1x256xi32>
    %c0_i32_3 = arith.constant 0 : i32
    %16 = vector.broadcast %c0_i32_3 : i32 to vector<1x256xi32>
    %17 = arith.cmpi slt, %13, %16 : vector<1x256xi32>
    %c0_i32_4 = arith.constant 0 : i32
    %18 = arith.cmpi slt, %11, %c0_i32_4 : i32
    %19 = vector.broadcast %18 : i1 to vector<1x256xi1>
    %20 = vector.broadcast %19 : vector<1x256xi1> to vector<1x256xi1>
    %21 = arith.xori %17, %20 : vector<1x256xi1>
    %22 = arith.andi %21, %15 : vector<1x256xi1>
    %23 = vector.broadcast %11 : i32 to vector<1x256xi32>
    %24 = arith.addi %13, %23 : vector<1x256xi32>
    %25 = arith.select %22, %24, %13 : vector<1x256xi1>, vector<1x256xi32>
    %c0_i32_5 = arith.constant 0 : i32
    %26 = vector.broadcast %c0_i32_5 : i32 to vector<1x256xi32>
    %27 = arith.cmpi eq, %25, %26 : vector<1x256xi32>
    %c16_i32_6 = arith.constant 16 : i32
    %c0_i32_7 = arith.constant 0 : i32
    %28 = arith.cmpi eq, %c16_i32_6, %c0_i32_7 : i32
    %c1_i32_8 = arith.constant 1 : i32
    %29 = arith.select %28, %c1_i32_8, %c16_i32_6 : i32
    %30 = vector.broadcast %29 : i32 to vector<1x256xi32>
    %31 = arith.remsi %1, %30 : vector<1x256xi32>
    %c0_i32_9 = arith.constant 0 : i32
    %32 = vector.broadcast %c0_i32_9 : i32 to vector<1x256xi32>
    %33 = arith.cmpi ne, %31, %32 : vector<1x256xi32>
    %c0_i32_10 = arith.constant 0 : i32
    %34 = vector.broadcast %c0_i32_10 : i32 to vector<1x256xi32>
    %35 = arith.cmpi slt, %31, %34 : vector<1x256xi32>
    %c0_i32_11 = arith.constant 0 : i32
    %36 = arith.cmpi slt, %29, %c0_i32_11 : i32
    %37 = vector.broadcast %36 : i1 to vector<1x256xi1>
    %38 = vector.broadcast %37 : vector<1x256xi1> to vector<1x256xi1>
    %39 = arith.xori %35, %38 : vector<1x256xi1>
    %40 = arith.andi %39, %33 : vector<1x256xi1>
    %41 = vector.broadcast %29 : i32 to vector<1x256xi32>
    %42 = arith.addi %31, %41 : vector<1x256xi32>
    %43 = arith.select %40, %42, %31 : vector<1x256xi1>, vector<1x256xi32>
    %c15_i32_12 = arith.constant 15 : i32
    %44 = vector.broadcast %c15_i32_12 : i32 to vector<1x256xi32>
    %45 = arith.cmpi eq, %43, %44 : vector<1x256xi32>
    %c0 = arith.constant 0 : index
    %c0_13 = arith.constant 0 : index
    %46 = vector.load %arg2[%c0, %c0_13] : memref<9x256xf32, #tpu.memory_space<vmem>>, vector<1x256xf32>
    %c1 = arith.constant 1 : index
    %c0_14 = arith.constant 0 : index
    %47 = vector.load %arg2[%c1, %c0_14] : memref<9x256xf32, #tpu.memory_space<vmem>>, vector<1x256xf32>
    %c2 = arith.constant 2 : index
    %c0_15 = arith.constant 0 : index
    %48 = vector.load %arg2[%c2, %c0_15] : memref<9x256xf32, #tpu.memory_space<vmem>>, vector<1x256xf32>
    %c3 = arith.constant 3 : index
    %c0_16 = arith.constant 0 : index
    %49 = vector.load %arg2[%c3, %c0_16] : memref<9x256xf32, #tpu.memory_space<vmem>>, vector<1x256xf32>
    %c4 = arith.constant 4 : index
    %c0_17 = arith.constant 0 : index
    %50 = vector.load %arg2[%c4, %c0_17] : memref<9x256xf32, #tpu.memory_space<vmem>>, vector<1x256xf32>
    %c5 = arith.constant 5 : index
    %c0_18 = arith.constant 0 : index
    %51 = vector.load %arg2[%c5, %c0_18] : memref<9x256xf32, #tpu.memory_space<vmem>>, vector<1x256xf32>
    %c6 = arith.constant 6 : index
    %c0_19 = arith.constant 0 : index
    %52 = vector.load %arg2[%c6, %c0_19] : memref<9x256xf32, #tpu.memory_space<vmem>>, vector<1x256xf32>
    %c7 = arith.constant 7 : index
    %c0_20 = arith.constant 0 : index
    %53 = vector.load %arg2[%c7, %c0_20] : memref<9x256xf32, #tpu.memory_space<vmem>>, vector<1x256xf32>
    %c8 = arith.constant 8 : index
    %c0_21 = arith.constant 0 : index
    %54 = vector.load %arg2[%c8, %c0_21] : memref<9x256xf32, #tpu.memory_space<vmem>>, vector<1x256xf32>
    %c8_i32 = arith.constant 8 : i32
    %55 = arith.muli %arg0, %c8_i32 : i32
    %c0_i32_22 = arith.constant 0 : i32
    %56 = arith.addi %55, %c0_i32_22 : i32
    %c16_i32_23 = arith.constant 16 : i32
    %57 = arith.muli %56, %c16_i32_23 : i32
    %58 = tpu.assume_multiple %57, 16 : i32
    %59 = arith.index_cast %58 : i32 to index
    %c0_24 = arith.constant 0 : index
    %60 = vector.load %arg1[%59, %c0_24] : memref<256x256xf32, #tpu.memory_space<vmem>>, vector<16x256xf32>
    %c15_i32_25 = arith.constant 15 : i32
    %61 = tpu.dynamic_rotate %60 by %c15_i32_25 dim 0 : vector<16x256xf32>, i32 -> vector<16x256xf32>
    %62 = vector.shape_cast %5 : vector<16x1xi1> to vector<16x1xi1>
    %63 = vector.broadcast %62 : vector<16x1xi1> to vector<16x256xi1>
    %64 = arith.select %63, %60, %61 : vector<16x256xi1>, vector<16x256xf32>
    %c255_i32 = arith.constant 255 : i32
    %65 = tpu.dynamic_rotate %64 by %c255_i32 dim 1 : vector<16x256xf32>, i32 -> vector<16x256xf32>
    %66 = vector.shape_cast %45 : vector<1x256xi1> to vector<1x256xi1>
    %67 = vector.broadcast %66 : vector<1x256xi1> to vector<16x256xi1>
    %68 = arith.select %67, %64, %65 : vector<16x256xi1>, vector<16x256xf32>
    %69 = vector.broadcast %48 : vector<1x256xf32> to vector<16x256xf32>
    %70 = arith.mulf %68, %69 : vector<16x256xf32>
    %71 = vector.broadcast %50 : vector<1x256xf32> to vector<16x256xf32>
    %72 = arith.mulf %60, %71 : vector<16x256xf32>
    %73 = arith.addf %70, %72 : vector<16x256xf32>
    %c1_i32_26 = arith.constant 1 : i32
    %74 = tpu.dynamic_rotate %60 by %c1_i32_26 dim 0 : vector<16x256xf32>, i32 -> vector<16x256xf32>
    %75 = vector.shape_cast %3 : vector<16x1xi1> to vector<16x1xi1>
    %76 = vector.broadcast %75 : vector<16x1xi1> to vector<16x256xi1>
    %77 = arith.select %76, %60, %74 : vector<16x256xi1>, vector<16x256xf32>
    %c1_i32_27 = arith.constant 1 : i32
    %78 = tpu.dynamic_rotate %77 by %c1_i32_27 dim 1 : vector<16x256xf32>, i32 -> vector<16x256xf32>
    %79 = vector.shape_cast %27 : vector<1x256xi1> to vector<1x256xi1>
    %80 = vector.broadcast %79 : vector<1x256xi1> to vector<16x256xi1>
    %81 = arith.select %80, %77, %78 : vector<16x256xi1>, vector<16x256xf32>
    %82 = vector.broadcast %53 : vector<1x256xf32> to vector<16x256xf32>
    %83 = arith.mulf %81, %82 : vector<16x256xf32>
    %84 = arith.addf %73, %83 : vector<16x256xf32>
    %c1_i32_28 = arith.constant 1 : i32
    %85 = arith.subi %56, %c1_i32_28 : i32
    %c0_i32_29 = arith.constant 0 : i32
    %c15_i32_30 = arith.constant 15 : i32
    %86 = arith.maxsi %c0_i32_29, %85 : i32
    %87 = arith.minsi %c15_i32_30, %86 : i32
    %c16_i32_31 = arith.constant 16 : i32
    %88 = arith.muli %87, %c16_i32_31 : i32
    %89 = tpu.assume_multiple %88, 16 : i32
    %90 = arith.index_cast %89 : i32 to index
    %c0_32 = arith.constant 0 : index
    %91 = vector.load %arg1[%90, %c0_32] : memref<256x256xf32, #tpu.memory_space<vmem>>, vector<16x256xf32>
    %c16_i32_33 = arith.constant 16 : i32
    %92 = tpu.dynamic_rotate %91 by %c16_i32_33 dim 1 : vector<16x256xf32>, i32 -> vector<16x256xf32>
    %93 = vector.shape_cast %7 : vector<1x256xi1> to vector<1x256xi1>
    %94 = vector.broadcast %93 : vector<1x256xi1> to vector<16x256xi1>
    %95 = arith.select %94, %91, %92 : vector<16x256xi1>, vector<16x256xf32>
    %96 = vector.broadcast %46 : vector<1x256xf32> to vector<16x256xf32>
    %97 = arith.mulf %95, %96 : vector<16x256xf32>
    %98 = arith.addf %84, %97 : vector<16x256xf32>
    %c15_i32_34 = arith.constant 15 : i32
    %99 = tpu.dynamic_rotate %95 by %c15_i32_34 dim 0 : vector<16x256xf32>, i32 -> vector<16x256xf32>
    %100 = vector.shape_cast %5 : vector<16x1xi1> to vector<16x1xi1>
    %101 = vector.broadcast %100 : vector<16x1xi1> to vector<16x256xi1>
    %102 = arith.select %101, %95, %99 : vector<16x256xi1>, vector<16x256xf32>
    %c255_i32_35 = arith.constant 255 : i32
    %103 = tpu.dynamic_rotate %102 by %c255_i32_35 dim 1 : vector<16x256xf32>, i32 -> vector<16x256xf32>
    %104 = vector.shape_cast %45 : vector<1x256xi1> to vector<1x256xi1>
    %105 = vector.broadcast %104 : vector<1x256xi1> to vector<16x256xi1>
    %106 = arith.select %105, %102, %103 : vector<16x256xi1>, vector<16x256xf32>
    %107 = vector.broadcast %47 : vector<1x256xf32> to vector<16x256xf32>
    %108 = arith.mulf %106, %107 : vector<16x256xf32>
    %109 = arith.addf %98, %108 : vector<16x256xf32>
    %c1_i32_36 = arith.constant 1 : i32
    %110 = tpu.dynamic_rotate %95 by %c1_i32_36 dim 0 : vector<16x256xf32>, i32 -> vector<16x256xf32>
    %111 = vector.shape_cast %3 : vector<16x1xi1> to vector<16x1xi1>
    %112 = vector.broadcast %111 : vector<16x1xi1> to vector<16x256xi1>
    %113 = arith.select %112, %95, %110 : vector<16x256xi1>, vector<16x256xf32>
    %c1_i32_37 = arith.constant 1 : i32
    %114 = tpu.dynamic_rotate %113 by %c1_i32_37 dim 1 : vector<16x256xf32>, i32 -> vector<16x256xf32>
    %115 = vector.shape_cast %27 : vector<1x256xi1> to vector<1x256xi1>
    %116 = vector.broadcast %115 : vector<1x256xi1> to vector<16x256xi1>
    %117 = arith.select %116, %113, %114 : vector<16x256xi1>, vector<16x256xf32>
    %118 = vector.broadcast %54 : vector<1x256xf32> to vector<16x256xf32>
    %119 = arith.mulf %117, %118 : vector<16x256xf32>
    %120 = arith.addf %109, %119 : vector<16x256xf32>
    %c-1_i32 = arith.constant -1 : i32
    %121 = arith.subi %56, %c-1_i32 : i32
    %c0_i32_38 = arith.constant 0 : i32
    %c15_i32_39 = arith.constant 15 : i32
    %122 = arith.maxsi %c0_i32_38, %121 : i32
    %123 = arith.minsi %c15_i32_39, %122 : i32
    %c16_i32_40 = arith.constant 16 : i32
    %124 = arith.muli %123, %c16_i32_40 : i32
    %125 = tpu.assume_multiple %124, 16 : i32
    %126 = arith.index_cast %125 : i32 to index
    %c0_41 = arith.constant 0 : index
    %127 = vector.load %arg1[%126, %c0_41] : memref<256x256xf32, #tpu.memory_space<vmem>>, vector<16x256xf32>
    %c240_i32_42 = arith.constant 240 : i32
    %128 = tpu.dynamic_rotate %127 by %c240_i32_42 dim 1 : vector<16x256xf32>, i32 -> vector<16x256xf32>
    %129 = vector.shape_cast %9 : vector<1x256xi1> to vector<1x256xi1>
    %130 = vector.broadcast %129 : vector<1x256xi1> to vector<16x256xi1>
    %131 = arith.select %130, %127, %128 : vector<16x256xi1>, vector<16x256xf32>
    %c15_i32_43 = arith.constant 15 : i32
    %132 = tpu.dynamic_rotate %131 by %c15_i32_43 dim 0 : vector<16x256xf32>, i32 -> vector<16x256xf32>
    %133 = vector.shape_cast %5 : vector<16x1xi1> to vector<16x1xi1>
    %134 = vector.broadcast %133 : vector<16x1xi1> to vector<16x256xi1>
    %135 = arith.select %134, %131, %132 : vector<16x256xi1>, vector<16x256xf32>
    %c255_i32_44 = arith.constant 255 : i32
    %136 = tpu.dynamic_rotate %135 by %c255_i32_44 dim 1 : vector<16x256xf32>, i32 -> vector<16x256xf32>
    %137 = vector.shape_cast %45 : vector<1x256xi1> to vector<1x256xi1>
    %138 = vector.broadcast %137 : vector<1x256xi1> to vector<16x256xi1>
    %139 = arith.select %138, %135, %136 : vector<16x256xi1>, vector<16x256xf32>
    %140 = vector.broadcast %49 : vector<1x256xf32> to vector<16x256xf32>
    %141 = arith.mulf %139, %140 : vector<16x256xf32>
    %142 = arith.addf %120, %141 : vector<16x256xf32>
    %143 = vector.broadcast %51 : vector<1x256xf32> to vector<16x256xf32>
    %144 = arith.mulf %131, %143 : vector<16x256xf32>
    %145 = arith.addf %142, %144 : vector<16x256xf32>
    %c1_i32_45 = arith.constant 1 : i32
    %146 = tpu.dynamic_rotate %131 by %c1_i32_45 dim 0 : vector<16x256xf32>, i32 -> vector<16x256xf32>
    %147 = vector.shape_cast %3 : vector<16x1xi1> to vector<16x1xi1>
    %148 = vector.broadcast %147 : vector<16x1xi1> to vector<16x256xi1>
    %149 = arith.select %148, %131, %146 : vector<16x256xi1>, vector<16x256xf32>
    %c1_i32_46 = arith.constant 1 : i32
    %150 = tpu.dynamic_rotate %149 by %c1_i32_46 dim 1 : vector<16x256xf32>, i32 -> vector<16x256xf32>
    %151 = vector.shape_cast %27 : vector<1x256xi1> to vector<1x256xi1>
    %152 = vector.broadcast %151 : vector<1x256xi1> to vector<16x256xi1>
    %153 = arith.select %152, %149, %150 : vector<16x256xi1>, vector<16x256xf32>
    %154 = vector.broadcast %52 : vector<1x256xf32> to vector<16x256xf32>
    %155 = arith.mulf %153, %154 : vector<16x256xf32>
    %156 = arith.addf %145, %155 : vector<16x256xf32>
    %c16_i32_47 = arith.constant 16 : i32
    %157 = arith.muli %c0_i32_22, %c16_i32_47 : i32
    %158 = arith.index_cast %157 : i32 to index
    %c0_48 = arith.constant 0 : index
    %159 = vector.load %arg3[%158, %c0_48] : memref<128x256xf32, #tpu.memory_space<vmem>>, vector<16x256xf32>
    tpu.vector_store %arg3[%158, %c0_48], %156 {strides = array<i32>} : memref<128x256xf32, #tpu.memory_space<vmem>>, vector<16x256xf32>,
    %c1_i32_49 = arith.constant 1 : i32
    %160 = arith.addi %55, %c1_i32_49 : i32
    %c16_i32_50 = arith.constant 16 : i32
    %161 = arith.muli %160, %c16_i32_50 : i32
    %162 = tpu.assume_multiple %161, 16 : i32
    %163 = arith.index_cast %162 : i32 to index
    %c0_51 = arith.constant 0 : index
    %164 = vector.load %arg1[%163, %c0_51] : memref<256x256xf32, #tpu.memory_space<vmem>>, vector<16x256xf32>
    %c15_i32_52 = arith.constant 15 : i32
    %165 = tpu.dynamic_rotate %164 by %c15_i32_52 dim 0 : vector<16x256xf32>, i32 -> vector<16x256xf32>
    %166 = vector.shape_cast %5 : vector<16x1xi1> to vector<16x1xi1>
    %167 = vector.broadcast %166 : vector<16x1xi1> to vector<16x256xi1>
    %168 = arith.select %167, %164, %165 : vector<16x256xi1>, vector<16x256xf32>
    %c255_i32_53 = arith.constant 255 : i32
    %169 = tpu.dynamic_rotate %168 by %c255_i32_53 dim 1 : vector<16x256xf32>, i32 -> vector<16x256xf32>
    %170 = vector.shape_cast %45 : vector<1x256xi1> to vector<1x256xi1>
    %171 = vector.broadcast %170 : vector<1x256xi1> to vector<16x256xi1>
    %172 = arith.select %171, %168, %169 : vector<16x256xi1>, vector<16x256xf32>
    %173 = vector.broadcast %48 : vector<1x256xf32> to vector<16x256xf32>
    %174 = arith.mulf %172, %173 : vector<16x256xf32>
    %175 = vector.broadcast %50 : vector<1x256xf32> to vector<16x256xf32>
    %176 = arith.mulf %164, %175 : vector<16x256xf32>
    %177 = arith.addf %174, %176 : vector<16x256xf32>
    %c1_i32_54 = arith.constant 1 : i32
    %178 = tpu.dynamic_rotate %164 by %c1_i32_54 dim 0 : vector<16x256xf32>, i32 -> vector<16x256xf32>
    %179 = vector.shape_cast %3 : vector<16x1xi1> to vector<16x1xi1>
    %180 = vector.broadcast %179 : vector<16x1xi1> to vector<16x256xi1>
    %181 = arith.select %180, %164, %178 : vector<16x256xi1>, vector<16x256xf32>
    %c1_i32_55 = arith.constant 1 : i32
    %182 = tpu.dynamic_rotate %181 by %c1_i32_55 dim 1 : vector<16x256xf32>, i32 -> vector<16x256xf32>
    %183 = vector.shape_cast %27 : vector<1x256xi1> to vector<1x256xi1>
    %184 = vector.broadcast %183 : vector<1x256xi1> to vector<16x256xi1>
    %185 = arith.select %184, %181, %182 : vector<16x256xi1>, vector<16x256xf32>
    %186 = vector.broadcast %53 : vector<1x256xf32> to vector<16x256xf32>
    %187 = arith.mulf %185, %186 : vector<16x256xf32>
    %188 = arith.addf %177, %187 : vector<16x256xf32>
    %c1_i32_56 = arith.constant 1 : i32
    %189 = arith.subi %160, %c1_i32_56 : i32
    %c0_i32_57 = arith.constant 0 : i32
    %c15_i32_58 = arith.constant 15 : i32
    %190 = arith.maxsi %c0_i32_57, %189 : i32
    %191 = arith.minsi %c15_i32_58, %190 : i32
    %c16_i32_59 = arith.constant 16 : i32
    %192 = arith.muli %191, %c16_i32_59 : i32
    %193 = tpu.assume_multiple %192, 16 : i32
    %194 = arith.index_cast %193 : i32 to index
    %c0_60 = arith.constant 0 : index
    %195 = vector.load %arg1[%194, %c0_60] : memref<256x256xf32, #tpu.memory_space<vmem>>, vector<16x256xf32>
    %c16_i32_61 = arith.constant 16 : i32
    %196 = tpu.dynamic_rotate %195 by %c16_i32_61 dim 1 : vector<16x256xf32>, i32 -> vector<16x256xf32>
    %197 = vector.shape_cast %7 : vector<1x256xi1> to vector<1x256xi1>
    %198 = vector.broadcast %197 : vector<1x256xi1> to vector<16x256xi1>
    %199 = arith.select %198, %195, %196 : vector<16x256xi1>, vector<16x256xf32>
    %200 = vector.broadcast %46 : vector<1x256xf32> to vector<16x256xf32>
    %201 = arith.mulf %199, %200 : vector<16x256xf32>
    %202 = arith.addf %188, %201 : vector<16x256xf32>
    %c15_i32_62 = arith.constant 15 : i32
    %203 = tpu.dynamic_rotate %199 by %c15_i32_62 dim 0 : vector<16x256xf32>, i32 -> vector<16x256xf32>
    %204 = vector.shape_cast %5 : vector<16x1xi1> to vector<16x1xi1>
    %205 = vector.broadcast %204 : vector<16x1xi1> to vector<16x256xi1>
    %206 = arith.select %205, %199, %203 : vector<16x256xi1>, vector<16x256xf32>
    %c255_i32_63 = arith.constant 255 : i32
    %207 = tpu.dynamic_rotate %206 by %c255_i32_63 dim 1 : vector<16x256xf32>, i32 -> vector<16x256xf32>
    %208 = vector.shape_cast %45 : vector<1x256xi1> to vector<1x256xi1>
    %209 = vector.broadcast %208 : vector<1x256xi1> to vector<16x256xi1>
    %210 = arith.select %209, %206, %207 : vector<16x256xi1>, vector<16x256xf32>
    %211 = vector.broadcast %47 : vector<1x256xf32> to vector<16x256xf32>
    %212 = arith.mulf %210, %211 : vector<16x256xf32>
    %213 = arith.addf %202, %212 : vector<16x256xf32>
    %c1_i32_64 = arith.constant 1 : i32
    %214 = tpu.dynamic_rotate %199 by %c1_i32_64 dim 0 : vector<16x256xf32>, i32 -> vector<16x256xf32>
    %215 = vector.shape_cast %3 : vector<16x1xi1> to vector<16x1xi1>
    %216 = vector.broadcast %215 : vector<16x1xi1> to vector<16x256xi1>
    %217 = arith.select %216, %199, %214 : vector<16x256xi1>, vector<16x256xf32>
    %c1_i32_65 = arith.constant 1 : i32
    %218 = tpu.dynamic_rotate %217 by %c1_i32_65 dim 1 : vector<16x256xf32>, i32 -> vector<16x256xf32>
    %219 = vector.shape_cast %27 : vector<1x256xi1> to vector<1x256xi1>
    %220 = vector.broadcast %219 : vector<1x256xi1> to vector<16x256xi1>
    %221 = arith.select %220, %217, %218 : vector<16x256xi1>, vector<16x256xf32>
    %222 = vector.broadcast %54 : vector<1x256xf32> to vector<16x256xf32>
    %223 = arith.mulf %221, %222 : vector<16x256xf32>
    %224 = arith.addf %213, %223 : vector<16x256xf32>
    %c-1_i32_66 = arith.constant -1 : i32
    %225 = arith.subi %160, %c-1_i32_66 : i32
    %c0_i32_67 = arith.constant 0 : i32
    %c15_i32_68 = arith.constant 15 : i32
    %226 = arith.maxsi %c0_i32_67, %225 : i32
    %227 = arith.minsi %c15_i32_68, %226 : i32
    %c16_i32_69 = arith.constant 16 : i32
    %228 = arith.muli %227, %c16_i32_69 : i32
    %229 = tpu.assume_multiple %228, 16 : i32
    %230 = arith.index_cast %229 : i32 to index
    %c0_70 = arith.constant 0 : index
    %231 = vector.load %arg1[%230, %c0_70] : memref<256x256xf32, #tpu.memory_space<vmem>>, vector<16x256xf32>
    %c240_i32_71 = arith.constant 240 : i32
    %232 = tpu.dynamic_rotate %231 by %c240_i32_71 dim 1 : vector<16x256xf32>, i32 -> vector<16x256xf32>
    %233 = vector.shape_cast %9 : vector<1x256xi1> to vector<1x256xi1>
    %234 = vector.broadcast %233 : vector<1x256xi1> to vector<16x256xi1>
    %235 = arith.select %234, %231, %232 : vector<16x256xi1>, vector<16x256xf32>
    %c15_i32_72 = arith.constant 15 : i32
    %236 = tpu.dynamic_rotate %235 by %c15_i32_72 dim 0 : vector<16x256xf32>, i32 -> vector<16x256xf32>
    %237 = vector.shape_cast %5 : vector<16x1xi1> to vector<16x1xi1>
    %238 = vector.broadcast %237 : vector<16x1xi1> to vector<16x256xi1>
    %239 = arith.select %238, %235, %236 : vector<16x256xi1>, vector<16x256xf32>
    %c255_i32_73 = arith.constant 255 : i32
    %240 = tpu.dynamic_rotate %239 by %c255_i32_73 dim 1 : vector<16x256xf32>, i32 -> vector<16x256xf32>
    %241 = vector.shape_cast %45 : vector<1x256xi1> to vector<1x256xi1>
    %242 = vector.broadcast %241 : vector<1x256xi1> to vector<16x256xi1>
    %243 = arith.select %242, %239, %240 : vector<16x256xi1>, vector<16x256xf32>
    %244 = vector.broadcast %49 : vector<1x256xf32> to vector<16x256xf32>
    %245 = arith.mulf %243, %244 : vector<16x256xf32>
    %246 = arith.addf %224, %245 : vector<16x256xf32>
    %247 = vector.broadcast %51 : vector<1x256xf32> to vector<16x256xf32>
    %248 = arith.mulf %235, %247 : vector<16x256xf32>
    %249 = arith.addf %246, %248 : vector<16x256xf32>
    %c1_i32_74 = arith.constant 1 : i32
    %250 = tpu.dynamic_rotate %235 by %c1_i32_74 dim 0 : vector<16x256xf32>, i32 -> vector<16x256xf32>
    %251 = vector.shape_cast %3 : vector<16x1xi1> to vector<16x1xi1>
    %252 = vector.broadcast %251 : vector<16x1xi1> to vector<16x256xi1>
    %253 = arith.select %252, %235, %250 : vector<16x256xi1>, vector<16x256xf32>
    %c1_i32_75 = arith.constant 1 : i32
    %254 = tpu.dynamic_rotate %253 by %c1_i32_75 dim 1 : vector<16x256xf32>, i32 -> vector<16x256xf32>
    %255 = vector.shape_cast %27 : vector<1x256xi1> to vector<1x256xi1>
    %256 = vector.broadcast %255 : vector<1x256xi1> to vector<16x256xi1>
    %257 = arith.select %256, %253, %254 : vector<16x256xi1>, vector<16x256xf32>
    %258 = vector.broadcast %52 : vector<1x256xf32> to vector<16x256xf32>
    %259 = arith.mulf %257, %258 : vector<16x256xf32>
    %260 = arith.addf %249, %259 : vector<16x256xf32>
    %c16_i32_76 = arith.constant 16 : i32
    %261 = arith.muli %c1_i32_49, %c16_i32_76 : i32
    %262 = arith.index_cast %261 : i32 to index
    %c0_77 = arith.constant 0 : index
    %263 = vector.load %arg3[%262, %c0_77] : memref<128x256xf32, #tpu.memory_space<vmem>>, vector<16x256xf32>
    tpu.vector_store %arg3[%262, %c0_77], %260 {strides = array<i32>} : memref<128x256xf32, #tpu.memory_space<vmem>>, vector<16x256xf32>,
    %c2_i32 = arith.constant 2 : i32
    %264 = arith.addi %55, %c2_i32 : i32
    %c16_i32_78 = arith.constant 16 : i32
    %265 = arith.muli %264, %c16_i32_78 : i32
    %266 = tpu.assume_multiple %265, 16 : i32
    %267 = arith.index_cast %266 : i32 to index
    %c0_79 = arith.constant 0 : index
    %268 = vector.load %arg1[%267, %c0_79] : memref<256x256xf32, #tpu.memory_space<vmem>>, vector<16x256xf32>
    %c15_i32_80 = arith.constant 15 : i32
    %269 = tpu.dynamic_rotate %268 by %c15_i32_80 dim 0 : vector<16x256xf32>, i32 -> vector<16x256xf32>
    %270 = vector.shape_cast %5 : vector<16x1xi1> to vector<16x1xi1>
    %271 = vector.broadcast %270 : vector<16x1xi1> to vector<16x256xi1>
    %272 = arith.select %271, %268, %269 : vector<16x256xi1>, vector<16x256xf32>
    %c255_i32_81 = arith.constant 255 : i32
    %273 = tpu.dynamic_rotate %272 by %c255_i32_81 dim 1 : vector<16x256xf32>, i32 -> vector<16x256xf32>
    %274 = vector.shape_cast %45 : vector<1x256xi1> to vector<1x256xi1>
    %275 = vector.broadcast %274 : vector<1x256xi1> to vector<16x256xi1>
    %276 = arith.select %275, %272, %273 : vector<16x256xi1>, vector<16x256xf32>
    %277 = vector.broadcast %48 : vector<1x256xf32> to vector<16x256xf32>
    %278 = arith.mulf %276, %277 : vector<16x256xf32>
    %279 = vector.broadcast %50 : vector<1x256xf32> to vector<16x256xf32>
    %280 = arith.mulf %268, %279 : vector<16x256xf32>
    %281 = arith.addf %278, %280 : vector<16x256xf32>
    %c1_i32_82 = arith.constant 1 : i32
    %282 = tpu.dynamic_rotate %268 by %c1_i32_82 dim 0 : vector<16x256xf32>, i32 -> vector<16x256xf32>
    %283 = vector.shape_cast %3 : vector<16x1xi1> to vector<16x1xi1>
    %284 = vector.broadcast %283 : vector<16x1xi1> to vector<16x256xi1>
    %285 = arith.select %284, %268, %282 : vector<16x256xi1>, vector<16x256xf32>
    %c1_i32_83 = arith.constant 1 : i32
    %286 = tpu.dynamic_rotate %285 by %c1_i32_83 dim 1 : vector<16x256xf32>, i32 -> vector<16x256xf32>
    %287 = vector.shape_cast %27 : vector<1x256xi1> to vector<1x256xi1>
    %288 = vector.broadcast %287 : vector<1x256xi1> to vector<16x256xi1>
    %289 = arith.select %288, %285, %286 : vector<16x256xi1>, vector<16x256xf32>
    %290 = vector.broadcast %53 : vector<1x256xf32> to vector<16x256xf32>
    %291 = arith.mulf %289, %290 : vector<16x256xf32>
    %292 = arith.addf %281, %291 : vector<16x256xf32>
    %c1_i32_84 = arith.constant 1 : i32
    %293 = arith.subi %264, %c1_i32_84 : i32
    %c0_i32_85 = arith.constant 0 : i32
    %c15_i32_86 = arith.constant 15 : i32
    %294 = arith.maxsi %c0_i32_85, %293 : i32
    %295 = arith.minsi %c15_i32_86, %294 : i32
    %c16_i32_87 = arith.constant 16 : i32
    %296 = arith.muli %295, %c16_i32_87 : i32
    %297 = tpu.assume_multiple %296, 16 : i32
    %298 = arith.index_cast %297 : i32 to index
    %c0_88 = arith.constant 0 : index
    %299 = vector.load %arg1[%298, %c0_88] : memref<256x256xf32, #tpu.memory_space<vmem>>, vector<16x256xf32>
    %c16_i32_89 = arith.constant 16 : i32
    %300 = tpu.dynamic_rotate %299 by %c16_i32_89 dim 1 : vector<16x256xf32>, i32 -> vector<16x256xf32>
    %301 = vector.shape_cast %7 : vector<1x256xi1> to vector<1x256xi1>
    %302 = vector.broadcast %301 : vector<1x256xi1> to vector<16x256xi1>
    %303 = arith.select %302, %299, %300 : vector<16x256xi1>, vector<16x256xf32>
    %304 = vector.broadcast %46 : vector<1x256xf32> to vector<16x256xf32>
    %305 = arith.mulf %303, %304 : vector<16x256xf32>
    %306 = arith.addf %292, %305 : vector<16x256xf32>
    %c15_i32_90 = arith.constant 15 : i32
    %307 = tpu.dynamic_rotate %303 by %c15_i32_90 dim 0 : vector<16x256xf32>, i32 -> vector<16x256xf32>
    %308 = vector.shape_cast %5 : vector<16x1xi1> to vector<16x1xi1>
    %309 = vector.broadcast %308 : vector<16x1xi1> to vector<16x256xi1>
    %310 = arith.select %309, %303, %307 : vector<16x256xi1>, vector<16x256xf32>
    %c255_i32_91 = arith.constant 255 : i32
    %311 = tpu.dynamic_rotate %310 by %c255_i32_91 dim 1 : vector<16x256xf32>, i32 -> vector<16x256xf32>
    %312 = vector.shape_cast %45 : vector<1x256xi1> to vector<1x256xi1>
    %313 = vector.broadcast %312 : vector<1x256xi1> to vector<16x256xi1>
    %314 = arith.select %313, %310, %311 : vector<16x256xi1>, vector<16x256xf32>
    %315 = vector.broadcast %47 : vector<1x256xf32> to vector<16x256xf32>
    %316 = arith.mulf %314, %315 : vector<16x256xf32>
    %317 = arith.addf %306, %316 : vector<16x256xf32>
    %c1_i32_92 = arith.constant 1 : i32
    %318 = tpu.dynamic_rotate %303 by %c1_i32_92 dim 0 : vector<16x256xf32>, i32 -> vector<16x256xf32>
    %319 = vector.shape_cast %3 : vector<16x1xi1> to vector<16x1xi1>
    %320 = vector.broadcast %319 : vector<16x1xi1> to vector<16x256xi1>
    %321 = arith.select %320, %303, %318 : vector<16x256xi1>, vector<16x256xf32>
    %c1_i32_93 = arith.constant 1 : i32
    %322 = tpu.dynamic_rotate %321 by %c1_i32_93 dim 1 : vector<16x256xf32>, i32 -> vector<16x256xf32>
    %323 = vector.shape_cast %27 : vector<1x256xi1> to vector<1x256xi1>
    %324 = vector.broadcast %323 : vector<1x256xi1> to vector<16x256xi1>
    %325 = arith.select %324, %321, %322 : vector<16x256xi1>, vector<16x256xf32>
    %326 = vector.broadcast %54 : vector<1x256xf32> to vector<16x256xf32>
    %327 = arith.mulf %325, %326 : vector<16x256xf32>
    %328 = arith.addf %317, %327 : vector<16x256xf32>
    %c-1_i32_94 = arith.constant -1 : i32
    %329 = arith.subi %264, %c-1_i32_94 : i32
    %c0_i32_95 = arith.constant 0 : i32
    %c15_i32_96 = arith.constant 15 : i32
    %330 = arith.maxsi %c0_i32_95, %329 : i32
    %331 = arith.minsi %c15_i32_96, %330 : i32
    %c16_i32_97 = arith.constant 16 : i32
    %332 = arith.muli %331, %c16_i32_97 : i32
    %333 = tpu.assume_multiple %332, 16 : i32
    %334 = arith.index_cast %333 : i32 to index
    %c0_98 = arith.constant 0 : index
    %335 = vector.load %arg1[%334, %c0_98] : memref<256x256xf32, #tpu.memory_space<vmem>>, vector<16x256xf32>
    %c240_i32_99 = arith.constant 240 : i32
    %336 = tpu.dynamic_rotate %335 by %c240_i32_99 dim 1 : vector<16x256xf32>, i32 -> vector<16x256xf32>
    %337 = vector.shape_cast %9 : vector<1x256xi1> to vector<1x256xi1>
    %338 = vector.broadcast %337 : vector<1x256xi1> to vector<16x256xi1>
    %339 = arith.select %338, %335, %336 : vector<16x256xi1>, vector<16x256xf32>
    %c15_i32_100 = arith.constant 15 : i32
    %340 = tpu.dynamic_rotate %339 by %c15_i32_100 dim 0 : vector<16x256xf32>, i32 -> vector<16x256xf32>
    %341 = vector.shape_cast %5 : vector<16x1xi1> to vector<16x1xi1>
    %342 = vector.broadcast %341 : vector<16x1xi1> to vector<16x256xi1>
    %343 = arith.select %342, %339, %340 : vector<16x256xi1>, vector<16x256xf32>
    %c255_i32_101 = arith.constant 255 : i32
    %344 = tpu.dynamic_rotate %343 by %c255_i32_101 dim 1 : vector<16x256xf32>, i32 -> vector<16x256xf32>
    %345 = vector.shape_cast %45 : vector<1x256xi1> to vector<1x256xi1>
    %346 = vector.broadcast %345 : vector<1x256xi1> to vector<16x256xi1>
    %347 = arith.select %346, %343, %344 : vector<16x256xi1>, vector<16x256xf32>
    %348 = vector.broadcast %49 : vector<1x256xf32> to vector<16x256xf32>
    %349 = arith.mulf %347, %348 : vector<16x256xf32>
    %350 = arith.addf %328, %349 : vector<16x256xf32>
    %351 = vector.broadcast %51 : vector<1x256xf32> to vector<16x256xf32>
    %352 = arith.mulf %339, %351 : vector<16x256xf32>
    %353 = arith.addf %350, %352 : vector<16x256xf32>
    %c1_i32_102 = arith.constant 1 : i32
    %354 = tpu.dynamic_rotate %339 by %c1_i32_102 dim 0 : vector<16x256xf32>, i32 -> vector<16x256xf32>
    %355 = vector.shape_cast %3 : vector<16x1xi1> to vector<16x1xi1>
    %356 = vector.broadcast %355 : vector<16x1xi1> to vector<16x256xi1>
    %357 = arith.select %356, %339, %354 : vector<16x256xi1>, vector<16x256xf32>
    %c1_i32_103 = arith.constant 1 : i32
    %358 = tpu.dynamic_rotate %357 by %c1_i32_103 dim 1 : vector<16x256xf32>, i32 -> vector<16x256xf32>
    %359 = vector.shape_cast %27 : vector<1x256xi1> to vector<1x256xi1>
    %360 = vector.broadcast %359 : vector<1x256xi1> to vector<16x256xi1>
    %361 = arith.select %360, %357, %358 : vector<16x256xi1>, vector<16x256xf32>
    %362 = vector.broadcast %52 : vector<1x256xf32> to vector<16x256xf32>
    %363 = arith.mulf %361, %362 : vector<16x256xf32>
    %364 = arith.addf %353, %363 : vector<16x256xf32>
    %c16_i32_104 = arith.constant 16 : i32
    %365 = arith.muli %c2_i32, %c16_i32_104 : i32
    %366 = arith.index_cast %365 : i32 to index
    %c0_105 = arith.constant 0 : index
    %367 = vector.load %arg3[%366, %c0_105] : memref<128x256xf32, #tpu.memory_space<vmem>>, vector<16x256xf32>
    tpu.vector_store %arg3[%366, %c0_105], %364 {strides = array<i32>} : memref<128x256xf32, #tpu.memory_space<vmem>>, vector<16x256xf32>,
    %c3_i32 = arith.constant 3 : i32
    %368 = arith.addi %55, %c3_i32 : i32
    %c16_i32_106 = arith.constant 16 : i32
    %369 = arith.muli %368, %c16_i32_106 : i32
    %370 = tpu.assume_multiple %369, 16 : i32
    %371 = arith.index_cast %370 : i32 to index
    %c0_107 = arith.constant 0 : index
    %372 = vector.load %arg1[%371, %c0_107] : memref<256x256xf32, #tpu.memory_space<vmem>>, vector<16x256xf32>
    %c15_i32_108 = arith.constant 15 : i32
    %373 = tpu.dynamic_rotate %372 by %c15_i32_108 dim 0 : vector<16x256xf32>, i32 -> vector<16x256xf32>
    %374 = vector.shape_cast %5 : vector<16x1xi1> to vector<16x1xi1>
    %375 = vector.broadcast %374 : vector<16x1xi1> to vector<16x256xi1>
    %376 = arith.select %375, %372, %373 : vector<16x256xi1>, vector<16x256xf32>
    %c255_i32_109 = arith.constant 255 : i32
    %377 = tpu.dynamic_rotate %376 by %c255_i32_109 dim 1 : vector<16x256xf32>, i32 -> vector<16x256xf32>
    %378 = vector.shape_cast %45 : vector<1x256xi1> to vector<1x256xi1>
    %379 = vector.broadcast %378 : vector<1x256xi1> to vector<16x256xi1>
    %380 = arith.select %379, %376, %377 : vector<16x256xi1>, vector<16x256xf32>
    %381 = vector.broadcast %48 : vector<1x256xf32> to vector<16x256xf32>
    %382 = arith.mulf %380, %381 : vector<16x256xf32>
    %383 = vector.broadcast %50 : vector<1x256xf32> to vector<16x256xf32>
    %384 = arith.mulf %372, %383 : vector<16x256xf32>
    %385 = arith.addf %382, %384 : vector<16x256xf32>
    %c1_i32_110 = arith.constant 1 : i32
    %386 = tpu.dynamic_rotate %372 by %c1_i32_110 dim 0 : vector<16x256xf32>, i32 -> vector<16x256xf32>
    %387 = vector.shape_cast %3 : vector<16x1xi1> to vector<16x1xi1>
    %388 = vector.broadcast %387 : vector<16x1xi1> to vector<16x256xi1>
    %389 = arith.select %388, %372, %386 : vector<16x256xi1>, vector<16x256xf32>
    %c1_i32_111 = arith.constant 1 : i32
    %390 = tpu.dynamic_rotate %389 by %c1_i32_111 dim 1 : vector<16x256xf32>, i32 -> vector<16x256xf32>
    %391 = vector.shape_cast %27 : vector<1x256xi1> to vector<1x256xi1>
    %392 = vector.broadcast %391 : vector<1x256xi1> to vector<16x256xi1>
    %393 = arith.select %392, %389, %390 : vector<16x256xi1>, vector<16x256xf32>
    %394 = vector.broadcast %53 : vector<1x256xf32> to vector<16x256xf32>
    %395 = arith.mulf %393, %394 : vector<16x256xf32>
    %396 = arith.addf %385, %395 : vector<16x256xf32>
    %c1_i32_112 = arith.constant 1 : i32
    %397 = arith.subi %368, %c1_i32_112 : i32
    %c0_i32_113 = arith.constant 0 : i32
    %c15_i32_114 = arith.constant 15 : i32
    %398 = arith.maxsi %c0_i32_113, %397 : i32
    %399 = arith.minsi %c15_i32_114, %398 : i32
    %c16_i32_115 = arith.constant 16 : i32
    %400 = arith.muli %399, %c16_i32_115 : i32
    %401 = tpu.assume_multiple %400, 16 : i32
    %402 = arith.index_cast %401 : i32 to index
    %c0_116 = arith.constant 0 : index
    %403 = vector.load %arg1[%402, %c0_116] : memref<256x256xf32, #tpu.memory_space<vmem>>, vector<16x256xf32>
    %c16_i32_117 = arith.constant 16 : i32
    %404 = tpu.dynamic_rotate %403 by %c16_i32_117 dim 1 : vector<16x256xf32>, i32 -> vector<16x256xf32>
    %405 = vector.shape_cast %7 : vector<1x256xi1> to vector<1x256xi1>
    %406 = vector.broadcast %405 : vector<1x256xi1> to vector<16x256xi1>
    %407 = arith.select %406, %403, %404 : vector<16x256xi1>, vector<16x256xf32>
    %408 = vector.broadcast %46 : vector<1x256xf32> to vector<16x256xf32>
    %409 = arith.mulf %407, %408 : vector<16x256xf32>
    %410 = arith.addf %396, %409 : vector<16x256xf32>
    %c15_i32_118 = arith.constant 15 : i32
    %411 = tpu.dynamic_rotate %407 by %c15_i32_118 dim 0 : vector<16x256xf32>, i32 -> vector<16x256xf32>
    %412 = vector.shape_cast %5 : vector<16x1xi1> to vector<16x1xi1>
    %413 = vector.broadcast %412 : vector<16x1xi1> to vector<16x256xi1>
    %414 = arith.select %413, %407, %411 : vector<16x256xi1>, vector<16x256xf32>
    %c255_i32_119 = arith.constant 255 : i32
    %415 = tpu.dynamic_rotate %414 by %c255_i32_119 dim 1 : vector<16x256xf32>, i32 -> vector<16x256xf32>
    %416 = vector.shape_cast %45 : vector<1x256xi1> to vector<1x256xi1>
    %417 = vector.broadcast %416 : vector<1x256xi1> to vector<16x256xi1>
    %418 = arith.select %417, %414, %415 : vector<16x256xi1>, vector<16x256xf32>
    %419 = vector.broadcast %47 : vector<1x256xf32> to vector<16x256xf32>
    %420 = arith.mulf %418, %419 : vector<16x256xf32>
    %421 = arith.addf %410, %420 : vector<16x256xf32>
    %c1_i32_120 = arith.constant 1 : i32
    %422 = tpu.dynamic_rotate %407 by %c1_i32_120 dim 0 : vector<16x256xf32>, i32 -> vector<16x256xf32>
    %423 = vector.shape_cast %3 : vector<16x1xi1> to vector<16x1xi1>
    %424 = vector.broadcast %423 : vector<16x1xi1> to vector<16x256xi1>
    %425 = arith.select %424, %407, %422 : vector<16x256xi1>, vector<16x256xf32>
    %c1_i32_121 = arith.constant 1 : i32
    %426 = tpu.dynamic_rotate %425 by %c1_i32_121 dim 1 : vector<16x256xf32>, i32 -> vector<16x256xf32>
    %427 = vector.shape_cast %27 : vector<1x256xi1> to vector<1x256xi1>
    %428 = vector.broadcast %427 : vector<1x256xi1> to vector<16x256xi1>
    %429 = arith.select %428, %425, %426 : vector<16x256xi1>, vector<16x256xf32>
    %430 = vector.broadcast %54 : vector<1x256xf32> to vector<16x256xf32>
    %431 = arith.mulf %429, %430 : vector<16x256xf32>
    %432 = arith.addf %421, %431 : vector<16x256xf32>
    %c-1_i32_122 = arith.constant -1 : i32
    %433 = arith.subi %368, %c-1_i32_122 : i32
    %c0_i32_123 = arith.constant 0 : i32
    %c15_i32_124 = arith.constant 15 : i32
    %434 = arith.maxsi %c0_i32_123, %433 : i32
    %435 = arith.minsi %c15_i32_124, %434 : i32
    %c16_i32_125 = arith.constant 16 : i32
    %436 = arith.muli %435, %c16_i32_125 : i32
    %437 = tpu.assume_multiple %436, 16 : i32
    %438 = arith.index_cast %437 : i32 to index
    %c0_126 = arith.constant 0 : index
    %439 = vector.load %arg1[%438, %c0_126] : memref<256x256xf32, #tpu.memory_space<vmem>>, vector<16x256xf32>
    %c240_i32_127 = arith.constant 240 : i32
    %440 = tpu.dynamic_rotate %439 by %c240_i32_127 dim 1 : vector<16x256xf32>, i32 -> vector<16x256xf32>
    %441 = vector.shape_cast %9 : vector<1x256xi1> to vector<1x256xi1>
    %442 = vector.broadcast %441 : vector<1x256xi1> to vector<16x256xi1>
    %443 = arith.select %442, %439, %440 : vector<16x256xi1>, vector<16x256xf32>
    %c15_i32_128 = arith.constant 15 : i32
    %444 = tpu.dynamic_rotate %443 by %c15_i32_128 dim 0 : vector<16x256xf32>, i32 -> vector<16x256xf32>
    %445 = vector.shape_cast %5 : vector<16x1xi1> to vector<16x1xi1>
    %446 = vector.broadcast %445 : vector<16x1xi1> to vector<16x256xi1>
    %447 = arith.select %446, %443, %444 : vector<16x256xi1>, vector<16x256xf32>
    %c255_i32_129 = arith.constant 255 : i32
    %448 = tpu.dynamic_rotate %447 by %c255_i32_129 dim 1 : vector<16x256xf32>, i32 -> vector<16x256xf32>
    %449 = vector.shape_cast %45 : vector<1x256xi1> to vector<1x256xi1>
    %450 = vector.broadcast %449 : vector<1x256xi1> to vector<16x256xi1>
    %451 = arith.select %450, %447, %448 : vector<16x256xi1>, vector<16x256xf32>
    %452 = vector.broadcast %49 : vector<1x256xf32> to vector<16x256xf32>
    %453 = arith.mulf %451, %452 : vector<16x256xf32>
    %454 = arith.addf %432, %453 : vector<16x256xf32>
    %455 = vector.broadcast %51 : vector<1x256xf32> to vector<16x256xf32>
    %456 = arith.mulf %443, %455 : vector<16x256xf32>
    %457 = arith.addf %454, %456 : vector<16x256xf32>
    %c1_i32_130 = arith.constant 1 : i32
    %458 = tpu.dynamic_rotate %443 by %c1_i32_130 dim 0 : vector<16x256xf32>, i32 -> vector<16x256xf32>
    %459 = vector.shape_cast %3 : vector<16x1xi1> to vector<16x1xi1>
    %460 = vector.broadcast %459 : vector<16x1xi1> to vector<16x256xi1>
    %461 = arith.select %460, %443, %458 : vector<16x256xi1>, vector<16x256xf32>
    %c1_i32_131 = arith.constant 1 : i32
    %462 = tpu.dynamic_rotate %461 by %c1_i32_131 dim 1 : vector<16x256xf32>, i32 -> vector<16x256xf32>
    %463 = vector.shape_cast %27 : vector<1x256xi1> to vector<1x256xi1>
    %464 = vector.broadcast %463 : vector<1x256xi1> to vector<16x256xi1>
    %465 = arith.select %464, %461, %462 : vector<16x256xi1>, vector<16x256xf32>
    %466 = vector.broadcast %52 : vector<1x256xf32> to vector<16x256xf32>
    %467 = arith.mulf %465, %466 : vector<16x256xf32>
    %468 = arith.addf %457, %467 : vector<16x256xf32>
    %c16_i32_132 = arith.constant 16 : i32
    %469 = arith.muli %c3_i32, %c16_i32_132 : i32
    %470 = arith.index_cast %469 : i32 to index
    %c0_133 = arith.constant 0 : index
    %471 = vector.load %arg3[%470, %c0_133] : memref<128x256xf32, #tpu.memory_space<vmem>>, vector<16x256xf32>
    tpu.vector_store %arg3[%470, %c0_133], %468 {strides = array<i32>} : memref<128x256xf32, #tpu.memory_space<vmem>>, vector<16x256xf32>,
    %c4_i32 = arith.constant 4 : i32
    %472 = arith.addi %55, %c4_i32 : i32
    %c16_i32_134 = arith.constant 16 : i32
    %473 = arith.muli %472, %c16_i32_134 : i32
    %474 = tpu.assume_multiple %473, 16 : i32
    %475 = arith.index_cast %474 : i32 to index
    %c0_135 = arith.constant 0 : index
    %476 = vector.load %arg1[%475, %c0_135] : memref<256x256xf32, #tpu.memory_space<vmem>>, vector<16x256xf32>
    %c15_i32_136 = arith.constant 15 : i32
    %477 = tpu.dynamic_rotate %476 by %c15_i32_136 dim 0 : vector<16x256xf32>, i32 -> vector<16x256xf32>
    %478 = vector.shape_cast %5 : vector<16x1xi1> to vector<16x1xi1>
    %479 = vector.broadcast %478 : vector<16x1xi1> to vector<16x256xi1>
    %480 = arith.select %479, %476, %477 : vector<16x256xi1>, vector<16x256xf32>
    %c255_i32_137 = arith.constant 255 : i32
    %481 = tpu.dynamic_rotate %480 by %c255_i32_137 dim 1 : vector<16x256xf32>, i32 -> vector<16x256xf32>
    %482 = vector.shape_cast %45 : vector<1x256xi1> to vector<1x256xi1>
    %483 = vector.broadcast %482 : vector<1x256xi1> to vector<16x256xi1>
    %484 = arith.select %483, %480, %481 : vector<16x256xi1>, vector<16x256xf32>
    %485 = vector.broadcast %48 : vector<1x256xf32> to vector<16x256xf32>
    %486 = arith.mulf %484, %485 : vector<16x256xf32>
    %487 = vector.broadcast %50 : vector<1x256xf32> to vector<16x256xf32>
    %488 = arith.mulf %476, %487 : vector<16x256xf32>
    %489 = arith.addf %486, %488 : vector<16x256xf32>
    %c1_i32_138 = arith.constant 1 : i32
    %490 = tpu.dynamic_rotate %476 by %c1_i32_138 dim 0 : vector<16x256xf32>, i32 -> vector<16x256xf32>
    %491 = vector.shape_cast %3 : vector<16x1xi1> to vector<16x1xi1>
    %492 = vector.broadcast %491 : vector<16x1xi1> to vector<16x256xi1>
    %493 = arith.select %492, %476, %490 : vector<16x256xi1>, vector<16x256xf32>
    %c1_i32_139 = arith.constant 1 : i32
    %494 = tpu.dynamic_rotate %493 by %c1_i32_139 dim 1 : vector<16x256xf32>, i32 -> vector<16x256xf32>
    %495 = vector.shape_cast %27 : vector<1x256xi1> to vector<1x256xi1>
    %496 = vector.broadcast %495 : vector<1x256xi1> to vector<16x256xi1>
    %497 = arith.select %496, %493, %494 : vector<16x256xi1>, vector<16x256xf32>
    %498 = vector.broadcast %53 : vector<1x256xf32> to vector<16x256xf32>
    %499 = arith.mulf %497, %498 : vector<16x256xf32>
    %500 = arith.addf %489, %499 : vector<16x256xf32>
    %c1_i32_140 = arith.constant 1 : i32
    %501 = arith.subi %472, %c1_i32_140 : i32
    %c0_i32_141 = arith.constant 0 : i32
    %c15_i32_142 = arith.constant 15 : i32
    %502 = arith.maxsi %c0_i32_141, %501 : i32
    %503 = arith.minsi %c15_i32_142, %502 : i32
    %c16_i32_143 = arith.constant 16 : i32
    %504 = arith.muli %503, %c16_i32_143 : i32
    %505 = tpu.assume_multiple %504, 16 : i32
    %506 = arith.index_cast %505 : i32 to index
    %c0_144 = arith.constant 0 : index
    %507 = vector.load %arg1[%506, %c0_144] : memref<256x256xf32, #tpu.memory_space<vmem>>, vector<16x256xf32>
    %c16_i32_145 = arith.constant 16 : i32
    %508 = tpu.dynamic_rotate %507 by %c16_i32_145 dim 1 : vector<16x256xf32>, i32 -> vector<16x256xf32>
    %509 = vector.shape_cast %7 : vector<1x256xi1> to vector<1x256xi1>
    %510 = vector.broadcast %509 : vector<1x256xi1> to vector<16x256xi1>
    %511 = arith.select %510, %507, %508 : vector<16x256xi1>, vector<16x256xf32>
    %512 = vector.broadcast %46 : vector<1x256xf32> to vector<16x256xf32>
    %513 = arith.mulf %511, %512 : vector<16x256xf32>
    %514 = arith.addf %500, %513 : vector<16x256xf32>
    %c15_i32_146 = arith.constant 15 : i32
    %515 = tpu.dynamic_rotate %511 by %c15_i32_146 dim 0 : vector<16x256xf32>, i32 -> vector<16x256xf32>
    %516 = vector.shape_cast %5 : vector<16x1xi1> to vector<16x1xi1>
    %517 = vector.broadcast %516 : vector<16x1xi1> to vector<16x256xi1>
    %518 = arith.select %517, %511, %515 : vector<16x256xi1>, vector<16x256xf32>
    %c255_i32_147 = arith.constant 255 : i32
    %519 = tpu.dynamic_rotate %518 by %c255_i32_147 dim 1 : vector<16x256xf32>, i32 -> vector<16x256xf32>
    %520 = vector.shape_cast %45 : vector<1x256xi1> to vector<1x256xi1>
    %521 = vector.broadcast %520 : vector<1x256xi1> to vector<16x256xi1>
    %522 = arith.select %521, %518, %519 : vector<16x256xi1>, vector<16x256xf32>
    %523 = vector.broadcast %47 : vector<1x256xf32> to vector<16x256xf32>
    %524 = arith.mulf %522, %523 : vector<16x256xf32>
    %525 = arith.addf %514, %524 : vector<16x256xf32>
    %c1_i32_148 = arith.constant 1 : i32
    %526 = tpu.dynamic_rotate %511 by %c1_i32_148 dim 0 : vector<16x256xf32>, i32 -> vector<16x256xf32>
    %527 = vector.shape_cast %3 : vector<16x1xi1> to vector<16x1xi1>
    %528 = vector.broadcast %527 : vector<16x1xi1> to vector<16x256xi1>
    %529 = arith.select %528, %511, %526 : vector<16x256xi1>, vector<16x256xf32>
    %c1_i32_149 = arith.constant 1 : i32
    %530 = tpu.dynamic_rotate %529 by %c1_i32_149 dim 1 : vector<16x256xf32>, i32 -> vector<16x256xf32>
    %531 = vector.shape_cast %27 : vector<1x256xi1> to vector<1x256xi1>
    %532 = vector.broadcast %531 : vector<1x256xi1> to vector<16x256xi1>
    %533 = arith.select %532, %529, %530 : vector<16x256xi1>, vector<16x256xf32>
    %534 = vector.broadcast %54 : vector<1x256xf32> to vector<16x256xf32>
    %535 = arith.mulf %533, %534 : vector<16x256xf32>
    %536 = arith.addf %525, %535 : vector<16x256xf32>
    %c-1_i32_150 = arith.constant -1 : i32
    %537 = arith.subi %472, %c-1_i32_150 : i32
    %c0_i32_151 = arith.constant 0 : i32
    %c15_i32_152 = arith.constant 15 : i32
    %538 = arith.maxsi %c0_i32_151, %537 : i32
    %539 = arith.minsi %c15_i32_152, %538 : i32
    %c16_i32_153 = arith.constant 16 : i32
    %540 = arith.muli %539, %c16_i32_153 : i32
    %541 = tpu.assume_multiple %540, 16 : i32
    %542 = arith.index_cast %541 : i32 to index
    %c0_154 = arith.constant 0 : index
    %543 = vector.load %arg1[%542, %c0_154] : memref<256x256xf32, #tpu.memory_space<vmem>>, vector<16x256xf32>
    %c240_i32_155 = arith.constant 240 : i32
    %544 = tpu.dynamic_rotate %543 by %c240_i32_155 dim 1 : vector<16x256xf32>, i32 -> vector<16x256xf32>
    %545 = vector.shape_cast %9 : vector<1x256xi1> to vector<1x256xi1>
    %546 = vector.broadcast %545 : vector<1x256xi1> to vector<16x256xi1>
    %547 = arith.select %546, %543, %544 : vector<16x256xi1>, vector<16x256xf32>
    %c15_i32_156 = arith.constant 15 : i32
    %548 = tpu.dynamic_rotate %547 by %c15_i32_156 dim 0 : vector<16x256xf32>, i32 -> vector<16x256xf32>
    %549 = vector.shape_cast %5 : vector<16x1xi1> to vector<16x1xi1>
    %550 = vector.broadcast %549 : vector<16x1xi1> to vector<16x256xi1>
    %551 = arith.select %550, %547, %548 : vector<16x256xi1>, vector<16x256xf32>
    %c255_i32_157 = arith.constant 255 : i32
    %552 = tpu.dynamic_rotate %551 by %c255_i32_157 dim 1 : vector<16x256xf32>, i32 -> vector<16x256xf32>
    %553 = vector.shape_cast %45 : vector<1x256xi1> to vector<1x256xi1>
    %554 = vector.broadcast %553 : vector<1x256xi1> to vector<16x256xi1>
    %555 = arith.select %554, %551, %552 : vector<16x256xi1>, vector<16x256xf32>
    %556 = vector.broadcast %49 : vector<1x256xf32> to vector<16x256xf32>
    %557 = arith.mulf %555, %556 : vector<16x256xf32>
    %558 = arith.addf %536, %557 : vector<16x256xf32>
    %559 = vector.broadcast %51 : vector<1x256xf32> to vector<16x256xf32>
    %560 = arith.mulf %547, %559 : vector<16x256xf32>
    %561 = arith.addf %558, %560 : vector<16x256xf32>
    %c1_i32_158 = arith.constant 1 : i32
    %562 = tpu.dynamic_rotate %547 by %c1_i32_158 dim 0 : vector<16x256xf32>, i32 -> vector<16x256xf32>
    %563 = vector.shape_cast %3 : vector<16x1xi1> to vector<16x1xi1>
    %564 = vector.broadcast %563 : vector<16x1xi1> to vector<16x256xi1>
    %565 = arith.select %564, %547, %562 : vector<16x256xi1>, vector<16x256xf32>
    %c1_i32_159 = arith.constant 1 : i32
    %566 = tpu.dynamic_rotate %565 by %c1_i32_159 dim 1 : vector<16x256xf32>, i32 -> vector<16x256xf32>
    %567 = vector.shape_cast %27 : vector<1x256xi1> to vector<1x256xi1>
    %568 = vector.broadcast %567 : vector<1x256xi1> to vector<16x256xi1>
    %569 = arith.select %568, %565, %566 : vector<16x256xi1>, vector<16x256xf32>
    %570 = vector.broadcast %52 : vector<1x256xf32> to vector<16x256xf32>
    %571 = arith.mulf %569, %570 : vector<16x256xf32>
    %572 = arith.addf %561, %571 : vector<16x256xf32>
    %c16_i32_160 = arith.constant 16 : i32
    %573 = arith.muli %c4_i32, %c16_i32_160 : i32
    %574 = arith.index_cast %573 : i32 to index
    %c0_161 = arith.constant 0 : index
    %575 = vector.load %arg3[%574, %c0_161] : memref<128x256xf32, #tpu.memory_space<vmem>>, vector<16x256xf32>
    tpu.vector_store %arg3[%574, %c0_161], %572 {strides = array<i32>} : memref<128x256xf32, #tpu.memory_space<vmem>>, vector<16x256xf32>,
    %c5_i32 = arith.constant 5 : i32
    %576 = arith.addi %55, %c5_i32 : i32
    %c16_i32_162 = arith.constant 16 : i32
    %577 = arith.muli %576, %c16_i32_162 : i32
    %578 = tpu.assume_multiple %577, 16 : i32
    %579 = arith.index_cast %578 : i32 to index
    %c0_163 = arith.constant 0 : index
    %580 = vector.load %arg1[%579, %c0_163] : memref<256x256xf32, #tpu.memory_space<vmem>>, vector<16x256xf32>
    %c15_i32_164 = arith.constant 15 : i32
    %581 = tpu.dynamic_rotate %580 by %c15_i32_164 dim 0 : vector<16x256xf32>, i32 -> vector<16x256xf32>
    %582 = vector.shape_cast %5 : vector<16x1xi1> to vector<16x1xi1>
    %583 = vector.broadcast %582 : vector<16x1xi1> to vector<16x256xi1>
    %584 = arith.select %583, %580, %581 : vector<16x256xi1>, vector<16x256xf32>
    %c255_i32_165 = arith.constant 255 : i32
    %585 = tpu.dynamic_rotate %584 by %c255_i32_165 dim 1 : vector<16x256xf32>, i32 -> vector<16x256xf32>
    %586 = vector.shape_cast %45 : vector<1x256xi1> to vector<1x256xi1>
    %587 = vector.broadcast %586 : vector<1x256xi1> to vector<16x256xi1>
    %588 = arith.select %587, %584, %585 : vector<16x256xi1>, vector<16x256xf32>
    %589 = vector.broadcast %48 : vector<1x256xf32> to vector<16x256xf32>
    %590 = arith.mulf %588, %589 : vector<16x256xf32>
    %591 = vector.broadcast %50 : vector<1x256xf32> to vector<16x256xf32>
    %592 = arith.mulf %580, %591 : vector<16x256xf32>
    %593 = arith.addf %590, %592 : vector<16x256xf32>
    %c1_i32_166 = arith.constant 1 : i32
    %594 = tpu.dynamic_rotate %580 by %c1_i32_166 dim 0 : vector<16x256xf32>, i32 -> vector<16x256xf32>
    %595 = vector.shape_cast %3 : vector<16x1xi1> to vector<16x1xi1>
    %596 = vector.broadcast %595 : vector<16x1xi1> to vector<16x256xi1>
    %597 = arith.select %596, %580, %594 : vector<16x256xi1>, vector<16x256xf32>
    %c1_i32_167 = arith.constant 1 : i32
    %598 = tpu.dynamic_rotate %597 by %c1_i32_167 dim 1 : vector<16x256xf32>, i32 -> vector<16x256xf32>
    %599 = vector.shape_cast %27 : vector<1x256xi1> to vector<1x256xi1>
    %600 = vector.broadcast %599 : vector<1x256xi1> to vector<16x256xi1>
    %601 = arith.select %600, %597, %598 : vector<16x256xi1>, vector<16x256xf32>
    %602 = vector.broadcast %53 : vector<1x256xf32> to vector<16x256xf32>
    %603 = arith.mulf %601, %602 : vector<16x256xf32>
    %604 = arith.addf %593, %603 : vector<16x256xf32>
    %c1_i32_168 = arith.constant 1 : i32
    %605 = arith.subi %576, %c1_i32_168 : i32
    %c0_i32_169 = arith.constant 0 : i32
    %c15_i32_170 = arith.constant 15 : i32
    %606 = arith.maxsi %c0_i32_169, %605 : i32
    %607 = arith.minsi %c15_i32_170, %606 : i32
    %c16_i32_171 = arith.constant 16 : i32
    %608 = arith.muli %607, %c16_i32_171 : i32
    %609 = tpu.assume_multiple %608, 16 : i32
    %610 = arith.index_cast %609 : i32 to index
    %c0_172 = arith.constant 0 : index
    %611 = vector.load %arg1[%610, %c0_172] : memref<256x256xf32, #tpu.memory_space<vmem>>, vector<16x256xf32>
    %c16_i32_173 = arith.constant 16 : i32
    %612 = tpu.dynamic_rotate %611 by %c16_i32_173 dim 1 : vector<16x256xf32>, i32 -> vector<16x256xf32>
    %613 = vector.shape_cast %7 : vector<1x256xi1> to vector<1x256xi1>
    %614 = vector.broadcast %613 : vector<1x256xi1> to vector<16x256xi1>
    %615 = arith.select %614, %611, %612 : vector<16x256xi1>, vector<16x256xf32>
    %616 = vector.broadcast %46 : vector<1x256xf32> to vector<16x256xf32>
    %617 = arith.mulf %615, %616 : vector<16x256xf32>
    %618 = arith.addf %604, %617 : vector<16x256xf32>
    %c15_i32_174 = arith.constant 15 : i32
    %619 = tpu.dynamic_rotate %615 by %c15_i32_174 dim 0 : vector<16x256xf32>, i32 -> vector<16x256xf32>
    %620 = vector.shape_cast %5 : vector<16x1xi1> to vector<16x1xi1>
    %621 = vector.broadcast %620 : vector<16x1xi1> to vector<16x256xi1>
    %622 = arith.select %621, %615, %619 : vector<16x256xi1>, vector<16x256xf32>
    %c255_i32_175 = arith.constant 255 : i32
    %623 = tpu.dynamic_rotate %622 by %c255_i32_175 dim 1 : vector<16x256xf32>, i32 -> vector<16x256xf32>
    %624 = vector.shape_cast %45 : vector<1x256xi1> to vector<1x256xi1>
    %625 = vector.broadcast %624 : vector<1x256xi1> to vector<16x256xi1>
    %626 = arith.select %625, %622, %623 : vector<16x256xi1>, vector<16x256xf32>
    %627 = vector.broadcast %47 : vector<1x256xf32> to vector<16x256xf32>
    %628 = arith.mulf %626, %627 : vector<16x256xf32>
    %629 = arith.addf %618, %628 : vector<16x256xf32>
    %c1_i32_176 = arith.constant 1 : i32
    %630 = tpu.dynamic_rotate %615 by %c1_i32_176 dim 0 : vector<16x256xf32>, i32 -> vector<16x256xf32>
    %631 = vector.shape_cast %3 : vector<16x1xi1> to vector<16x1xi1>
    %632 = vector.broadcast %631 : vector<16x1xi1> to vector<16x256xi1>
    %633 = arith.select %632, %615, %630 : vector<16x256xi1>, vector<16x256xf32>
    %c1_i32_177 = arith.constant 1 : i32
    %634 = tpu.dynamic_rotate %633 by %c1_i32_177 dim 1 : vector<16x256xf32>, i32 -> vector<16x256xf32>
    %635 = vector.shape_cast %27 : vector<1x256xi1> to vector<1x256xi1>
    %636 = vector.broadcast %635 : vector<1x256xi1> to vector<16x256xi1>
    %637 = arith.select %636, %633, %634 : vector<16x256xi1>, vector<16x256xf32>
    %638 = vector.broadcast %54 : vector<1x256xf32> to vector<16x256xf32>
    %639 = arith.mulf %637, %638 : vector<16x256xf32>
    %640 = arith.addf %629, %639 : vector<16x256xf32>
    %c-1_i32_178 = arith.constant -1 : i32
    %641 = arith.subi %576, %c-1_i32_178 : i32
    %c0_i32_179 = arith.constant 0 : i32
    %c15_i32_180 = arith.constant 15 : i32
    %642 = arith.maxsi %c0_i32_179, %641 : i32
    %643 = arith.minsi %c15_i32_180, %642 : i32
    %c16_i32_181 = arith.constant 16 : i32
    %644 = arith.muli %643, %c16_i32_181 : i32
    %645 = tpu.assume_multiple %644, 16 : i32
    %646 = arith.index_cast %645 : i32 to index
    %c0_182 = arith.constant 0 : index
    %647 = vector.load %arg1[%646, %c0_182] : memref<256x256xf32, #tpu.memory_space<vmem>>, vector<16x256xf32>
    %c240_i32_183 = arith.constant 240 : i32
    %648 = tpu.dynamic_rotate %647 by %c240_i32_183 dim 1 : vector<16x256xf32>, i32 -> vector<16x256xf32>
    %649 = vector.shape_cast %9 : vector<1x256xi1> to vector<1x256xi1>
    %650 = vector.broadcast %649 : vector<1x256xi1> to vector<16x256xi1>
    %651 = arith.select %650, %647, %648 : vector<16x256xi1>, vector<16x256xf32>
    %c15_i32_184 = arith.constant 15 : i32
    %652 = tpu.dynamic_rotate %651 by %c15_i32_184 dim 0 : vector<16x256xf32>, i32 -> vector<16x256xf32>
    %653 = vector.shape_cast %5 : vector<16x1xi1> to vector<16x1xi1>
    %654 = vector.broadcast %653 : vector<16x1xi1> to vector<16x256xi1>
    %655 = arith.select %654, %651, %652 : vector<16x256xi1>, vector<16x256xf32>
    %c255_i32_185 = arith.constant 255 : i32
    %656 = tpu.dynamic_rotate %655 by %c255_i32_185 dim 1 : vector<16x256xf32>, i32 -> vector<16x256xf32>
    %657 = vector.shape_cast %45 : vector<1x256xi1> to vector<1x256xi1>
    %658 = vector.broadcast %657 : vector<1x256xi1> to vector<16x256xi1>
    %659 = arith.select %658, %655, %656 : vector<16x256xi1>, vector<16x256xf32>
    %660 = vector.broadcast %49 : vector<1x256xf32> to vector<16x256xf32>
    %661 = arith.mulf %659, %660 : vector<16x256xf32>
    %662 = arith.addf %640, %661 : vector<16x256xf32>
    %663 = vector.broadcast %51 : vector<1x256xf32> to vector<16x256xf32>
    %664 = arith.mulf %651, %663 : vector<16x256xf32>
    %665 = arith.addf %662, %664 : vector<16x256xf32>
    %c1_i32_186 = arith.constant 1 : i32
    %666 = tpu.dynamic_rotate %651 by %c1_i32_186 dim 0 : vector<16x256xf32>, i32 -> vector<16x256xf32>
    %667 = vector.shape_cast %3 : vector<16x1xi1> to vector<16x1xi1>
    %668 = vector.broadcast %667 : vector<16x1xi1> to vector<16x256xi1>
    %669 = arith.select %668, %651, %666 : vector<16x256xi1>, vector<16x256xf32>
    %c1_i32_187 = arith.constant 1 : i32
    %670 = tpu.dynamic_rotate %669 by %c1_i32_187 dim 1 : vector<16x256xf32>, i32 -> vector<16x256xf32>
    %671 = vector.shape_cast %27 : vector<1x256xi1> to vector<1x256xi1>
    %672 = vector.broadcast %671 : vector<1x256xi1> to vector<16x256xi1>
    %673 = arith.select %672, %669, %670 : vector<16x256xi1>, vector<16x256xf32>
    %674 = vector.broadcast %52 : vector<1x256xf32> to vector<16x256xf32>
    %675 = arith.mulf %673, %674 : vector<16x256xf32>
    %676 = arith.addf %665, %675 : vector<16x256xf32>
    %c16_i32_188 = arith.constant 16 : i32
    %677 = arith.muli %c5_i32, %c16_i32_188 : i32
    %678 = arith.index_cast %677 : i32 to index
    %c0_189 = arith.constant 0 : index
    %679 = vector.load %arg3[%678, %c0_189] : memref<128x256xf32, #tpu.memory_space<vmem>>, vector<16x256xf32>
    tpu.vector_store %arg3[%678, %c0_189], %676 {strides = array<i32>} : memref<128x256xf32, #tpu.memory_space<vmem>>, vector<16x256xf32>,
    %c6_i32 = arith.constant 6 : i32
    %680 = arith.addi %55, %c6_i32 : i32
    %c16_i32_190 = arith.constant 16 : i32
    %681 = arith.muli %680, %c16_i32_190 : i32
    %682 = tpu.assume_multiple %681, 16 : i32
    %683 = arith.index_cast %682 : i32 to index
    %c0_191 = arith.constant 0 : index
    %684 = vector.load %arg1[%683, %c0_191] : memref<256x256xf32, #tpu.memory_space<vmem>>, vector<16x256xf32>
    %c15_i32_192 = arith.constant 15 : i32
    %685 = tpu.dynamic_rotate %684 by %c15_i32_192 dim 0 : vector<16x256xf32>, i32 -> vector<16x256xf32>
    %686 = vector.shape_cast %5 : vector<16x1xi1> to vector<16x1xi1>
    %687 = vector.broadcast %686 : vector<16x1xi1> to vector<16x256xi1>
    %688 = arith.select %687, %684, %685 : vector<16x256xi1>, vector<16x256xf32>
    %c255_i32_193 = arith.constant 255 : i32
    %689 = tpu.dynamic_rotate %688 by %c255_i32_193 dim 1 : vector<16x256xf32>, i32 -> vector<16x256xf32>
    %690 = vector.shape_cast %45 : vector<1x256xi1> to vector<1x256xi1>
    %691 = vector.broadcast %690 : vector<1x256xi1> to vector<16x256xi1>
    %692 = arith.select %691, %688, %689 : vector<16x256xi1>, vector<16x256xf32>
    %693 = vector.broadcast %48 : vector<1x256xf32> to vector<16x256xf32>
    %694 = arith.mulf %692, %693 : vector<16x256xf32>
    %695 = vector.broadcast %50 : vector<1x256xf32> to vector<16x256xf32>
    %696 = arith.mulf %684, %695 : vector<16x256xf32>
    %697 = arith.addf %694, %696 : vector<16x256xf32>
    %c1_i32_194 = arith.constant 1 : i32
    %698 = tpu.dynamic_rotate %684 by %c1_i32_194 dim 0 : vector<16x256xf32>, i32 -> vector<16x256xf32>
    %699 = vector.shape_cast %3 : vector<16x1xi1> to vector<16x1xi1>
    %700 = vector.broadcast %699 : vector<16x1xi1> to vector<16x256xi1>
    %701 = arith.select %700, %684, %698 : vector<16x256xi1>, vector<16x256xf32>
    %c1_i32_195 = arith.constant 1 : i32
    %702 = tpu.dynamic_rotate %701 by %c1_i32_195 dim 1 : vector<16x256xf32>, i32 -> vector<16x256xf32>
    %703 = vector.shape_cast %27 : vector<1x256xi1> to vector<1x256xi1>
    %704 = vector.broadcast %703 : vector<1x256xi1> to vector<16x256xi1>
    %705 = arith.select %704, %701, %702 : vector<16x256xi1>, vector<16x256xf32>
    %706 = vector.broadcast %53 : vector<1x256xf32> to vector<16x256xf32>
    %707 = arith.mulf %705, %706 : vector<16x256xf32>
    %708 = arith.addf %697, %707 : vector<16x256xf32>
    %c1_i32_196 = arith.constant 1 : i32
    %709 = arith.subi %680, %c1_i32_196 : i32
    %c0_i32_197 = arith.constant 0 : i32
    %c15_i32_198 = arith.constant 15 : i32
    %710 = arith.maxsi %c0_i32_197, %709 : i32
    %711 = arith.minsi %c15_i32_198, %710 : i32
    %c16_i32_199 = arith.constant 16 : i32
    %712 = arith.muli %711, %c16_i32_199 : i32
    %713 = tpu.assume_multiple %712, 16 : i32
    %714 = arith.index_cast %713 : i32 to index
    %c0_200 = arith.constant 0 : index
    %715 = vector.load %arg1[%714, %c0_200] : memref<256x256xf32, #tpu.memory_space<vmem>>, vector<16x256xf32>
    %c16_i32_201 = arith.constant 16 : i32
    %716 = tpu.dynamic_rotate %715 by %c16_i32_201 dim 1 : vector<16x256xf32>, i32 -> vector<16x256xf32>
    %717 = vector.shape_cast %7 : vector<1x256xi1> to vector<1x256xi1>
    %718 = vector.broadcast %717 : vector<1x256xi1> to vector<16x256xi1>
    %719 = arith.select %718, %715, %716 : vector<16x256xi1>, vector<16x256xf32>
    %720 = vector.broadcast %46 : vector<1x256xf32> to vector<16x256xf32>
    %721 = arith.mulf %719, %720 : vector<16x256xf32>
    %722 = arith.addf %708, %721 : vector<16x256xf32>
    %c15_i32_202 = arith.constant 15 : i32
    %723 = tpu.dynamic_rotate %719 by %c15_i32_202 dim 0 : vector<16x256xf32>, i32 -> vector<16x256xf32>
    %724 = vector.shape_cast %5 : vector<16x1xi1> to vector<16x1xi1>
    %725 = vector.broadcast %724 : vector<16x1xi1> to vector<16x256xi1>
    %726 = arith.select %725, %719, %723 : vector<16x256xi1>, vector<16x256xf32>
    %c255_i32_203 = arith.constant 255 : i32
    %727 = tpu.dynamic_rotate %726 by %c255_i32_203 dim 1 : vector<16x256xf32>, i32 -> vector<16x256xf32>
    %728 = vector.shape_cast %45 : vector<1x256xi1> to vector<1x256xi1>
    %729 = vector.broadcast %728 : vector<1x256xi1> to vector<16x256xi1>
    %730 = arith.select %729, %726, %727 : vector<16x256xi1>, vector<16x256xf32>
    %731 = vector.broadcast %47 : vector<1x256xf32> to vector<16x256xf32>
    %732 = arith.mulf %730, %731 : vector<16x256xf32>
    %733 = arith.addf %722, %732 : vector<16x256xf32>
    %c1_i32_204 = arith.constant 1 : i32
    %734 = tpu.dynamic_rotate %719 by %c1_i32_204 dim 0 : vector<16x256xf32>, i32 -> vector<16x256xf32>
    %735 = vector.shape_cast %3 : vector<16x1xi1> to vector<16x1xi1>
    %736 = vector.broadcast %735 : vector<16x1xi1> to vector<16x256xi1>
    %737 = arith.select %736, %719, %734 : vector<16x256xi1>, vector<16x256xf32>
    %c1_i32_205 = arith.constant 1 : i32
    %738 = tpu.dynamic_rotate %737 by %c1_i32_205 dim 1 : vector<16x256xf32>, i32 -> vector<16x256xf32>
    %739 = vector.shape_cast %27 : vector<1x256xi1> to vector<1x256xi1>
    %740 = vector.broadcast %739 : vector<1x256xi1> to vector<16x256xi1>
    %741 = arith.select %740, %737, %738 : vector<16x256xi1>, vector<16x256xf32>
    %742 = vector.broadcast %54 : vector<1x256xf32> to vector<16x256xf32>
    %743 = arith.mulf %741, %742 : vector<16x256xf32>
    %744 = arith.addf %733, %743 : vector<16x256xf32>
    %c-1_i32_206 = arith.constant -1 : i32
    %745 = arith.subi %680, %c-1_i32_206 : i32
    %c0_i32_207 = arith.constant 0 : i32
    %c15_i32_208 = arith.constant 15 : i32
    %746 = arith.maxsi %c0_i32_207, %745 : i32
    %747 = arith.minsi %c15_i32_208, %746 : i32
    %c16_i32_209 = arith.constant 16 : i32
    %748 = arith.muli %747, %c16_i32_209 : i32
    %749 = tpu.assume_multiple %748, 16 : i32
    %750 = arith.index_cast %749 : i32 to index
    %c0_210 = arith.constant 0 : index
    %751 = vector.load %arg1[%750, %c0_210] : memref<256x256xf32, #tpu.memory_space<vmem>>, vector<16x256xf32>
    %c240_i32_211 = arith.constant 240 : i32
    %752 = tpu.dynamic_rotate %751 by %c240_i32_211 dim 1 : vector<16x256xf32>, i32 -> vector<16x256xf32>
    %753 = vector.shape_cast %9 : vector<1x256xi1> to vector<1x256xi1>
    %754 = vector.broadcast %753 : vector<1x256xi1> to vector<16x256xi1>
    %755 = arith.select %754, %751, %752 : vector<16x256xi1>, vector<16x256xf32>
    %c15_i32_212 = arith.constant 15 : i32
    %756 = tpu.dynamic_rotate %755 by %c15_i32_212 dim 0 : vector<16x256xf32>, i32 -> vector<16x256xf32>
    %757 = vector.shape_cast %5 : vector<16x1xi1> to vector<16x1xi1>
    %758 = vector.broadcast %757 : vector<16x1xi1> to vector<16x256xi1>
    %759 = arith.select %758, %755, %756 : vector<16x256xi1>, vector<16x256xf32>
    %c255_i32_213 = arith.constant 255 : i32
    %760 = tpu.dynamic_rotate %759 by %c255_i32_213 dim 1 : vector<16x256xf32>, i32 -> vector<16x256xf32>
    %761 = vector.shape_cast %45 : vector<1x256xi1> to vector<1x256xi1>
    %762 = vector.broadcast %761 : vector<1x256xi1> to vector<16x256xi1>
    %763 = arith.select %762, %759, %760 : vector<16x256xi1>, vector<16x256xf32>
    %764 = vector.broadcast %49 : vector<1x256xf32> to vector<16x256xf32>
    %765 = arith.mulf %763, %764 : vector<16x256xf32>
    %766 = arith.addf %744, %765 : vector<16x256xf32>
    %767 = vector.broadcast %51 : vector<1x256xf32> to vector<16x256xf32>
    %768 = arith.mulf %755, %767 : vector<16x256xf32>
    %769 = arith.addf %766, %768 : vector<16x256xf32>
    %c1_i32_214 = arith.constant 1 : i32
    %770 = tpu.dynamic_rotate %755 by %c1_i32_214 dim 0 : vector<16x256xf32>, i32 -> vector<16x256xf32>
    %771 = vector.shape_cast %3 : vector<16x1xi1> to vector<16x1xi1>
    %772 = vector.broadcast %771 : vector<16x1xi1> to vector<16x256xi1>
    %773 = arith.select %772, %755, %770 : vector<16x256xi1>, vector<16x256xf32>
    %c1_i32_215 = arith.constant 1 : i32
    %774 = tpu.dynamic_rotate %773 by %c1_i32_215 dim 1 : vector<16x256xf32>, i32 -> vector<16x256xf32>
    %775 = vector.shape_cast %27 : vector<1x256xi1> to vector<1x256xi1>
    %776 = vector.broadcast %775 : vector<1x256xi1> to vector<16x256xi1>
    %777 = arith.select %776, %773, %774 : vector<16x256xi1>, vector<16x256xf32>
    %778 = vector.broadcast %52 : vector<1x256xf32> to vector<16x256xf32>
    %779 = arith.mulf %777, %778 : vector<16x256xf32>
    %780 = arith.addf %769, %779 : vector<16x256xf32>
    %c16_i32_216 = arith.constant 16 : i32
    %781 = arith.muli %c6_i32, %c16_i32_216 : i32
    %782 = arith.index_cast %781 : i32 to index
    %c0_217 = arith.constant 0 : index
    %783 = vector.load %arg3[%782, %c0_217] : memref<128x256xf32, #tpu.memory_space<vmem>>, vector<16x256xf32>
    tpu.vector_store %arg3[%782, %c0_217], %780 {strides = array<i32>} : memref<128x256xf32, #tpu.memory_space<vmem>>, vector<16x256xf32>,
    %c7_i32 = arith.constant 7 : i32
    %784 = arith.addi %55, %c7_i32 : i32
    %c16_i32_218 = arith.constant 16 : i32
    %785 = arith.muli %784, %c16_i32_218 : i32
    %786 = tpu.assume_multiple %785, 16 : i32
    %787 = arith.index_cast %786 : i32 to index
    %c0_219 = arith.constant 0 : index
    %788 = vector.load %arg1[%787, %c0_219] : memref<256x256xf32, #tpu.memory_space<vmem>>, vector<16x256xf32>
    %c15_i32_220 = arith.constant 15 : i32
    %789 = tpu.dynamic_rotate %788 by %c15_i32_220 dim 0 : vector<16x256xf32>, i32 -> vector<16x256xf32>
    %790 = vector.shape_cast %5 : vector<16x1xi1> to vector<16x1xi1>
    %791 = vector.broadcast %790 : vector<16x1xi1> to vector<16x256xi1>
    %792 = arith.select %791, %788, %789 : vector<16x256xi1>, vector<16x256xf32>
    %c255_i32_221 = arith.constant 255 : i32
    %793 = tpu.dynamic_rotate %792 by %c255_i32_221 dim 1 : vector<16x256xf32>, i32 -> vector<16x256xf32>
    %794 = vector.shape_cast %45 : vector<1x256xi1> to vector<1x256xi1>
    %795 = vector.broadcast %794 : vector<1x256xi1> to vector<16x256xi1>
    %796 = arith.select %795, %792, %793 : vector<16x256xi1>, vector<16x256xf32>
    %797 = vector.broadcast %48 : vector<1x256xf32> to vector<16x256xf32>
    %798 = arith.mulf %796, %797 : vector<16x256xf32>
    %799 = vector.broadcast %50 : vector<1x256xf32> to vector<16x256xf32>
    %800 = arith.mulf %788, %799 : vector<16x256xf32>
    %801 = arith.addf %798, %800 : vector<16x256xf32>
    %c1_i32_222 = arith.constant 1 : i32
    %802 = tpu.dynamic_rotate %788 by %c1_i32_222 dim 0 : vector<16x256xf32>, i32 -> vector<16x256xf32>
    %803 = vector.shape_cast %3 : vector<16x1xi1> to vector<16x1xi1>
    %804 = vector.broadcast %803 : vector<16x1xi1> to vector<16x256xi1>
    %805 = arith.select %804, %788, %802 : vector<16x256xi1>, vector<16x256xf32>
    %c1_i32_223 = arith.constant 1 : i32
    %806 = tpu.dynamic_rotate %805 by %c1_i32_223 dim 1 : vector<16x256xf32>, i32 -> vector<16x256xf32>
    %807 = vector.shape_cast %27 : vector<1x256xi1> to vector<1x256xi1>
    %808 = vector.broadcast %807 : vector<1x256xi1> to vector<16x256xi1>
    %809 = arith.select %808, %805, %806 : vector<16x256xi1>, vector<16x256xf32>
    %810 = vector.broadcast %53 : vector<1x256xf32> to vector<16x256xf32>
    %811 = arith.mulf %809, %810 : vector<16x256xf32>
    %812 = arith.addf %801, %811 : vector<16x256xf32>
    %c1_i32_224 = arith.constant 1 : i32
    %813 = arith.subi %784, %c1_i32_224 : i32
    %c0_i32_225 = arith.constant 0 : i32
    %c15_i32_226 = arith.constant 15 : i32
    %814 = arith.maxsi %c0_i32_225, %813 : i32
    %815 = arith.minsi %c15_i32_226, %814 : i32
    %c16_i32_227 = arith.constant 16 : i32
    %816 = arith.muli %815, %c16_i32_227 : i32
    %817 = tpu.assume_multiple %816, 16 : i32
    %818 = arith.index_cast %817 : i32 to index
    %c0_228 = arith.constant 0 : index
    %819 = vector.load %arg1[%818, %c0_228] : memref<256x256xf32, #tpu.memory_space<vmem>>, vector<16x256xf32>
    %c16_i32_229 = arith.constant 16 : i32
    %820 = tpu.dynamic_rotate %819 by %c16_i32_229 dim 1 : vector<16x256xf32>, i32 -> vector<16x256xf32>
    %821 = vector.shape_cast %7 : vector<1x256xi1> to vector<1x256xi1>
    %822 = vector.broadcast %821 : vector<1x256xi1> to vector<16x256xi1>
    %823 = arith.select %822, %819, %820 : vector<16x256xi1>, vector<16x256xf32>
    %824 = vector.broadcast %46 : vector<1x256xf32> to vector<16x256xf32>
    %825 = arith.mulf %823, %824 : vector<16x256xf32>
    %826 = arith.addf %812, %825 : vector<16x256xf32>
    %c15_i32_230 = arith.constant 15 : i32
    %827 = tpu.dynamic_rotate %823 by %c15_i32_230 dim 0 : vector<16x256xf32>, i32 -> vector<16x256xf32>
    %828 = vector.shape_cast %5 : vector<16x1xi1> to vector<16x1xi1>
    %829 = vector.broadcast %828 : vector<16x1xi1> to vector<16x256xi1>
    %830 = arith.select %829, %823, %827 : vector<16x256xi1>, vector<16x256xf32>
    %c255_i32_231 = arith.constant 255 : i32
    %831 = tpu.dynamic_rotate %830 by %c255_i32_231 dim 1 : vector<16x256xf32>, i32 -> vector<16x256xf32>
    %832 = vector.shape_cast %45 : vector<1x256xi1> to vector<1x256xi1>
    %833 = vector.broadcast %832 : vector<1x256xi1> to vector<16x256xi1>
    %834 = arith.select %833, %830, %831 : vector<16x256xi1>, vector<16x256xf32>
    %835 = vector.broadcast %47 : vector<1x256xf32> to vector<16x256xf32>
    %836 = arith.mulf %834, %835 : vector<16x256xf32>
    %837 = arith.addf %826, %836 : vector<16x256xf32>
    %c1_i32_232 = arith.constant 1 : i32
    %838 = tpu.dynamic_rotate %823 by %c1_i32_232 dim 0 : vector<16x256xf32>, i32 -> vector<16x256xf32>
    %839 = vector.shape_cast %3 : vector<16x1xi1> to vector<16x1xi1>
    %840 = vector.broadcast %839 : vector<16x1xi1> to vector<16x256xi1>
    %841 = arith.select %840, %823, %838 : vector<16x256xi1>, vector<16x256xf32>
    %c1_i32_233 = arith.constant 1 : i32
    %842 = tpu.dynamic_rotate %841 by %c1_i32_233 dim 1 : vector<16x256xf32>, i32 -> vector<16x256xf32>
    %843 = vector.shape_cast %27 : vector<1x256xi1> to vector<1x256xi1>
    %844 = vector.broadcast %843 : vector<1x256xi1> to vector<16x256xi1>
    %845 = arith.select %844, %841, %842 : vector<16x256xi1>, vector<16x256xf32>
    %846 = vector.broadcast %54 : vector<1x256xf32> to vector<16x256xf32>
    %847 = arith.mulf %845, %846 : vector<16x256xf32>
    %848 = arith.addf %837, %847 : vector<16x256xf32>
    %c-1_i32_234 = arith.constant -1 : i32
    %849 = arith.subi %784, %c-1_i32_234 : i32
    %c0_i32_235 = arith.constant 0 : i32
    %c15_i32_236 = arith.constant 15 : i32
    %850 = arith.maxsi %c0_i32_235, %849 : i32
    %851 = arith.minsi %c15_i32_236, %850 : i32
    %c16_i32_237 = arith.constant 16 : i32
    %852 = arith.muli %851, %c16_i32_237 : i32
    %853 = tpu.assume_multiple %852, 16 : i32
    %854 = arith.index_cast %853 : i32 to index
    %c0_238 = arith.constant 0 : index
    %855 = vector.load %arg1[%854, %c0_238] : memref<256x256xf32, #tpu.memory_space<vmem>>, vector<16x256xf32>
    %c240_i32_239 = arith.constant 240 : i32
    %856 = tpu.dynamic_rotate %855 by %c240_i32_239 dim 1 : vector<16x256xf32>, i32 -> vector<16x256xf32>
    %857 = vector.shape_cast %9 : vector<1x256xi1> to vector<1x256xi1>
    %858 = vector.broadcast %857 : vector<1x256xi1> to vector<16x256xi1>
    %859 = arith.select %858, %855, %856 : vector<16x256xi1>, vector<16x256xf32>
    %c15_i32_240 = arith.constant 15 : i32
    %860 = tpu.dynamic_rotate %859 by %c15_i32_240 dim 0 : vector<16x256xf32>, i32 -> vector<16x256xf32>
    %861 = vector.shape_cast %5 : vector<16x1xi1> to vector<16x1xi1>
    %862 = vector.broadcast %861 : vector<16x1xi1> to vector<16x256xi1>
    %863 = arith.select %862, %859, %860 : vector<16x256xi1>, vector<16x256xf32>
    %c255_i32_241 = arith.constant 255 : i32
    %864 = tpu.dynamic_rotate %863 by %c255_i32_241 dim 1 : vector<16x256xf32>, i32 -> vector<16x256xf32>
    %865 = vector.shape_cast %45 : vector<1x256xi1> to vector<1x256xi1>
    %866 = vector.broadcast %865 : vector<1x256xi1> to vector<16x256xi1>
    %867 = arith.select %866, %863, %864 : vector<16x256xi1>, vector<16x256xf32>
    %868 = vector.broadcast %49 : vector<1x256xf32> to vector<16x256xf32>
    %869 = arith.mulf %867, %868 : vector<16x256xf32>
    %870 = arith.addf %848, %869 : vector<16x256xf32>
    %871 = vector.broadcast %51 : vector<1x256xf32> to vector<16x256xf32>
    %872 = arith.mulf %859, %871 : vector<16x256xf32>
    %873 = arith.addf %870, %872 : vector<16x256xf32>
    %c1_i32_242 = arith.constant 1 : i32
    %874 = tpu.dynamic_rotate %859 by %c1_i32_242 dim 0 : vector<16x256xf32>, i32 -> vector<16x256xf32>
    %875 = vector.shape_cast %3 : vector<16x1xi1> to vector<16x1xi1>
    %876 = vector.broadcast %875 : vector<16x1xi1> to vector<16x256xi1>
    %877 = arith.select %876, %859, %874 : vector<16x256xi1>, vector<16x256xf32>
    %c1_i32_243 = arith.constant 1 : i32
    %878 = tpu.dynamic_rotate %877 by %c1_i32_243 dim 1 : vector<16x256xf32>, i32 -> vector<16x256xf32>
    %879 = vector.shape_cast %27 : vector<1x256xi1> to vector<1x256xi1>
    %880 = vector.broadcast %879 : vector<1x256xi1> to vector<16x256xi1>
    %881 = arith.select %880, %877, %878 : vector<16x256xi1>, vector<16x256xf32>
    %882 = vector.broadcast %52 : vector<1x256xf32> to vector<16x256xf32>
    %883 = arith.mulf %881, %882 : vector<16x256xf32>
    %884 = arith.addf %873, %883 : vector<16x256xf32>
    %c16_i32_244 = arith.constant 16 : i32
    %885 = arith.muli %c7_i32, %c16_i32_244 : i32
    %886 = arith.index_cast %885 : i32 to index
    %c0_245 = arith.constant 0 : index
    %887 = vector.load %arg3[%886, %c0_245] : memref<128x256xf32, #tpu.memory_space<vmem>>, vector<16x256xf32>
    tpu.vector_store %arg3[%886, %c0_245], %884 {strides = array<i32>} : memref<128x256xf32, #tpu.memory_space<vmem>>, vector<16x256xf32>,
    %c8_i32_246 = arith.constant 8 : i32
    return
  }
  func.func @transform_0(%arg0: i32) -> (i32, i32) {
    %c0_i32 = arith.constant 0 : i32
    %c0_i32_0 = arith.constant 0 : i32
    %c0_i32_1 = arith.constant 0 : i32
    return %c0_i32, %c0_i32_0 : i32, i32
  }
  func.func @transform_1(%arg0: i32) -> (i32, i32) {
    %c0_i32 = arith.constant 0 : i32
    %c0_i32_0 = arith.constant 0 : i32
    %c0_i32_1 = arith.constant 0 : i32
    return %c0_i32, %c0_i32_0 : i32, i32
  }
  func.func @transform_2(%arg0: i32) -> (i32, i32) {
    %c0_i32 = arith.constant 0 : i32
    %c0_i32_0 = arith.constant 0 : i32
    return %arg0, %c0_i32 : i32, i32
  }
}

</mosaic_0001>

<bundles_post_ra>
// kernel: tpu_custom_call.1
= control target key start
LH: loop header
LB: loop body
LE: loop exit
PB: predicated region body
PF: predicated region fallthrough
CT: control target
= control target key end

     0   :  { %7 = vsyncpa [#allocation3], 0  ;;  %s7276_s0 = inlined_call_operand.hbm [shape: f32[256,256], index: 0, kind: input, shape index: {}]   ;;  %s7277_s1 = inlined_call_operand.hbm [shape: f32[9,256], index: 1, kind: input, shape index: {}]   ;;  %s7278_s2 = inlined_call_operand.hbm [shape: f32[256,256], index: 2, kind: output, shape index: {}]  }
   0x1   :  { %8 = vsyncpa [#allocation6], 0 }
   0x2   :  { %9 = vsyncpa [#allocation4], 0 }
   0x3   :  { %11 = vsyncpa [#allocation4 + $0x1], 0  ;;  %s3255_s9 = smov 0   ;;  %s3257_s10 = smov 0  }
   0x4   :  { %s3259_s11 = smov 0   ;;  %s3261_s12 = smov 0  }
   0x5 LB: > { %s3276_s13 = sadd.s32 4294967295, %s3229_s12   ;;  %s2845_s14 = sadd.s32 4294967294, %s3229_s12   ;;  %s3229_s12 = sphi %s3261_s12, %s7718_s12   ;;  %s3225_s11 = sphi %s3259_s11, %s7717_s11   ;;  %s3221_s10 = sphi %s3257_s10, %s7716_s10   ;;  %s3217_s9 = sphi %s3255_s9, %s7715_s9  }
   0x6   : > { %s3280_s15 = sadd.s32 1, %s3229_s12   ;;  %s66_s16 = sadd.s32 1, %s3225_s11 }
   0x7   : > { %s63_s17 = ssub.s32 %s3229_s12, %s3280_s15  ;;  %p76_p0 = scmp.ne.s32.totalorder %s3225_s11, %s3221_s10 }
   0x8   : > { %p64_p1 = scmp.eq.s32.totalorder %s63_s17, 0  ;;  %p77_p2 = scmp.eq.s32.totalorder %s3276_s13, 1 }
   0x9   : > { %p82_p3 = scmp.ne.s32.totalorder %s3221_s10, %s3217_s9  ;;  %p83_p4 = scmp.eq.s32.totalorder %s2845_s14, 1 }
   0xa   : > { %s3291_s18 = scalar_select %p64_p1, %s3225_s11, %s66_s16  }
   0xb   : > { %p3293_p5 = por %p77_p2, %p76_p0  ;;  %p3297_p6 = por %p83_p4, %p82_p3 }
   0xc   : > { %p2846_p7 = scmp.ge.s32.totalorder %s3229_s12, 1  ;;  %p90_p8 = scmp.lt.s32.totalorder %s3229_s12, 3 }
   0xd   : > { %p3046_p9 = scmp.eq.s32.totalorder %s3276_s13, 0  ;;  %s101_s24 = sshll.u32 %s7276_s0, 4  ;;  %s102_s24 = int_to_ptr.hbm [resolvable:$true] %s101_s24 }
   0xe   : > { %p3304_p10 = pnand %p2846_p7, %p90_p8  ;;  %s3231_s25 = smov [#allocation2]  }
   0xf   : > { %s103_s26 = sshll.u32 %s3231_s25, 4  ;;  %s115_s29 = sshll.u32 %s7277_s1, 4  ;;  %s104_s26 = int_to_ptr.vmem [resolvable:$true] %s103_s26  ;;  %s116_s29 = int_to_ptr.hbm [resolvable:$true] %s115_s29 }
  0x10   : > { %p3035_p11 = pneg %p3304_p10  ;;  %s3232_s30 = smov 256  }
  0x11   : > { %s3233_s3 = smov 16   ;;  %s3234_s4 = smov [#allocation5]  }
  0x12   : > { %p3036_p12 = pnand %p3046_p9, %p3035_p11  ;;  %s117_s5 = sshll.u32 %s3234_s4, 4  ;;  %s118_s5 = int_to_ptr.vmem [resolvable:$true] %s117_s5 }
  0x13   : > { %133 = sbr.rel (%p3304_p10) target bundleno = 2283 (0x8eb), region = 28 }
  0x14   : > { %3038 = dma.hbm_to_vmem [thread:$0]  (!%p3036_p12), %s102_s24, 8192, %s104_s26, [#allocation3], %s3232_s30, %s3232_s30, %s3233_s3  }
  0x15   : > { %3041 = dma.hbm_to_vmem [thread:$0]  (!%p3036_p12), %s116_s29, 512, %s118_s5, [#allocation6], %s3232_s30, %s3232_s30, %s3233_s3  }
  0x18   : > { %3204 = dma.done.wait (%p3046_p9), [#allocation3], 8192  }
  0x19   : > { %3206 = vsyncadd (%p3046_p9), [#allocation3], 4294959104 }
  0x1a   : > { %3208 = dma.done.wait (%p3046_p9), [#allocation6], 512  }
  0x1b   : > { %3210 = vsyncadd (%p3046_p9), [#allocation6], 4294966784  ;;  %v157_v0 = vlaneseq  ;;  %s3329_s6 = sshll.u32 %s3276_s13, 7  ;;  %s3333_s14 = sshll.u32 %s3276_s13, 3 }
  0x1c   : > { %s218_s7 = sshra.s32 %s3329_s6, 3  ;;  %s338_s16 = sadd.s32 4294967295, %s3333_s14 }
  0x1d   : > { %s2964_s8 = sshll.u32 %s218_s7, 4  ;;  %v3336_v1 = vshrl.u32 %v157_v0, 7  ;;  %p339_p13 = scmp.gt.s32.totalorder %s338_s16, 0 }
  0x1e   : > { %p2857_p0 = scmp.lt.s32.totalorder %s338_s16, 15  ;;  %s222_s21 = scalar_lea.vmem [#allocation2], %s2964_s8 }
  0x1f   : > { %7446 = vst [vmem:[#allocation11_spill] sm:$0xff] %v3336_v1  ;;  %s340_s17 = scalar_select %p339_p13, %s338_s16, 0  ;;  %v3339_v2 = vld [vmem:[%s222_s21 + $0x8] sm:$0xff]  ;;  %v3341_v3 = vld [vmem:[%s222_s21 + $0x18] sm:$0xff]  ;;  %vm231_vm0 = vcmp.lt.s32.totalorder %v3336_v1, 7  ;;  %v3344_v4 = vld [vmem:[%s222_s21] sm:$0xff] }
  0x20   : > { %vm291_vm1 = vcmp.lt.s32.totalorder %v3336_v1, 1  ;;  %v228_v5 = vrot.slane %v3339_v2, 1  ;;  %v230_v6 = vrot.slane %v3341_v3, 1  ;;  %v3349_v7 = vld [vmem:[%s222_s21 + $0x10] sm:$0xff]  ;;  %v227_v8 = vrot.slane %v3344_v4, 1  ;;  %s3235_s22 = smov 127  }
  0x21   : > { %v287_v9 = vrot.slane %v3344_v4, 7  ;;  %v229_v10 = vrot.slane %v3349_v7, 1  ;;  %v3355_v11 = vadd.s32 8, %v3336_v1  ;;  %v289_v12 = vrot.slane %v3349_v7, 7  ;;  %s7720_s17 = smov (!%p2857_p0, %s340_s17), 15  ;;  %s3236_s23 = smov 1  }
  0x22   : > { %v3361_v13 = vsel %vm231_vm0, %v228_v5, %v230_v6  ;;  %v235_v16 = vsel %vm231_vm0, %v230_v6, %v228_v5  ;;  %s2862_s24 = sshll.u32 %s7720_s17, 4  ;;  %s468_s25 = sadd.s32 1, %s3333_s14  ;;  %vm163_vm3 = vcmp.eq.s32.totalorder %v3336_v1, 0  ;;  %v288_v22 = vrot.slane %v3339_v2, 7 }
  0x23   : > { %7447 = vst [vmem:[#allocation12_spill] sm:$0xff] %v3355_v11  ;;  %248 = vrot.lane.b32.xlu1 %v3361_v13, %s3235_s22  ;;  %v3367_v14 = vsel %vm231_vm0, %v227_v8, %v229_v10  ;;  %v3371_v15 = vsel %vm291_vm1, %v287_v9, %v289_v12  ;;  %vm166_vm2 = vcmp.eq.s32.totalorder %v3355_v11, 15  ;;  %v234_v17 = vsel %vm231_vm0, %v229_v10, %v227_v8  ;;  %s344_s26 = sshra.s32 %s2862_s24, 3  ;;  %p469_p1 = scmp.gt.s32.totalorder %s468_s25, 0 }
  0x24   : > { %244 = vrot.lane.b32.xlu0 %v3367_v14, %s3235_s22  ;;  %306 = vrot.lane.b32.xlu2 %v3371_v15, %s3236_s23  ;;  %v294_v18 = vsel %vm291_vm1, %v289_v12, %v287_v9  ;;  %v3389_v19 = vsel %vm166_vm2, %v3341_v3, %v235_v16  ;;  %v3394_v20 = vsel %vm166_vm2, %v3349_v7, %v234_v17  ;;  %v290_v23 = vrot.slane %v3341_v3, 7  ;;  %s2967_s27 = sshll.u32 %s344_s26, 4  ;;  %p2865_p2 = scmp.lt.s32.totalorder %s468_s25, 15 }
  0x25   : > { %v3399_v21 = vsel %vm163_vm3, %v3344_v4, %v294_v18  ;;  %s7722_s25 = smov (!%p469_p1, %s468_s25), 0  ;;  %s348_s28 = scalar_lea.vmem [#allocation2], %s2967_s27 }
  0x26   : > { %v295_v24 = vsel %vm291_vm1, %v290_v23, %v288_v22  ;;  %v3413_v25 = vsel %vm291_vm1, %v288_v22, %v290_v23  ;;  %s7724_s25 = smov (!%p2865_p2, %s7722_s25), 15  ;;  %v3420_v27 = vld [vmem:[%s348_s28] sm:$0xff]  ;;  %s2972_s29 = sadd.s32 16, %s3329_s6  ;;  %v350_v28 = vld [vmem:[%s348_s28 + $0x8] sm:$0xff]  ;;  %v3429_v29 = vld [vmem:[%s348_s28 + $0x10] sm:$0xff]  ;;  %v3559_v23 = vand.u32 127, %v157_v0 }
  0x27   : > { %v3418_v26 = vsel %vm163_vm3, %v3339_v2, %v295_v24  ;;  %s3237_s30 = smov 16   ;;  %s2870_s3 = sshll.u32 %s7724_s25, 4  ;;  %v352_v30 = vld [vmem:[%s348_s28 + $0x18] sm:$0xff] }
  0x28   : > { %s604_s4 = sshra.s32 %s2972_s29, 3  ;;  %s474_s5 = sshra.s32 %s2870_s3, 3  ;;  %vm167_vm4 = vcmp.lt.s32.totalorder %v3559_v23, 16  ;;  %vm491_vm5 = vcmp.lt.s32.totalorder %v3559_v23, 112  ;;  %vm252_vm6 = vcmp.lt.s32.totalorder %v3559_v23, 127  ;;  %vm312_vm7 = vcmp.lt.s32.totalorder %v3559_v23, 1 }
  0x29   : > { %s2973_s7 = sshll.u32 %s604_s4, 4  ;;  %s2970_s8 = sshll.u32 %s474_s5, 4 }
  0x2a   : > { %s608_s16 = scalar_lea.vmem [#allocation2], %s2973_s7  ;;  %s3439_s17 = scalar_lea.vmem [#allocation2], %s2970_s8 }
  0x2b   : > { %250 = vrot.lane.b32.xlu1 %v3389_v19, %s3235_s22  ;;  %v3435_v31 = vld [vmem:[%s608_s16] sm:$0xff]  ;;  %v3437_v32 = vld [vmem:[%s608_s16 + $0x10] sm:$0xff]  ;;  %v3442_v33 = vld [vmem:[%s3439_s17 + $0x8] sm:$0xff]  ;;  %p689_p3 = scmp.gt.s32.totalorder %s3333_s14, 0  ;;  %s3238_s21 = smov 112  }
  0x2c   : > { %246 = vrot.lane.b32.xlu0 %v3394_v20, %s3235_s22  ;;  %304 = vrot.lane.b32.xlu2 %v3399_v21, %s3236_s23  ;;  %7448 = vst [vmem:[#allocation13_spill] sm:$0xff] %v3435_v31  ;;  %v3444_v34 = vld [vmem:[%s608_s16 + $0x8] sm:$0xff]  ;;  %v481_v35 = vld [vmem:[%s3439_s17 + $0x10] sm:$0xff]  ;;  %v613_v38 = vrot.slane %v3435_v31, 1  ;;  %v615_v39 = vrot.slane %v3437_v32, 1  ;;  %p2876_p4 = scmp.lt.s32.totalorder %s3333_s14, 15 }
  0x2d   : > { %7449 = vst [vmem:[#allocation14_spill] sm:$0xff] %v3444_v34  ;;  %v3448_v36 = vld [vmem:[%s608_s16 + $0x18] sm:$0xff]  ;;  %v479_v37 = vld [vmem:[%s3439_s17] sm:$0xff]  ;;  %v614_v40 = vrot.slane %v3444_v34, 1  ;;  %s690_s24 = scalar_select %p689_p3, %s3333_s14, 0  ;;  %v653_v46 = vrot.slane %v3435_v31, 7 }
  0x2e   : > { %7450 = vst [vmem:[#allocation15_spill] sm:$0xff] %v3448_v36  ;;  %v616_v41 = vrot.slane %v3448_v36, 1  ;;  %v619_v42 = vsel %vm231_vm0, %v615_v39, %v613_v38  ;;  %v3473_v45 = vld [vmem:[%s3439_s17 + $0x18] sm:$0xff]  ;;  %v655_v47 = vrot.slane %v3437_v32, 7  ;;  %v3496_v51 = vsel %vm231_vm0, %v613_v38, %v615_v39  ;;  %s799_s29 = sadd.s32 2, %s3333_s14  ;;  %s153_s8 = sand.u32 1, %s3221_s10  }
  0x2f   : > { %s7726_s24 = smov (!%p2876_p4, %s690_s24), 15  ;;  %v3470_v44 = vsel %vm166_vm2, %v3437_v32, %v619_v42  ;;  %7453 = vst [vmem:[#allocation18_spill] sm:$0xff] %v3496_v51  ;;  %v654_v52 = vrot.slane %v3444_v34, 7  ;;  %v656_v53 = vrot.slane %v3448_v36, 7  ;;  %p800_p7 = scmp.gt.s32.totalorder %s799_s29, 0 }
  0x30   : > { %v3465_v43 = vsel %vm231_vm0, %v614_v40, %v616_v41  ;;  %s2881_s25 = sshll.u32 %s7726_s24, 4  ;;  %v659_v48 = vsel %vm291_vm1, %v655_v47, %v653_v46  ;;  %v3487_v49 = vsel %vm291_vm1, %v653_v46, %v655_v47  ;;  %v620_v54 = vsel %vm231_vm0, %v616_v41, %v614_v40  ;;  %p2884_p8 = scmp.lt.s32.totalorder %s799_s29, 15 }
  0x31   : > { %7451 = vst [vmem:[#allocation16_spill] sm:$0xff] %v3465_v43  ;;  %s694_s26 = sshra.s32 %s2881_s25, 3  ;;  %v3492_v50 = vsel %vm163_vm3, %v3435_v31, %v659_v48  ;;  %v3512_v56 = vsel %vm291_vm1, %v654_v52, %v656_v53  ;;  %v3517_v57 = vsel %vm166_vm2, %v3448_v36, %v620_v54  ;;  %v660_v58 = vsel %vm291_vm1, %v656_v53, %v654_v52  ;;  %s7728_s29 = smov (!%p800_p7, %s799_s29), 0 }
  0x32   : > { %7452 = vst [vmem:[#allocation17_spill] sm:$0xff] %v3492_v50  ;;  %s2976_s27 = sshll.u32 %s694_s26, 4  ;;  %v3530_v61 = vsel %vm163_vm3, %v3444_v34, %v660_v58  ;;  %s7730_s29 = smov (!%p2884_p8, %s7728_s29), 15 }
  0x33   : > { %310 = vrot.lane.b32.xlu1 %v3413_v25, %s3236_s23  ;;  %s698_s28 = scalar_lea.vmem [#allocation2], %s2976_s27  ;;  %7454 = vst [vmem:[#allocation19_spill] sm:$0xff] %v3512_v56  ;;  %s2889_s3 = sshll.u32 %s7730_s29, 4 }
  0x34   : > { %308 = vrot.lane.b32.xlu0 %v3418_v26, %s3236_s23  ;;  %353 = vrot.lane.b32.xlu2 %v3420_v27, %s3237_s30  ;;  %v3508_v55 = vld [vmem:[%s698_s28] sm:$0xff]  ;;  %7455 = vst [vmem:[#allocation20_spill] sm:$0xff] %v3517_v57  ;;  %v702_v59 = vld [vmem:[%s698_s28 + $0x18] sm:$0xff]  ;;  %s805_s4 = sshra.s32 %s2889_s3, 3  ;;  %s2852_s16 = sshll.u32 %s153_s8, 8 }
  0x35   : > { %v700_v60 = vld [vmem:[%s698_s28 + $0x8] sm:$0xff]  ;;  %7456 = vst [vmem:[#allocation21_spill] sm:$0xff] %v3530_v61  ;;  %v3536_v62 = vld [vmem:[%s698_s28 + $0x10] sm:$0xff]  ;;  %s2979_s5 = sshll.u32 %s805_s4, 4  ;;  %s4209_s24 = scalar_lea.vmem [#allocation7], %s2852_s16 }
  0x36   : > { %s3910_s7 = scalar_lea.vmem [#allocation2], %s2979_s5  ;;  %s2981_s25 = sadd.s32 32, %s3329_s6 }
  0x37   : > { %s915_s26 = sshra.s32 %s2981_s25, 3  ;;  %s2987_s25 = sadd.s32 48, %s3329_s6 }
  0x38   : > { %s2982_s27 = sshll.u32 %s915_s26, 4  ;;  %s1216_s26 = sshra.s32 %s2987_s25, 3 }
  0x39   : > { %s919_s28 = scalar_lea.vmem [#allocation2], %s2982_s27  ;;  %s2988_s27 = sshll.u32 %s1216_s26, 4 }
  0x3b   : > { %357 = vrot.lane.b32.xlu1 %v350_v28, %s3237_s30 }
  0x3c   : > { %355 = vrot.lane.b32.xlu0 %v3429_v29, %s3237_s30  ;;  %359 = vrot.lane.b32.xlu2 %v352_v30, %s3237_s30 }
  0x43   : > { %487 = vrot.lane.b32.xlu1 %v3442_v33, %s3238_s21 }
  0x44   : > { %485 = vrot.lane.b32.xlu0 %v481_v35, %s3238_s21  ;;  %483 = vrot.lane.b32.xlu2 %v479_v37, %s3238_s21 }
  0x4b   : > { %629 = vrot.lane.b32.xlu1 %v3465_v43, %s3235_s22 }
  0x4c   : > { %627 = vrot.lane.b32.xlu0 %v3470_v44, %s3235_s22  ;;  %489 = vrot.lane.b32.xlu2 %v3473_v45, %s3238_s21 }
  0x53   : > { %667 = vrot.lane.b32.xlu1 %v3487_v49, %s3236_s23 }
  0x54   : > { %665 = vrot.lane.b32.xlu0 %v3492_v50, %s3236_s23  ;;  %625 = vrot.lane.b32.xlu2 %v3496_v51, %s3235_s22 }
  0x5b   : > { %703 = vrot.lane.b32.xlu1 %v3508_v55, %s3237_s30 }
  0x5c   : > { %671 = vrot.lane.b32.xlu0 %v3512_v56, %s3236_s23  ;;  %631 = vrot.lane.b32.xlu2 %v3517_v57, %s3235_s22  ;;  %v175_v57 = vand.u32 15, %v3559_v23 }
  0x5e   : > { %vm3693_vm8 = vcmp.eq.s32.totalorder %v175_v57, 15  ;;  %vm3717_vm9 = vcmp.eq.s32.totalorder %v175_v57, 0 }
  0x63   : > { %709 = vrot.lane.b32.xlu1 %v702_v59, %s3237_s30 }
  0x64   : > { %707 = vrot.lane.b32.xlu0 %v700_v60, %s3237_s30  ;;  %669 = vrot.lane.b32.xlu2 %v3530_v61, %s3236_s23 }
  0x6c   : > { %705 = vrot.lane.b32.xlu2 %v3536_v62, %s3237_s30 }
  0x7e   : > { %v3540_v63 = vpop.permute.xlu2 %306 }
  0x86   : > { %v3542_v5 = vpop.permute.xlu2 %304 }
  0x8e   : > { %v354_v6 = vpop.permute.xlu2 %353 }
  0x95   : > { %v3544_v8 = vpop.permute.xlu1 %248 }
  0x96   : > { %v3546_v9 = vpop.permute.xlu0 %244  ;;  %v360_v10 = vpop.permute.xlu2 %359 }
  0x9d   : > { %v3548_v12 = vpop.permute.xlu1 %250 }
  0x9e   : > { %v3550_v16 = vpop.permute.xlu0 %246  ;;  %v3552_v17 = vpop.permute.xlu2 %483 }
  0xa5   : > { %v3554_v18 = vpop.permute.xlu1 %310 }
  0xa6   : > { %v3556_v22 = vpop.permute.xlu0 %308  ;;  %v3562_v28 = vpop.permute.xlu2 %489 }
  0xad   : > { %v358_v24 = vpop.permute.xlu1 %357 }
  0xae   : > { %v3566_v30 = vsel %vm167_vm4, %v354_v6, %v358_v24  ;;  %v363_v35 = vsel %vm167_vm4, %v358_v24, %v354_v6  ;;  %v356_v37 = vpop.permute.xlu0 %355  ;;  %v3614_v58 = vpop.permute.xlu2 %625 }
  0xaf   : > { %7457 = vst [vmem:[#allocation22_spill] sm:$0xff] %v3566_v30  ;;  %v3573_v38 = vsel %vm167_vm4, %v3420_v27, %v363_v35  ;;  %v3577_v0 = vsel %vm167_vm4, %v356_v37, %v360_v10  ;;  %v364_v39 = vsel %vm167_vm4, %v360_v10, %v356_v37  ;;  %v387_v41 = vrot.slane %v3566_v30, 1 }
  0xb0   : > { %7458 = vst [vmem:[#allocation23_spill] sm:$0xff] %v3577_v0  ;;  %v3584_v40 = vsel %vm167_vm4, %v3429_v29, %v364_v39  ;;  %v389_v42 = vrot.slane %v3577_v0, 1  ;;  %v386_v46 = vrot.slane %v3573_v38, 1 }
  0xb1   : > { %v388_v27 = vrot.slane %v3584_v40, 1  ;;  %7460 = vst [vmem:[#allocation25_spill] sm:$0xff] %v3614_v58 }
  0xb2   : > { %v3592_v47 = vsel %vm231_vm0, %v387_v41, %v389_v42 }
  0xb3   : > { %7459 = vst [vmem:[#allocation24_spill] sm:$0xff] %v3592_v47  ;;  %402 = vrot.lane.b32.xlu2 %v3592_v47, %s3235_s22  ;;  %v392_v29 = vsel %vm231_vm0, %v388_v27, %v386_v46 }
  0xb4   : > { %v3612_v54 = vsel %vm166_vm2, %v3584_v40, %v392_v29 }
  0xb5   : > { %v3597_v48 = vpop.permute.xlu1 %487 }
  0xb6   : > { %v3605_v52 = vsel %vm491_vm5, %v3552_v17, %v3597_v48  ;;  %v3607_v53 = vpop.permute.xlu0 %485 }
  0xb7   : > { %v3620_v59 = vsel %vm491_vm5, %v3607_v53, %v3562_v28  ;;  %v558_v60 = vrot.slane %v3605_v52, 7  ;;  %v7282_v10 = vrot.slane %v3605_v52, 1 }
  0xb8   : > { %v560_v6 = vrot.slane %v3620_v59, 7  ;;  %v7281_v24 = vrot.slane %v3620_v59, 1 }
  0xba   : > { %v3628_v35 = vsel %vm291_vm1, %v558_v60, %v560_v6  ;;  %v3636_v37 = vsel %vm231_vm0, %v7282_v10, %v7281_v24  ;;  %v564_v39 = vsel %vm291_vm1, %v560_v6, %v558_v60  ;;  %v3653_v24 = vpop.permute.xlu2 %631  ;;  %v3657_v10 = vsel %vm231_vm0, %v386_v46, %v388_v27 }
  0xbb   : > { %7461 = vst [vmem:[#allocation26_spill] sm:$0xff] %v3628_v35  ;;  %572 = vrot.lane.b32.xlu2 %v3628_v35, %s3236_s23  ;;  %516 = vrot.lane.b32.xlu0 %v3636_v37, %s3235_s22  ;;  %v3649_v36 = vsel %vm163_vm3, %v3605_v52, %v564_v39  ;;  %v393_v6 = vsel %vm231_vm0, %v389_v42, %v387_v41  ;;  %v428_v46 = vrot.slane %v3566_v30, 7  ;;  %v430_v27 = vrot.slane %v3577_v0, 7  ;;  %v3682_v41 = vld [vmem:[#allocation5 + $0x4] ss:$8 sm:$0x3] }
  0xbc   : > { %7462 = vst [vmem:[#allocation27_spill] sm:$0xff] %v3636_v37  ;;  %v3672_v50 = vsel %vm166_vm2, %v3577_v0, %v393_v6  ;;  %v3702_v51 = vperm.slane %v3682_v41, 0 }
  0xbd   : > { %v3644_v29 = vpop.permute.xlu1 %629  ;;  %7465 = vst [vmem:[#allocation30_spill] sm:$0xff] %v3653_v24  ;;  %v434_v6 = vsel %vm291_vm1, %v430_v27, %v428_v46 }
  0xbe   : > { %7463 = vst [vmem:[#allocation28_spill] sm:$0xff] %v3644_v29  ;;  %v3651_v56 = vpop.permute.xlu0 %627  ;;  %v3712_v58 = vsel %vm163_vm3, %v3566_v30, %v434_v6 }
  0xbf   : > { %7464 = vst [vmem:[#allocation29_spill] sm:$0xff] %v3651_v56  ;;  %v634_v42 = vsel %vm252_vm6, %v3651_v56, %v3653_v24  ;;  %v3704_v24 = vld [vmem:[#allocation5 + $0x7] ss:$8 sm:$0x3] }
  0xc0   : > { %7466 = vst [vmem:[#allocation31_spill] sm:$0xff] %v3657_v10  ;;  %v639_v56 = vsel %vm3693_vm8, %v3470_v44, %v634_v42  ;;  %v3725_v44 = vld [vmem:[#allocation5] ss:$8 sm:$0x3]  ;;  %v3731_v35 = vperm.slane %v3704_v24, 0 }
  0xc1   : > { %7470 = vst [vmem:[#allocation35_spill] sm:$0xff] %v3672_v50 }
  0xc2   : > { %v3667_v39 = vpop.permute.xlu2 %669  ;;  %7474 = vst [vmem:[#allocation37_spill] sm:$0xff] %v3702_v51 }
  0xc3   : > { %398 = vrot.lane.b32.xlu0 %v3657_v10, %s3235_s22  ;;  %7469 = vst [vmem:[#allocation34_spill] sm:$0xff] %v3667_v39 }
  0xc4   : > { %7475 = vst [vmem:[#allocation38_spill] sm:$0xff] %v3712_v58 }
  0xc5   : > { %v3661_v61 = vpop.permute.xlu1 %667  ;;  %7479 = vst [vmem:[#allocation40_spill] sm:$0xff] %v3725_v44 }
  0xc6   : > { %7467 = vst [vmem:[#allocation32_spill] sm:$0xff] %v3661_v61  ;;  %v3663_v60 = vpop.permute.xlu0 %665 }
  0xc7   : > { %7468 = vst [vmem:[#allocation33_spill] sm:$0xff] %v3663_v60  ;;  %v3690_v60 = vld [vmem:[#allocation5 + $0x2] ss:$8 sm:$0x3] }
  0xc8   : > { %v3715_v37 = vperm.slane %v3690_v60, 0  ;;  %7480 = vst [vmem:[#allocation41_spill] sm:$0xff] %v3731_v35 }
  0xca   : > { %v706_v29 = vpop.permute.xlu2 %705  ;;  %7476 = vst [vmem:[#allocation39_spill] sm:$0xff] %v3715_v37  ;;  %v643_v57 = vmul.f32 %v639_v56, %v3715_v37 }
  0xcb   : > { %404 = vrot.lane.b32.xlu0 %v3672_v50, %s3235_s22 }
  0xcd   : > { %v704_v34 = vpop.permute.xlu1 %703 }
  0xce   : > { %v3679_v31 = vpop.permute.xlu0 %671 }
  0xcf   : > { %7471 = vst [vmem:[#allocation36_spill] sm:$0xff] %v3679_v31  ;;  %v676_v43 = vsel %vm312_vm7, %v3679_v31, %v3661_v61  ;;  %v647_v31 = vmul.f32 %v3437_v32, %v3702_v51 }
  0xd0   : > { %v679_v42 = vsel %vm3717_vm9, %v3487_v49, %v676_v43  ;;  %v3748_v49 = vperm.slane %v3725_v44, 0 }
  0xd1   : > { %v683_v56 = vmul.f32 %v679_v42, %v3731_v35 }
  0xd2   : > { %7483 = vst [vmem:[#allocation44_spill] sm:$0xff] %v3748_v49 }
  0xd3   : > { %443 = vrot.lane.b32.xlu0 %v3712_v58, %s3236_s23 }
  0xd5   : > { %v710_v6 = vpop.permute.xlu1 %709 }
  0xd6   : > { %v3736_v50 = vsel %vm167_vm4, %v706_v29, %v710_v6  ;;  %v714_v58 = vsel %vm167_vm4, %v710_v6, %v706_v29  ;;  %v708_v32 = vpop.permute.xlu0 %707 }
  0xd7   : > { %7481 = vst [vmem:[#allocation42_spill] sm:$0xff] %v3736_v50  ;;  %v717_v47 = vsel %vm167_vm4, %v3536_v62, %v714_v58  ;;  %v3745_v43 = vsel %vm167_vm4, %v704_v34, %v708_v32  ;;  %v713_v10 = vsel %vm167_vm4, %v708_v32, %v704_v34  ;;  %v730_v62 = vrot.slane %v3736_v50, 1 }
  0xd8   : > { %7482 = vst [vmem:[#allocation43_spill] sm:$0xff] %v3745_v43  ;;  %v3756_v29 = vsel %vm167_vm4, %v3508_v55, %v713_v10  ;;  %v728_v6 = vrot.slane %v3745_v43, 1  ;;  %v651_v58 = vadd.f32 %v647_v31, %v643_v57  ;;  %v721_v0 = vmul.f32 %v717_v47, %v3748_v49 }
  0xd9   : > { %7484 = vst [vmem:[#allocation45_spill] sm:$0xff] %v3756_v29  ;;  %v727_v30 = vrot.slane %v3756_v29, 1  ;;  %v729_v44 = vrot.slane %v717_v47, 1  ;;  %v3781_v57 = vadd.s32 128, %v3559_v23  ;;  %v763_v32 = vrot.slane %v3756_v29, 7 }
  0xda   : > { %v3764_v42 = vsel %vm231_vm0, %v728_v6, %v730_v62  ;;  %v687_v34 = vadd.f32 %v683_v56, %v651_v58  ;;  %v765_v56 = vrot.slane %v717_v47, 7 }
  0xdb   : > { %7485 = vst [vmem:[#allocation46_spill] sm:$0xff] %v3764_v42  ;;  %743 = vrot.lane.b32.xlu1 %v3764_v42, %s3235_s22  ;;  %v3770_v55 = vsel %vm231_vm0, %v727_v30, %v729_v44  ;;  %v733_v31 = vsel %vm231_vm0, %v729_v44, %v727_v30  ;;  %vm170_vm10 = vcmp.ge.s32.totalorder %v3781_v57, 240  ;;  %v494_v30 = vsel %vm491_vm5, %v3597_v48, %v3552_v17 }
  0xdc   : > { %7486 = vst [vmem:[#allocation47_spill] sm:$0xff] %v3770_v55  ;;  %739 = vrot.lane.b32.xlu2 %v3770_v55, %s3235_s22  ;;  %v3778_v10 = vsel %vm166_vm2, %v717_v47, %v733_v31  ;;  %v3786_v58 = vadd.f32 %v721_v0, %v687_v34  ;;  %v495_v44 = vsel %vm491_vm5, %v3562_v28, %v3607_v53  ;;  %v764_v53 = vrot.slane %v3745_v43, 7 }
  0xdd   : > { %7487 = vst [vmem:[#allocation48_spill] sm:$0xff] %v3778_v10  ;;  %741 = vrot.lane.b32.xlu0 %v3778_v10, %s3235_s22  ;;  %v734_v31 = vsel %vm231_vm0, %v730_v62, %v728_v6  ;;  %v769_v0 = vsel %vm291_vm1, %v765_v56, %v763_v32  ;;  %v3804_v47 = vsel %vm170_vm10, %v3442_v33, %v494_v30  ;;  %v766_v33 = vrot.slane %v3736_v50, 7 }
  0xde   : > { %7488 = vst [vmem:[#allocation49_spill] sm:$0xff] %v3781_v57  ;;  %v3808_v17 = vsel %vm291_vm1, %v428_v46, %v430_v27  ;;  %v3813_v48 = vsel %vm170_vm10, %v3473_v45, %v495_v44  ;;  %v3820_v28 = vsel %vm166_vm2, %v3736_v50, %v734_v31  ;;  %v3829_v45 = vsel %vm163_vm3, %v3756_v29, %v769_v0 }
  0xdf   : > { %7489 = vst [vmem:[#allocation50_spill] sm:$0xff] %v3786_v58  ;;  %v505_v46 = vrot.slane %v3804_v47, 1  ;;  %v507_v27 = vrot.slane %v3813_v48, 1  ;;  %v770_v6 = vsel %vm291_vm1, %v766_v33, %v764_v53  ;;  %v3842_v34 = vsel %vm291_vm1, %v763_v32, %v765_v56 }
  0xe0   : > { %7490 = vst [vmem:[#allocation51_spill] sm:$0xff] %v3820_v28  ;;  %v3849_v30 = vsel %vm163_vm3, %v3745_v43, %v770_v6  ;;  %v559_v32 = vrot.slane %v3804_v47, 7  ;;  %v561_v56 = vrot.slane %v3813_v48, 7  ;;  %v7494_v31 = vrot.slane %v3605_v52, 1 }
  0xe1   : > { %7491 = vst [vmem:[#allocation52_spill] sm:$0xff] %v3829_v45  ;;  %v511_v62 = vsel %vm231_vm0, %v507_v27, %v505_v46  ;;  %v7495_v0 = vrot.slane %v3620_v59, 1  ;;  %v427_v58 = vrot.slane %v3573_v38, 7  ;;  %v182_v50 = vand.u32 15, %v3781_v57 }
  0xe2   : > { %7492 = vst [vmem:[#allocation53_spill] sm:$0xff] %v3842_v34  ;;  %v3856_v44 = vsel %vm166_vm2, %v3813_v48, %v511_v62  ;;  %v429_v62 = vrot.slane %v3584_v40, 7  ;;  %v254_v57 = vsel %vm252_vm6, %v3550_v16, %v3548_v12 }
  0xe3   : > { %445 = vrot.lane.b32.xlu1 %v3808_v17, %s3236_s23  ;;  %7493 = vst [vmem:[#allocation54_spill] sm:$0xff] %v3849_v30  ;;  %v510_v6 = vsel %vm231_vm0, %v7495_v0, %v7494_v31  ;;  %v3896_v0 = vsel %vm231_vm0, %v505_v46, %v507_v27  ;;  %v3913_v46 = vld [vmem:[%s3910_s7 + $0x8] sm:$0xff]  ;;  %v810_v27 = vld [vmem:[%s3910_s7] sm:$0xff]  ;;  %vm3962_vm11 = vcmp.eq.s32.totalorder %v182_v50, 15  ;;  %vm4002_vm12 = vcmp.eq.s32.totalorder %v182_v50, 0 }
  0xe4   : > { %745 = vrot.lane.b32.xlu2 %v3820_v28, %s3235_s22  ;;  %7497 = vst [vmem:[#allocation56_spill] sm:$0xff] %v3913_v46 }
  0xe5   : > { %775 = vrot.lane.b32.xlu0 %v3829_v45, %s3236_s23  ;;  %v3881_v45 = vsel %vm291_vm1, %v427_v58, %v429_v62 }
  0xeb   : > { %777 = vrot.lane.b32.xlu1 %v3842_v34, %s3236_s23  ;;  %v565_v34 = vsel %vm291_vm1, %v561_v56, %v559_v32 }
  0xec   : > { %779 = vrot.lane.b32.xlu2 %v3849_v30, %s3236_s23  ;;  %v3875_v30 = vsel %vm166_vm2, %v3620_v59, %v510_v6  ;;  %v3888_v31 = vsel %vm163_vm3, %v3804_v47, %v565_v34  ;;  %v3902_v6 = vsel %vm291_vm1, %v764_v53, %v766_v33  ;;  %v3908_v34 = vsel %vm291_vm1, %v559_v32, %v561_v56  ;;  %v812_v32 = vld [vmem:[%s3910_s7 + $0x10] sm:$0xff]  ;;  %v3935_v56 = vld [vmem:[%s3910_s7 + $0x18] sm:$0xff] }
  0xed   : > { %522 = vrot.lane.b32.xlu0 %v3856_v44, %s3235_s22  ;;  %7496 = vst [vmem:[#allocation55_spill] sm:$0xff] %v3902_v6  ;;  %v433_v33 = vsel %vm291_vm1, %v429_v62, %v427_v58 }
  0xee   : > { %v3926_v53 = vsel %vm163_vm3, %v3573_v38, %v433_v33  ;;  %7498 = vst [vmem:[#allocation57_spill] sm:$0xff] %v3935_v56 }
  0xf3   : > { %518 = vrot.lane.b32.xlu1 %v3875_v30, %s3235_s22 }
  0xf4   : > { %441 = vrot.lane.b32.xlu2 %v3881_v45, %s3236_s23 }
  0xf5   : > { %574 = vrot.lane.b32.xlu0 %v3888_v31, %s3236_s23 }
  0xfb   : > { %570 = vrot.lane.b32.xlu1 %v3649_v36, %s3236_s23 }
  0xfc   : > { %520 = vrot.lane.b32.xlu2 %v3896_v0, %s3235_s22 }
  0xfd   : > { %781 = vrot.lane.b32.xlu0 %v3902_v6, %s3236_s23 }
 0x103   : > { %576 = vrot.lane.b32.xlu1 %v3908_v34, %s3236_s23 }
 0x104   : > { %816 = vrot.lane.b32.xlu2 %v812_v32, %s3238_s21 }
 0x105   : > { %818 = vrot.lane.b32.xlu0 %v3913_v46, %s3238_s21 }
 0x10b   : > { %400 = vrot.lane.b32.xlu1 %v3612_v54, %s3235_s22 }
 0x10d   : > { %v403_v6 = vpop.permute.xlu2 %402 }
 0x113   : > { %439 = vrot.lane.b32.xlu1 %v3926_v53, %s3236_s23 }
 0x115   : > { %v3945_v10 = vpop.permute.xlu2 %572 }
 0x11b   : > { %814 = vrot.lane.b32.xlu1 %v810_v27, %s3238_s21 }
 0x123   : > { %820 = vrot.lane.b32.xlu1 %v3935_v56, %s3238_s21  ;;  %v3982_v56 = vperm.slane %v3690_v60, 1  ;;  %v279_v60 = vmul.f32 %v3702_v51, %v3344_v4  ;;  %v314_v4 = vsel %vm312_vm7, %v3540_v63, %v3554_v18 }
 0x125   : > { %7509 = vst [vmem:[#allocation66_spill] sm:$0xff] %v3982_v56 }
 0x12d   : > { %v3939_v58 = vpop.permute.xlu0 %516 }
 0x135   : > { %v399_v62 = vpop.permute.xlu0 %398 }
 0x136   : > { %v3949_v27 = vpop.permute.xlu2 %739 }
 0x137   : > { %7500 = vst [vmem:[#allocation59_spill] sm:$0xff] %v3949_v27  ;;  %v253_v27 = vsel %vm252_vm6, %v3546_v9, %v3544_v8 }
 0x13d   : > { %v3941_v33 = vpop.permute.xlu0 %404 }
 0x13e   : > { %v3957_v29 = vpop.permute.xlu2 %745 }
 0x13f   : > { %7503 = vst [vmem:[#allocation62_spill] sm:$0xff] %v3957_v29 }
 0x145   : > { %v3951_v32 = vpop.permute.xlu0 %443 }
 0x146   : > { %v3979_v1 = vpop.permute.xlu2 %779 }
 0x147   : > { %7508 = vst [vmem:[#allocation65_spill] sm:$0xff] %v3979_v1 }
 0x14d   : > { %v3943_v28 = vpop.permute.xlu1 %743 }
 0x14e   : > { %7499 = vst [vmem:[#allocation58_spill] sm:$0xff] %v3943_v28 }
 0x14f   : > { %v3955_v43 = vpop.permute.xlu0 %741 }
 0x150   : > { %7502 = vst [vmem:[#allocation61_spill] sm:$0xff] %v3955_v43  ;;  %v3975_v43 = vperm.slane %v3682_v41, 1 }
 0x152   : > { %7506 = vst [vmem:[#allocation63_spill] sm:$0xff] %v3975_v43 }
 0x155   : > { %v3947_v42 = vpop.permute.xlu1 %445 }
 0x157   : > { %v3977_v29 = vpop.permute.xlu0 %775 }
 0x158   : > { %7507 = vst [vmem:[#allocation64_spill] sm:$0xff] %v3977_v29  ;;  %v280_v29 = vmul.f32 %v3975_v43, %v3339_v2  ;;  %v313_v2 = vsel %vm312_vm7, %v3542_v5, %v3556_v22 }
 0x15d   : > { %v3953_v55 = vpop.permute.xlu1 %777 }
 0x15e   : > { %7501 = vst [vmem:[#allocation60_spill] sm:$0xff] %v3953_v55  ;;  %v255_v55 = vsel %vm252_vm6, %v3544_v8, %v3546_v9  ;;  %v256_v8 = vsel %vm252_vm6, %v3548_v12, %v3550_v16  ;;  %v261_v9 = vsel %vm3693_vm8, %v3367_v14, %v253_v27  ;;  %v263_v14 = vsel %vm3693_vm8, %v3394_v20, %v254_v57  ;;  %v209_v27 = vld [vmem:[#allocation5 + $0x5] ss:$8 sm:$0x3] }
 0x15f   : > { %v262_v41 = vsel %vm3962_vm11, %v3361_v13, %v255_v55  ;;  %v264_v13 = vsel %vm3962_vm11, %v3389_v19, %v256_v8  ;;  %v270_v50 = vmul.f32 %v3715_v37, %v261_v9  ;;  %v316_v20 = vsel %vm312_vm7, %v3554_v18, %v3540_v63  ;;  %v7513_v18 = vld [vmem:[#allocation40_spill] sm:$0xff] }
 0x160   : > { %v271_v12 = vmul.f32 %v3982_v56, %v262_v41  ;;  %v315_v19 = vsel %vm312_vm7, %v3556_v22, %v3542_v5  ;;  %v281_v16 = vmul.f32 %v3702_v51, %v3349_v7  ;;  %v282_v55 = vmul.f32 %v3975_v43, %v3341_v3 }
 0x161   : > { %v4037_v57 = vperm.slane %v3704_v24, 1  ;;  %v272_v8 = vmul.f32 %v3715_v37, %v263_v14  ;;  %v273_v9 = vmul.f32 %v3982_v56, %v264_v13  ;;  %v324_v63 = vsel %vm4002_vm12, %v3413_v25, %v314_v4  ;;  %v201_v13 = vld [vmem:[#allocation5 + $0x1] ss:$8 sm:$0x3]  ;;  %v523_v4 = vpop.permute.xlu0 %522 }
 0x162   : > { %v322_v5 = vsel %vm4002_vm12, %v3418_v26, %v313_v2  ;;  %v323_v3 = vsel %vm3717_vm9, %v3371_v15, %v316_v20  ;;  %v321_v7 = vsel %vm3717_vm9, %v3399_v21, %v315_v19  ;;  %v4054_v22 = vperm.slane %v7513_v18, 1  ;;  %v442_v20 = vpop.permute.xlu2 %441 }
 0x163   : > { %7512 = vst [vmem:[#allocation67_spill] sm:$0xff] %v4037_v57  ;;  %v283_v24 = vadd.f32 %v279_v60, %v270_v50  ;;  %v284_v41 = vadd.f32 %v280_v29, %v271_v12  ;;  %v4056_v14 = vperm.slane %v209_v27, 0  ;;  %v4058_v25 = vperm.slane %v209_v27, 1  ;;  %v7517_v27 = vld [vmem:[#allocation22_spill] sm:$0xff] }
 0x164   : > { %7514 = vst [vmem:[#allocation40_spill] sm:$0xff] %v4054_v22  ;;  %v333_v26 = vmul.f32 %v4037_v57, %v324_v63  ;;  %v331_v2 = vmul.f32 %v4037_v57, %v322_v5  ;;  %v406_v15 = vsel %vm252_vm6, %v399_v62, %v403_v6  ;;  %v408_v21 = vsel %vm252_vm6, %v403_v6, %v399_v62  ;;  %v7518_v63 = vld [vmem:[#allocation23_spill] sm:$0xff] }
 0x165   : > { %v3960_v11 = vpop.permute.xlu1 %518  ;;  %7515 = vst [vmem:[#allocation68_spill] sm:$0xff] %v4056_v14  ;;  %v285_v19 = vadd.f32 %v281_v16, %v272_v8  ;;  %v286_v60 = vadd.f32 %v282_v55, %v273_v9  ;;  %v332_v29 = vmul.f32 %v3731_v35, %v323_v3  ;;  %v330_v50 = vmul.f32 %v3731_v35, %v321_v7  ;;  %v7521_v16 = vld [vmem:[#allocation31_spill] sm:$0xff]  ;;  %v7522_v8 = vld [vmem:[#allocation24_spill] sm:$0xff] }
 0x166   : > { %7516 = vst [vmem:[#allocation69_spill] sm:$0xff] %v4058_v25  ;;  %v379_v18 = vmul.f32 %v4054_v22, %v7517_v27  ;;  %v381_v5 = vmul.f32 %v4054_v22, %v7518_v63  ;;  %v4072_v57 = vperm.slane %v201_v13, 0  ;;  %v4074_v43 = vperm.slane %v201_v13, 1  ;;  %v215_v13 = vld [vmem:[#allocation5 + $0x10] ss:$8 sm:$0x3] }
 0x167   : > { %v378_v6 = vmul.f32 %v3748_v49, %v3573_v38  ;;  %v380_v62 = vmul.f32 %v3748_v49, %v3584_v40  ;;  %v410_v55 = vsel %vm3693_vm8, %v7521_v16, %v406_v15  ;;  %v411_v9 = vsel %vm3962_vm11, %v7522_v8, %v408_v21  ;;  %v205_v40 = vld [vmem:[#allocation5 + $0x3] ss:$8 sm:$0x3] }
 0x168   : > { %7519 = vst [vmem:[#allocation22_spill] sm:$0xff] %v4072_v57  ;;  %v337_v3 = vadd.f32 %v333_v26, %v286_v60  ;;  %v335_v7 = vadd.f32 %v331_v2, %v284_v41  ;;  %v336_v27 = vadd.f32 %v332_v29, %v285_v19  ;;  %v334_v63 = vadd.f32 %v330_v50, %v283_v24 }
 0x169   : > { %7520 = vst [vmem:[#allocation23_spill] sm:$0xff] %v4074_v43  ;;  %v419_v38 = vmul.f32 %v4072_v57, %v410_v55  ;;  %v420_v56 = vmul.f32 %v4074_v43, %v411_v9  ;;  %v552_v49 = vmul.f32 %v4056_v14, %v3620_v59  ;;  %v553_v15 = vmul.f32 %v4058_v25, %v3813_v48  ;;  %v575_v29 = vpop.permute.xlu0 %574  ;;  %v211_v55 = vld [vmem:[#allocation5 + $0x6] ss:$8 sm:$0x3] }
 0x16a   : > { %v383_v22 = vadd.f32 %v379_v18, %v335_v7  ;;  %v385_v35 = vadd.f32 %v381_v5, %v337_v3  ;;  %v382_v16 = vadd.f32 %v378_v6, %v334_v63  ;;  %v384_v21 = vadd.f32 %v380_v62, %v336_v27 }
 0x16b   : > { %v448_v24 = vsel %vm312_vm7, %v442_v20, %v3947_v42  ;;  %v450_v41 = vsel %vm312_vm7, %v3947_v42, %v442_v20  ;;  %v4098_v26 = vperm.slane %v215_v13, 0  ;;  %v4100_v2 = vperm.slane %v215_v13, 1  ;;  %v521_v20 = vpop.permute.xlu2 %520 }
 0x16c   : > { %v4102_v19 = vperm.slane %v205_v40, 0  ;;  %v4104_v59 = vperm.slane %v205_v40, 1  ;;  %v525_v48 = vsel %vm252_vm6, %v3960_v11, %v523_v4  ;;  %v527_v60 = vsel %vm252_vm6, %v523_v4, %v3960_v11 }
 0x16d   : > { %v4006_v46 = vpop.permute.xlu1 %570  ;;  %7523 = vst [vmem:[#allocation31_spill] sm:$0xff] %v4098_v26  ;;  %v423_v18 = vadd.f32 %v419_v38, %v382_v16  ;;  %v424_v42 = vadd.f32 %v420_v56, %v383_v22  ;;  %v453_v62 = vsel %vm3717_vm9, %v3881_v45, %v450_v41  ;;  %v454_v11 = vsel %vm4002_vm12, %v3808_v17, %v448_v24  ;;  %v7527_v22 = vld [vmem:[#allocation35_spill] sm:$0xff]  ;;  %v7530_v16 = vld [vmem:[#allocation26_spill] sm:$0xff] }
 0x16e   : > { %7524 = vst [vmem:[#allocation24_spill] sm:$0xff] %v4100_v2  ;;  %v531_v45 = vsel %vm3962_vm11, %v3856_v44, %v527_v60  ;;  %v526_v9 = vsel %vm252_vm6, %v521_v20, %v3939_v58  ;;  %v462_v3 = vmul.f32 %v4098_v26, %v453_v62  ;;  %v463_v7 = vmul.f32 %v4100_v2, %v454_v11 }
 0x16f   : > { %7525 = vst [vmem:[#allocation70_spill] sm:$0xff] %v4102_v19  ;;  %v540_v38 = vmul.f32 %v4104_v59, %v531_v45  ;;  %v4156_v40 = vperm.slane %v211_v55, 1  ;;  %v578_v60 = vsel %vm312_vm7, %v4006_v46, %v575_v29 }
 0x170   : > { %7526 = vst [vmem:[#allocation71_spill] sm:$0xff] %v4104_v59 }
 0x171   : > { %7529 = vst [vmem:[#allocation72_spill] sm:$0xff] %v4156_v40  ;;  %v4185_v62 = vpop.permute.xlu0 %781 }
 0x175   : > { %v577_v12 = vpop.permute.xlu1 %576 }
 0x176   : > { %v581_v44 = vsel %vm312_vm7, %v577_v12, %v3945_v10 }
 0x17d   : > { %v401_v50 = vpop.permute.xlu1 %400 }
 0x17e   : > { %v407_v5 = vsel %vm252_vm6, %v401_v50, %v3941_v33  ;;  %v409_v6 = vsel %vm252_vm6, %v3941_v33, %v401_v50  ;;  %v530_v33 = vsel %vm3693_vm8, %v3875_v30, %v525_v48  ;;  %v579_v30 = vsel %vm312_vm7, %v3945_v10, %v577_v12 }
 0x17f   : > { %v412_v56 = vsel %vm3693_vm8, %v3612_v54, %v407_v5  ;;  %v413_v4 = vsel %vm3962_vm11, %v7527_v22, %v409_v6  ;;  %v524_v54 = vsel %vm252_vm6, %v3939_v58, %v521_v20  ;;  %v539_v13 = vmul.f32 %v4102_v19, %v530_v33 }
 0x180   : > { %v421_v17 = vmul.f32 %v4072_v57, %v412_v56  ;;  %v422_v8 = vmul.f32 %v4074_v43, %v413_v4  ;;  %v4154_v58 = vperm.slane %v211_v55, 0  ;;  %v584_v10 = vsel %vm3717_vm9, %v7530_v16, %v581_v44 }
 0x181   : > { %v585_v12 = vsel %vm4002_vm12, %v3908_v34, %v579_v30  ;;  %v529_v48 = vsel %vm3962_vm11, %v3896_v0, %v526_v9  ;;  %v580_v50 = vsel %vm312_vm7, %v575_v29, %v4006_v46  ;;  %v7532_v29 = vld [vmem:[#allocation38_spill] sm:$0xff]  ;;  %v551_v44 = vmul.f32 %v4058_v25, %v3804_v47 }
 0x182   : > { %v425_v27 = vadd.f32 %v421_v17, %v384_v21  ;;  %v426_v63 = vadd.f32 %v422_v8, %v385_v35  ;;  %7528 = vst [vmem:[#allocation35_spill] sm:$0xff] %v4154_v58  ;;  %v7531_v35 = vld [vmem:[#allocation27_spill] sm:$0xff]  ;;  %v593_v11 = vmul.f32 %v4154_v58, %v584_v10  ;;  %v594_v56 = vmul.f32 %v4156_v40, %v585_v12  ;;  %v7533_v10 = vld [vmem:[#allocation56_spill] sm:$0xff] }
 0x183   : > { %v528_v41 = vsel %vm3693_vm8, %v7531_v35, %v524_v54  ;;  %v538_v17 = vmul.f32 %v4104_v59, %v529_v48  ;;  %v7535_v48 = vld [vmem:[#allocation57_spill] sm:$0xff] }
 0x184   : > { %v466_v21 = vadd.f32 %v462_v3, %v425_v27  ;;  %v467_v24 = vadd.f32 %v463_v7, %v426_v63  ;;  %v537_v55 = vmul.f32 %v4102_v19, %v528_v41  ;;  %v819_v27 = vpop.permute.xlu0 %818 }
 0x185   : > { %v440_v20 = vpop.permute.xlu1 %439 }
 0x186   : > { %v543_v34 = vadd.f32 %v539_v13, %v466_v21  ;;  %v544_v5 = vadd.f32 %v540_v38, %v467_v24  ;;  %v447_v6 = vsel %vm312_vm7, %v440_v20, %v3951_v32  ;;  %v449_v0 = vsel %vm312_vm7, %v3951_v32, %v440_v20  ;;  %v817_v38 = vpop.permute.xlu2 %816 }
 0x187   : > { %v451_v46 = vsel %vm3717_vm9, %v3926_v53, %v449_v0  ;;  %v452_v22 = vsel %vm4002_vm12, %v7532_v29, %v447_v6  ;;  %v582_v53 = vsel %vm3717_vm9, %v3649_v36, %v580_v50 }
 0x188   : > { %v556_v4 = vadd.f32 %v552_v49, %v543_v34  ;;  %v557_v33 = vadd.f32 %v553_v15, %v544_v5  ;;  %v460_v45 = vmul.f32 %v4098_v26, %v451_v46  ;;  %v461_v32 = vmul.f32 %v4100_v2, %v452_v22  ;;  %v7584_v46 = vld [vmem:[#allocation48_spill] sm:$0xff] }
 0x189   : > { %v583_v49 = vsel %vm4002_vm12, %v3888_v31, %v578_v60  ;;  %v550_v15 = vmul.f32 %v4056_v14, %v3605_v52  ;;  %v591_v31 = vmul.f32 %v4154_v58, %v582_v53 }
 0x18a   : > { %v597_v8 = vadd.f32 %v593_v11, %v556_v4  ;;  %v598_v54 = vadd.f32 %v594_v56, %v557_v33  ;;  %v464_v9 = vadd.f32 %v460_v45, %v423_v18  ;;  %v465_v30 = vadd.f32 %v461_v32, %v424_v42 }
 0x18b   : > { %v592_v3 = vmul.f32 %v4156_v40, %v583_v49 }
 0x18c   : > { %601 = vst [vmem:[%s4209_s24 + $0x10] sm:$0xff] %v597_v8  ;;  %v541_v18 = vadd.f32 %v537_v55, %v464_v9  ;;  %v542_v42 = vadd.f32 %v538_v17, %v465_v30  ;;  %v4276_v55 = vld [vmem:[%s919_s28] sm:$0xff]  ;;  %v4278_v17 = vld [vmem:[%s919_s28 + $0x10] sm:$0xff] }
 0x18d   : > { %602 = vst [vmem:[%s4209_s24 + $0x18] sm:$0xff] %v598_v54  ;;  %v815_v36 = vpop.permute.xlu1 %814  ;;  %v924_v53 = vrot.slane %v4276_v55, 1  ;;  %v926_v49 = vrot.slane %v4278_v17, 1 }
 0x18e   : > { %v554_v52 = vadd.f32 %v550_v15, %v541_v18  ;;  %v555_v7 = vadd.f32 %v551_v44, %v542_v42  ;;  %v824_v13 = vsel %vm491_vm5, %v819_v27, %v815_v36  ;;  %v4221_v16 = vsel %vm491_vm5, %v815_v36, %v819_v27  ;;  %7538 = vst [vmem:[#allocation26_spill] sm:$0xff] %v4276_v55  ;;  %v4301_v44 = vld [vmem:[%s919_s28 + $0x8] sm:$0xff]  ;;  %v4303_v18 = vld [vmem:[%s919_s28 + $0x18] sm:$0xff]  ;;  %s1220_s28 = scalar_lea.vmem [#allocation2], %s2988_s27 }
 0x18f   : > { %v4226_v21 = vsel %vm170_vm10, %v7533_v10, %v824_v13  ;;  %v830_v50 = vrot.slane %v4221_v16, 1  ;;  %v874_v4 = vrot.slane %v4221_v16, 7  ;;  %7539 = vst [vmem:[#allocation27_spill] sm:$0xff] %v4278_v17  ;;  %v4307_v42 = vsel %vm231_vm0, %v924_v53, %v926_v49 }
 0x190   : > { %v595_v47 = vadd.f32 %v591_v31, %v554_v52  ;;  %v596_v63 = vadd.f32 %v592_v3, %v555_v7  ;;  %v831_v34 = vrot.slane %v4226_v21, 1  ;;  %v875_v30 = vrot.slane %v4226_v21, 7  ;;  %7540 = vst [vmem:[#allocation38_spill] sm:$0xff] %v4301_v44 }
 0x191   : > { %7541 = vst [vmem:[#allocation56_spill] sm:$0xff] %v4307_v42  ;;  %v925_v31 = vrot.slane %v4301_v44, 1  ;;  %v927_v3 = vrot.slane %v4303_v18, 1  ;;  %v930_v7 = vsel %vm231_vm0, %v926_v49, %v924_v53  ;;  %v967_v10 = vrot.slane %v4303_v18, 7 }
 0x192   : > { %599 = vst [vmem:[%s4209_s24] sm:$0xff] %v595_v47  ;;  %v4333_v47 = vsel %vm166_vm2, %v4278_v17, %v930_v7  ;;  %v7553_v7 = vld [vmem:[#allocation30_spill] sm:$0xff] }
 0x193   : > { %600 = vst [vmem:[%s4209_s24 + $0x8] sm:$0xff] %v596_v63  ;;  %v931_v27 = vsel %vm231_vm0, %v927_v3, %v925_v31  ;;  %v4342_v13 = vsel %vm231_vm0, %v925_v31, %v927_v3  ;;  %v7552_v3 = vld [vmem:[#allocation29_spill] sm:$0xff] }
 0x194   : > { %7542 = vst [vmem:[#allocation57_spill] sm:$0xff] %v4333_v47  ;;  %v4338_v63 = vsel %vm166_vm2, %v4303_v18, %v931_v27  ;;  %v636_v27 = vsel %vm252_vm6, %v7553_v7, %v7552_v3  ;;  %v7561_v7 = vld [vmem:[#allocation66_spill] sm:$0xff] }
 0x195   : > { %v821_v24 = vpop.permute.xlu1 %820  ;;  %7543 = vst [vmem:[#allocation73_spill] sm:$0xff] %v4342_v13 }
 0x196   : > { %v4231_v35 = vsel %vm491_vm5, %v817_v38, %v821_v24  ;;  %v825_v41 = vsel %vm491_vm5, %v821_v24, %v817_v38  ;;  %v965_v38 = vrot.slane %v4301_v44, 7  ;;  %v964_v24 = vrot.slane %v4276_v55, 7 }
 0x197   : > { %v4238_v60 = vsel %vm170_vm10, %v7535_v48, %v825_v41  ;;  %v832_v20 = vrot.slane %v4231_v35, 1  ;;  %v876_v22 = vrot.slane %v4231_v35, 7  ;;  %v966_v41 = vrot.slane %v4278_v17, 7  ;;  %v7562_v17 = vld [vmem:[#allocation63_spill] sm:$0xff] }
 0x198   : > { %v833_v5 = vrot.slane %v4238_v60, 1  ;;  %v877_v9 = vrot.slane %v4238_v60, 7 }
 0x199   : > { %v4246_v0 = vsel %vm231_vm0, %v830_v50, %v832_v20  ;;  %v836_v11 = vsel %vm231_vm0, %v832_v20, %v830_v50  ;;  %v880_v45 = vsel %vm291_vm1, %v876_v22, %v874_v4  ;;  %v4284_v8 = vsel %vm291_vm1, %v874_v4, %v876_v22  ;;  %v4383_v22 = vld [vmem:[%s3439_s17] sm:$0xff]  ;;  %v4386_v4 = vld [vmem:[%s3439_s17 + $0x10] sm:$0xff] }
 0x19a   : > { %842 = vrot.lane.b32.xlu2 %v4246_v0, %s3235_s22  ;;  %v4254_v56 = vsel %vm231_vm0, %v831_v34, %v833_v5  ;;  %v4259_v29 = vsel %vm166_vm2, %v4231_v35, %v836_v11  ;;  %v837_v33 = vsel %vm231_vm0, %v833_v5, %v831_v34  ;;  %v4289_v54 = vsel %vm163_vm3, %v4221_v16, %v880_v45  ;;  %v1003_v45 = vld [vmem:[%s3439_s17 + $0x18] sm:$0xff] }
 0x19b   : > { %846 = vrot.lane.b32.xlu1 %v4254_v56, %s3235_s22  ;;  %844 = vrot.lane.b32.xlu0 %v4259_v29, %s3235_s22  ;;  %v4274_v32 = vsel %vm166_vm2, %v4238_v60, %v837_v33  ;;  %v881_v15 = vsel %vm291_vm1, %v877_v9, %v875_v30  ;;  %v4320_v52 = vsel %vm291_vm1, %v875_v30, %v877_v9  ;;  %v1001_v33 = vld [vmem:[%s3439_s17 + $0x8] sm:$0xff]  ;;  %v7550_v30 = vld [vmem:[#allocation25_spill] sm:$0xff]  ;;  %s1100_s17 = sadd.s32 3, %s3333_s14 }
 0x19c   : > { %v4312_v36 = vsel %vm163_vm3, %v4226_v21, %v881_v15  ;;  %v970_v48 = vsel %vm291_vm1, %v966_v41, %v964_v24  ;;  %v971_v50 = vsel %vm291_vm1, %v967_v10, %v965_v38  ;;  %v4370_v5 = vsel %vm291_vm1, %v964_v24, %v966_v41  ;;  %7547 = vst [vmem:[#allocation77_spill] sm:$0xff] %v4383_v22  ;;  %v7549_v9 = vld [vmem:[#allocation28_spill] sm:$0xff]  ;;  %v7551_v15 = vld [vmem:[#allocation18_spill] sm:$0xff]  ;;  %v7556_v41 = vld [vmem:[#allocation33_spill] sm:$0xff]  ;;  %p1101_p9 = scmp.gt.s32.totalorder %s1100_s17, 0  ;;  %p2895_p10 = scmp.lt.s32.totalorder %s1100_s17, 15 }
 0x19d   : > { %v4361_v20 = vsel %vm163_vm3, %v4276_v55, %v970_v48  ;;  %v4366_v34 = vsel %vm163_vm3, %v4301_v44, %v971_v50  ;;  %7546 = vst [vmem:[#allocation76_spill] sm:$0xff] %v4370_v5  ;;  %v4380_v11 = vsel %vm291_vm1, %v965_v38, %v967_v10  ;;  %v633_v53 = vsel %vm252_vm6, %v7550_v30, %v7549_v9  ;;  %v7554_v38 = vld [vmem:[#allocation16_spill] sm:$0xff]  ;;  %v7555_v24 = vld [vmem:[#allocation34_spill] sm:$0xff]  ;;  %v7569_v55 = vld [vmem:[#allocation67_spill] sm:$0xff] }
 0x19e   : > { %7544 = vst [vmem:[#allocation74_spill] sm:$0xff] %v4361_v20  ;;  %v635_v49 = vsel %vm252_vm6, %v7549_v9, %v7550_v30  ;;  %v637_v31 = vsel %vm3693_vm8, %v7551_v15, %v633_v53  ;;  %v673_v48 = vsel %vm312_vm7, %v7556_v41, %v7555_v24  ;;  %v675_v50 = vsel %vm312_vm7, %v7555_v24, %v7556_v41  ;;  %v7559_v53 = vld [vmem:[#allocation13_spill] sm:$0xff]  ;;  %v7560_v15 = vld [vmem:[#allocation20_spill] sm:$0xff]  ;;  %s1102_s29 = scalar_select %p1101_p9, %s1100_s17, 0 }
 0x19f   : > { %7545 = vst [vmem:[#allocation75_spill] sm:$0xff] %v4366_v34  ;;  %v638_v10 = vsel %vm3962_vm11, %v7554_v38, %v635_v49  ;;  %v641_v30 = vmul.f32 %v637_v31, %v3715_v37  ;;  %v645_v49 = vmul.f32 %v7559_v53, %v3702_v51  ;;  %v640_v3 = vsel %vm3962_vm11, %v7560_v15, %v636_v27  ;;  %v7564_v24 = vld [vmem:[#allocation17_spill] sm:$0xff]  ;;  %v7570_v51 = vld [vmem:[#allocation58_spill] sm:$0xff] }
 0x1a0   : > { %7548 = vst [vmem:[#allocation78_spill] sm:$0xff] %v4386_v4  ;;  %v642_v38 = vmul.f32 %v638_v10, %v7561_v7  ;;  %v677_v41 = vsel %vm3717_vm9, %v7564_v24, %v675_v50  ;;  %v644_v27 = vmul.f32 %v640_v3, %v7561_v7  ;;  %v7567_v10 = vld [vmem:[#allocation15_spill] sm:$0xff]  ;;  %v7572_v3 = vld [vmem:[#allocation62_spill] sm:$0xff]  ;;  %s7732_s29 = smov (!%p2895_p10, %s1102_s29), 15 }
 0x1a1   : > { %v648_v15 = vmul.f32 %v7567_v10, %v7562_v17  ;;  %v649_v37 = vadd.f32 %v645_v49, %v641_v30  ;;  %v7577_v10 = vld [vmem:[#allocation45_spill] sm:$0xff]  ;;  %s2900_s3 = sshll.u32 %s7732_s29, 4 }
 0x1a2   : > { %848 = vrot.lane.b32.xlu2 %v4274_v32, %s3235_s22  ;;  %s1106_s4 = sshra.s32 %s2900_s3, 3 }
 0x1a3   : > { %888 = vrot.lane.b32.xlu1 %v4284_v8, %s3236_s23  ;;  %886 = vrot.lane.b32.xlu0 %v4289_v54, %s3236_s23  ;;  %v652_v49 = vadd.f32 %v648_v15, %v644_v27  ;;  %v7581_v27 = vld [vmem:[#allocation60_spill] sm:$0xff]  ;;  %s2985_s5 = sshll.u32 %s1106_s4, 4 }
 0x1a4   : > { %v784_v15 = vsel %vm312_vm7, %v7581_v27, %v4185_v62  ;;  %s4694_s16 = scalar_lea.vmem [#allocation2], %s2985_s5  ;;  %s2993_s5 = sadd.s32 64, %s3329_s6 }
 0x1a5   : > { %s1517_s25 = sshra.s32 %s2993_s5, 3  ;;  %s2999_s5 = sadd.s32 80, %s3329_s6 }
 0x1a6   : > { %s2994_s26 = sshll.u32 %s1517_s25, 4  ;;  %s1818_s25 = sshra.s32 %s2999_s5, 3 }
 0x1a7   : > { %s1521_s27 = scalar_lea.vmem [#allocation2], %s2994_s26  ;;  %s3000_s26 = sshll.u32 %s1818_s25, 4 }
 0x1aa   : > { %890 = vrot.lane.b32.xlu2 %v4312_v36, %s3236_s23 }
 0x1ab   : > { %936 = vrot.lane.b32.xlu1 %v4307_v42, %s3235_s22  ;;  %892 = vrot.lane.b32.xlu0 %v4320_v52, %s3236_s23  ;;  %v7580_v42 = vld [vmem:[#allocation64_spill] sm:$0xff] }
 0x1b2   : > { %938 = vrot.lane.b32.xlu2 %v4333_v47, %s3235_s22 }
 0x1b3   : > { %942 = vrot.lane.b32.xlu1 %v4338_v63, %s3235_s22  ;;  %940 = vrot.lane.b32.xlu0 %v4342_v13, %s3235_s22  ;;  %v7578_v13 = vld [vmem:[#allocation43_spill] sm:$0xff] }
 0x1ba   : > { %976 = vrot.lane.b32.xlu2 %v4361_v20, %s3236_s23  ;;  %v7568_v20 = vld [vmem:[#allocation41_spill] sm:$0xff] }
 0x1bb   : > { %980 = vrot.lane.b32.xlu1 %v4366_v34, %s3236_s23  ;;  %978 = vrot.lane.b32.xlu0 %v4370_v5, %s3236_s23  ;;  %v7563_v5 = vld [vmem:[#allocation14_spill] sm:$0xff]  ;;  %v7565_v34 = vld [vmem:[#allocation21_spill] sm:$0xff]  ;;  %v681_v44 = vmul.f32 %v677_v41, %v7568_v20 }
 0x1bc   : > { %v646_v47 = vmul.f32 %v7563_v5, %v7562_v17  ;;  %v678_v31 = vsel %vm4002_vm12, %v7565_v34, %v673_v48  ;;  %v7571_v34 = vld [vmem:[#allocation59_spill] sm:$0xff]  ;;  %v7575_v41 = vld [vmem:[#allocation42_spill] sm:$0xff] }
 0x1bd   : > { %v682_v50 = vmul.f32 %v678_v31, %v7569_v55  ;;  %v747_v48 = vsel %vm252_vm6, %v7571_v34, %v7570_v51 }
 0x1be   : > { %v650_v5 = vadd.f32 %v646_v47, %v642_v38  ;;  %v7574_v38 = vld [vmem:[#allocation40_spill] sm:$0xff] }
 0x1bf   : > { %v722_v31 = vmul.f32 %v7575_v41, %v7574_v38 }
 0x1c2   : > { %982 = vrot.lane.b32.xlu2 %v4380_v11, %s3236_s23 }
 0x1c3   : > { %1004 = vrot.lane.b32.xlu0 %v4383_v22, %s3237_s30  ;;  %1006 = vrot.lane.b32.xlu1 %v4386_v4, %s3237_s30  ;;  %v686_v4 = vadd.f32 %v682_v50, %v650_v5 }
 0x1ca   : > { %1008 = vrot.lane.b32.xlu2 %v1001_v33, %s3237_s30  ;;  %v7557_v33 = vld [vmem:[#allocation36_spill] sm:$0xff] }
 0x1cb   : > { %1010 = vrot.lane.b32.xlu0 %v1003_v45, %s3237_s30  ;;  %v7558_v45 = vld [vmem:[#allocation32_spill] sm:$0xff] }
 0x1cc   : > { %v674_v9 = vsel %vm312_vm7, %v7558_v45, %v7557_v33  ;;  %v7566_v33 = vld [vmem:[#allocation19_spill] sm:$0xff] }
 0x1cd   : > { %v680_v45 = vsel %vm4002_vm12, %v7566_v33, %v674_v9  ;;  %v749_v9 = vsel %vm252_vm6, %v7570_v51, %v7571_v34  ;;  %v7573_v33 = vld [vmem:[#allocation61_spill] sm:$0xff]  ;;  %v720_v51 = vmul.f32 %v7578_v13, %v7574_v38  ;;  %v786_v13 = vsel %vm312_vm7, %v4185_v62, %v7581_v27  ;;  %v7586_v62 = vld [vmem:[#allocation52_spill] sm:$0xff] }
 0x1ce   : > { %v684_v24 = vmul.f32 %v680_v45, %v7569_v55  ;;  %v748_v47 = vsel %vm252_vm6, %v7573_v33, %v7572_v3  ;;  %v750_v30 = vsel %vm252_vm6, %v7572_v3, %v7573_v33  ;;  %v7576_v45 = vld [vmem:[#allocation44_spill] sm:$0xff]  ;;  %v7579_v34 = vld [vmem:[#allocation65_spill] sm:$0xff]  ;;  %v7582_v33 = vld [vmem:[#allocation47_spill] sm:$0xff]  ;;  %v685_v38 = vadd.f32 %v681_v44, %v649_v37 }
 0x1cf   : > { %v719_v20 = vmul.f32 %v7577_v10, %v7576_v45  ;;  %v783_v12 = vsel %vm312_vm7, %v7580_v42, %v7579_v34  ;;  %v785_v3 = vsel %vm312_vm7, %v7579_v34, %v7580_v42  ;;  %v751_v41 = vsel %vm3693_vm8, %v7582_v33, %v747_v48  ;;  %v7583_v10 = vld [vmem:[#allocation46_spill] sm:$0xff]  ;;  %v7585_v34 = vld [vmem:[#allocation51_spill] sm:$0xff] }
 0x1d0   : > { %v752_v45 = vsel %vm3962_vm11, %v7583_v10, %v749_v9  ;;  %v753_v42 = vsel %vm3693_vm8, %v7584_v46, %v748_v47  ;;  %v754_v6 = vsel %vm3962_vm11, %v7585_v34, %v750_v30  ;;  %v688_v22 = vadd.f32 %v684_v24, %v652_v49  ;;  %v7587_v48 = vld [vmem:[#allocation54_spill] sm:$0xff]  ;;  %v7588_v9 = vld [vmem:[#allocation53_spill] sm:$0xff]  ;;  %v7589_v46 = vld [vmem:[#allocation55_spill] sm:$0xff] }
 0x1d1   : > { %v787_v27 = vsel %vm3717_vm9, %v7586_v62, %v785_v3  ;;  %v788_v33 = vsel %vm4002_vm12, %v7587_v48, %v783_v12  ;;  %v789_v10 = vsel %vm3717_vm9, %v7588_v9, %v786_v13  ;;  %v790_v47 = vsel %vm4002_vm12, %v7589_v46, %v784_v15  ;;  %v7590_v48 = vld [vmem:[#allocation50_spill] sm:$0xff] }
 0x1d2   : > { %v755_v37 = vmul.f32 %v751_v41, %v4072_v57  ;;  %v756_v44 = vmul.f32 %v752_v45, %v4074_v43  ;;  %v757_v5 = vmul.f32 %v753_v42, %v4072_v57  ;;  %v758_v50 = vmul.f32 %v754_v6, %v4074_v43 }
 0x1d3   : > { %v726_v30 = vadd.f32 %v722_v31, %v688_v22  ;;  %v724_v49 = vadd.f32 %v720_v51, %v686_v4  ;;  %v723_v12 = vadd.f32 %v719_v20, %v685_v38  ;;  %v791_v3 = vmul.f32 %v787_v27, %v4098_v26 }
 0x1d4   : > { %v792_v13 = vmul.f32 %v788_v33, %v4100_v2  ;;  %v793_v34 = vmul.f32 %v789_v10, %v4098_v26  ;;  %v794_v15 = vmul.f32 %v790_v47, %v4100_v2  ;;  %v761_v45 = vadd.f32 %v757_v5, %v7590_v48 }
 0x1d5   : > { %v759_v62 = vadd.f32 %v755_v37, %v723_v12  ;;  %v760_v41 = vadd.f32 %v756_v44, %v724_v49  ;;  %v762_v9 = vadd.f32 %v758_v50, %v726_v30  ;;  %v866_v5 = vmul.f32 %v4221_v16, %v4056_v14 }
 0x1d6   : > { %v797_v6 = vadd.f32 %v793_v34, %v761_v45 }
 0x1d7   : > { %v795_v42 = vadd.f32 %v791_v3, %v759_v62  ;;  %v796_v46 = vadd.f32 %v792_v13, %v760_v41  ;;  %v798_v43 = vadd.f32 %v794_v15, %v762_v9 }
 0x1f4   : > { %v843_v53 = vpop.permute.xlu2 %842 }
 0x1fc   : > { %v849_v24 = vpop.permute.xlu2 %848 }
 0x204   : > { %v891_v50 = vpop.permute.xlu2 %890 }
 0x20c   : > { %v4567_v45 = vpop.permute.xlu2 %938 }
 0x20d   : > { %v847_v22 = vpop.permute.xlu1 %846  ;;  %v845_v4 = vpop.permute.xlu0 %844 }
 0x20e   : > { %v850_v20 = vsel %vm252_vm6, %v843_v53, %v847_v22  ;;  %v852_v38 = vsel %vm252_vm6, %v847_v22, %v843_v53  ;;  %v851_v31 = vsel %vm252_vm6, %v845_v4, %v849_v24  ;;  %v853_v51 = vsel %vm252_vm6, %v849_v24, %v845_v4 }
 0x20f   : > { %v854_v27 = vsel %vm3693_vm8, %v4246_v0, %v850_v20  ;;  %v855_v33 = vsel %vm3962_vm11, %v4254_v56, %v852_v38  ;;  %v856_v10 = vsel %vm3693_vm8, %v4259_v29, %v851_v31  ;;  %v857_v53 = vsel %vm3962_vm11, %v4274_v32, %v853_v51 }
 0x210   : > { %v858_v47 = vmul.f32 %v854_v27, %v4102_v19  ;;  %v859_v37 = vmul.f32 %v855_v33, %v4104_v59  ;;  %v860_v44 = vmul.f32 %v856_v10, %v4102_v19  ;;  %v861_v0 = vmul.f32 %v857_v53, %v4104_v59 }
 0x211   : > { %v867_v56 = vmul.f32 %v4226_v21, %v4058_v25  ;;  %v868_v29 = vmul.f32 %v4231_v35, %v4056_v14  ;;  %v869_v32 = vmul.f32 %v4238_v60, %v4058_v25 }
 0x212   : > { %v862_v24 = vadd.f32 %v858_v47, %v795_v42  ;;  %v863_v30 = vadd.f32 %v859_v37, %v796_v46  ;;  %v864_v49 = vadd.f32 %v860_v44, %v797_v6  ;;  %v865_v12 = vadd.f32 %v861_v0, %v798_v43 }
 0x214   : > { %v870_v3 = vadd.f32 %v866_v5, %v862_v24  ;;  %v871_v13 = vadd.f32 %v867_v56, %v863_v30  ;;  %v872_v34 = vadd.f32 %v868_v29, %v864_v49  ;;  %v873_v16 = vadd.f32 %v869_v32, %v865_v12  ;;  %v4585_v27 = vpop.permute.xlu2 %976 }
 0x215   : > { %v889_v15 = vpop.permute.xlu1 %888  ;;  %v887_v62 = vpop.permute.xlu0 %886  ;;  %v959_v29 = vmul.f32 %v4303_v18, %v7562_v17 }
 0x216   : > { %v894_v21 = vsel %vm312_vm7, %v887_v62, %v891_v50  ;;  %v896_v35 = vsel %vm312_vm7, %v891_v50, %v887_v62  ;;  %v7593_v62 = vld [vmem:[#allocation40_spill] sm:$0xff] }
 0x217   : > { %v898_v60 = vsel %vm3717_vm9, %v4289_v54, %v896_v35  ;;  %v899_v43 = vsel %vm4002_vm12, %v4312_v36, %v894_v21 }
 0x218   : > { %v902_v41 = vmul.f32 %v898_v60, %v4154_v58  ;;  %v903_v48 = vmul.f32 %v899_v43, %v4156_v40 }
 0x21a   : > { %v906_v9 = vadd.f32 %v902_v41, %v870_v3  ;;  %v907_v42 = vadd.f32 %v903_v48, %v871_v13 }
 0x21c   : > { %910 = vst [vmem:[%s4209_s24 + $0x20] sm:$0xff] %v906_v9  ;;  %v4595_v53 = vpop.permute.xlu2 %982  ;;  %v7625_v9 = vld [vmem:[#allocation38_spill] sm:$0xff] }
 0x21d   : > { %911 = vst [vmem:[%s4209_s24 + $0x28] sm:$0xff] %v907_v42  ;;  %v893_v46 = vpop.permute.xlu0 %892  ;;  %v4575_v36 = vpop.permute.xlu1 %936 }
 0x21e   : > { %v895_v54 = vsel %vm312_vm7, %v889_v15, %v893_v46  ;;  %v897_v6 = vsel %vm312_vm7, %v893_v46, %v889_v15 }
 0x21f   : > { %v900_v22 = vsel %vm3717_vm9, %v4284_v8, %v897_v6  ;;  %v901_v4 = vsel %vm4002_vm12, %v4320_v52, %v895_v54  ;;  %v7623_v6 = vld [vmem:[#allocation37_spill] sm:$0xff] }
 0x220   : > { %v904_v20 = vmul.f32 %v900_v22, %v4154_v58  ;;  %v905_v38 = vmul.f32 %v901_v4, %v4156_v40 }
 0x222   : > { %v908_v31 = vadd.f32 %v904_v20, %v872_v34  ;;  %v909_v51 = vadd.f32 %v905_v38, %v873_v16  ;;  %v7592_v16 = vld [vmem:[#allocation78_spill] sm:$0xff] }
 0x224   : > { %912 = vst [vmem:[%s4209_s24 + $0x30] sm:$0xff] %v908_v31  ;;  %v1009_v56 = vpop.permute.xlu2 %1008 }
 0x225   : > { %913 = vst [vmem:[%s4209_s24 + $0x38] sm:$0xff] %v909_v51  ;;  %v4589_v33 = vpop.permute.xlu0 %940  ;;  %v4591_v10 = vpop.permute.xlu1 %942 }
 0x226   : > { %v947_v52 = vsel %vm252_vm6, %v4591_v10, %v4567_v45 }
 0x227   : > { %v951_v44 = vsel %vm3962_vm11, %v4338_v63, %v947_v52 }
 0x228   : > { %v955_v32 = vmul.f32 %v951_v44, %v7561_v7 }
 0x22a   : > { %v963_v63 = vadd.f32 %v959_v29, %v955_v32 }
 0x22d   : > { %v4593_v8 = vpop.permute.xlu0 %978  ;;  %v4601_v47 = vpop.permute.xlu1 %980 }
 0x22e   : > { %v985_v37 = vsel %vm312_vm7, %v4593_v8, %v4595_v53 }
 0x22f   : > { %v991_v5 = vsel %vm4002_vm12, %v4380_v11, %v985_v37  ;;  %v7591_v11 = vld [vmem:[#allocation77_spill] sm:$0xff] }
 0x230   : > { %v995_v50 = vmul.f32 %v991_v5, %v7569_v55 }
 0x232   : > { %v999_v3 = vadd.f32 %v995_v50, %v963_v63  ;;  %v4715_v50 = vld [vmem:[%s4694_s16 + $0x18] sm:$0xff] }
 0x233   : > { %7598 = vst [vmem:[#allocation18_spill] sm:$0xff] %v4715_v50 }
 0x235   : > { %v1005_v0 = vpop.permute.xlu0 %1004  ;;  %v1007_v30 = vpop.permute.xlu1 %1006 }
 0x236   : > { %v1014_v24 = vsel %vm167_vm4, %v1009_v56, %v1005_v0  ;;  %v4622_v49 = vsel %vm167_vm4, %v1005_v0, %v1009_v56  ;;  %v4697_v56 = vld [vmem:[%s4694_s16] sm:$0xff] }
 0x237   : > { %v4627_v12 = vsel %vm167_vm4, %v7591_v11, %v1014_v24  ;;  %v1029_v35 = vrot.slane %v4622_v49, 1  ;;  %v1065_v0 = vrot.slane %v4622_v49, 7  ;;  %7597 = vst [vmem:[#allocation25_spill] sm:$0xff] %v4697_v56  ;;  %v4718_v24 = vld [vmem:[%s4694_s16 + $0x10] sm:$0xff] }
 0x238   : > { %v1028_v43 = vrot.slane %v4627_v12, 1  ;;  %v1064_v20 = vrot.slane %v4627_v12, 7  ;;  %7599 = vst [vmem:[#allocation29_spill] sm:$0xff] %v4718_v24 }
 0x23d   : > { %v1011_v18 = vpop.permute.xlu0 %1010 }
 0x23e   : > { %v1013_v13 = vsel %vm167_vm4, %v1007_v30, %v1011_v18  ;;  %v1015_v34 = vsel %vm167_vm4, %v1011_v18, %v1007_v30  ;;  %v4721_v30 = vld [vmem:[%s4694_s16 + $0x8] sm:$0xff] }
 0x23f   : > { %v4636_v15 = vsel %vm167_vm4, %v7592_v16, %v1015_v34  ;;  %v1023_v21 = vmul.f32 %v1013_v13, %v7593_v62  ;;  %v1031_v60 = vrot.slane %v1013_v13, 1  ;;  %v1067_v37 = vrot.slane %v1013_v13, 7  ;;  %7600 = vst [vmem:[#allocation30_spill] sm:$0xff] %v4721_v30 }
 0x240   : > { %v1030_v41 = vrot.slane %v4636_v15, 1  ;;  %v1066_v4 = vrot.slane %v4636_v15, 7 }
 0x241   : > { %v4643_v48 = vadd.f32 %v1023_v21, %v999_v3  ;;  %v4647_v42 = vsel %vm231_vm0, %v1029_v35, %v1031_v60  ;;  %v1035_v38 = vsel %vm231_vm0, %v1031_v60, %v1029_v35  ;;  %v1071_v5 = vsel %vm291_vm1, %v1067_v37, %v1065_v0 }
 0x242   : > { %1044 = vrot.lane.b32.xlu0 %v4647_v42, %s3235_s22  ;;  %v4653_v46 = vsel %vm231_vm0, %v1028_v43, %v1030_v41  ;;  %v1034_v54 = vsel %vm231_vm0, %v1030_v41, %v1028_v43  ;;  %v1070_v31 = vsel %vm291_vm1, %v1066_v4, %v1064_v20  ;;  %v4674_v51 = vsel %vm291_vm1, %v1064_v20, %v1066_v4  ;;  %v4806_v4 = vld [vmem:[%s1220_s28 + $0x10] sm:$0xff] }
 0x243   : > { %7594 = vst [vmem:[#allocation28_spill] sm:$0xff] %v4643_v48  ;;  %1040 = vrot.lane.b32.xlu1 %v4653_v46, %s3235_s22  ;;  %v4662_v22 = vsel %vm166_vm2, %v4636_v15, %v1034_v54  ;;  %v4680_v52 = vsel %vm166_vm2, %v1013_v13, %v1035_v38  ;;  %v4687_v44 = vsel %vm163_vm3, %v4627_v12, %v1070_v31 }
 0x244   : > { %1042 = vrot.lane.b32.xlu2 %v4662_v22, %s3235_s22  ;;  %v4702_v29 = vsel %vm163_vm3, %v4622_v49, %v1071_v5  ;;  %v4710_v32 = vsel %vm291_vm1, %v1065_v0, %v1067_v37  ;;  %7607 = vst [vmem:[#allocation13_spill] sm:$0xff] %v4806_v4 }
 0x24a   : > { %1078 = vrot.lane.b32.xlu0 %v4674_v51, %s3236_s23 }
 0x24b   : > { %1046 = vrot.lane.b32.xlu1 %v4680_v52, %s3235_s22 }
 0x24c   : > { %1076 = vrot.lane.b32.xlu2 %v4687_v44, %s3236_s23 }
 0x252   : > { %1115 = vrot.lane.b32.xlu0 %v4697_v56, %s3238_s21  ;;  %v4804_v56 = vld [vmem:[%s1220_s28] sm:$0xff] }
 0x253   : > { %1080 = vrot.lane.b32.xlu1 %v4702_v29, %s3236_s23  ;;  %7606 = vst [vmem:[#allocation32_spill] sm:$0xff] %v4804_v56  ;;  %v1225_v58 = vrot.slane %v4804_v56, 1 }
 0x254   : > { %1082 = vrot.lane.b32.xlu2 %v4710_v32, %s3236_s23 }
 0x25a   : > { %1121 = vrot.lane.b32.xlu0 %v4715_v50, %s3238_s21 }
 0x25b   : > { %1117 = vrot.lane.b32.xlu1 %v4718_v24, %s3238_s21 }
 0x25c   : > { %1119 = vrot.lane.b32.xlu2 %v4721_v30, %s3238_s21 }
 0x29e   : > { %v4729_v63 = vpop.permute.xlu2 %1042 }
 0x2a6   : > { %v4733_v18 = vpop.permute.xlu2 %1076 }
 0x2ae   : > { %v4741_v16 = vpop.permute.xlu2 %1082 }
 0x2b4   : > { %v4731_v11 = vpop.permute.xlu0 %1044 }
 0x2b5   : > { %v4735_v3 = vpop.permute.xlu1 %1040 }
 0x2b6   : > { %v1120_v60 = vpop.permute.xlu2 %1119 }
 0x2bc   : > { %v4737_v13 = vpop.permute.xlu0 %1078 }
 0x2bd   : > { %v4739_v34 = vpop.permute.xlu1 %1046 }
 0x2c4   : > { %v1116_v21 = vpop.permute.xlu0 %1115 }
 0x2c5   : > { %v4743_v35 = vpop.permute.xlu1 %1080  ;;  %v1125_v43 = vsel %vm491_vm5, %v1120_v60, %v1116_v21  ;;  %v4749_v41 = vsel %vm491_vm5, %v1116_v21, %v1120_v60 }
 0x2c6   : > { %v4754_v20 = vsel %vm170_vm10, %v4721_v30, %v1125_v43  ;;  %v1131_v5 = vrot.slane %v4749_v41, 1 }
 0x2c7   : > { %v1132_v60 = vrot.slane %v4754_v20, 1 }
 0x2cc   : > { %v1122_v54 = vpop.permute.xlu0 %1121 }
 0x2cd   : > { %v1118_v38 = vpop.permute.xlu1 %1117 }
 0x2ce   : > { %v4759_v31 = vsel %vm491_vm5, %v1118_v38, %v1122_v54  ;;  %v1126_v37 = vsel %vm491_vm5, %v1122_v54, %v1118_v38 }
 0x2cf   : > { %7602 = vst [vmem:[#allocation16_spill] sm:$0xff] %v4759_v31  ;;  %v4766_v0 = vsel %vm170_vm10, %v4715_v50, %v1126_v37  ;;  %v1133_v21 = vrot.slane %v4759_v31, 1 }
 0x2d0   : > { %7603 = vst [vmem:[#allocation34_spill] sm:$0xff] %v4766_v0  ;;  %v1134_v43 = vrot.slane %v4766_v0, 1 }
 0x2d1   : > { %v4774_v30 = vsel %vm231_vm0, %v1131_v5, %v1133_v21  ;;  %v1137_v54 = vsel %vm231_vm0, %v1133_v21, %v1131_v5  ;;  %v1177_v5 = vrot.slane %v4759_v31, 7  ;;  %v1175_v21 = vrot.slane %v4749_v41, 7 }
 0x2d2   : > { %1143 = vrot.lane.b32.xlu1 %v4774_v30, %s3235_s22  ;;  %v4782_v38 = vsel %vm231_vm0, %v1132_v60, %v1134_v43  ;;  %v4787_v37 = vsel %vm166_vm2, %v4759_v31, %v1137_v54  ;;  %v1138_v50 = vsel %vm231_vm0, %v1134_v43, %v1132_v60  ;;  %v1176_v43 = vrot.slane %v4754_v20, 7  ;;  %v4829_v31 = vld [vmem:[%s1220_s28 + $0x8] sm:$0xff] }
 0x2d3   : > { %7604 = vst [vmem:[#allocation33_spill] sm:$0xff] %v4787_v37  ;;  %1147 = vrot.lane.b32.xlu0 %v4782_v38, %s3235_s22  ;;  %1145 = vrot.lane.b32.xlu2 %v4787_v37, %s3235_s22  ;;  %v1181_v24 = vsel %vm291_vm1, %v1177_v5, %v1175_v21  ;;  %v4802_v54 = vsel %vm166_vm2, %v4766_v0, %v1138_v50  ;;  %v1178_v50 = vrot.slane %v4766_v0, 7 }
 0x2d4   : > { %7605 = vst [vmem:[#allocation36_spill] sm:$0xff] %v4802_v54  ;;  %v4812_v40 = vsel %vm291_vm1, %v1175_v21, %v1177_v5  ;;  %v4817_v60 = vsel %vm163_vm3, %v4749_v41, %v1181_v24  ;;  %v1227_v5 = vrot.slane %v4806_v4, 1  ;;  %v4831_v24 = vld [vmem:[%s1220_s28 + $0x18] sm:$0xff]  ;;  %s5663_s28 = sadd.s32 5, %s3333_s14 }
 0x2d5   : > { %7608 = vst [vmem:[#allocation20_spill] sm:$0xff] %v4812_v40  ;;  %v1182_v21 = vsel %vm291_vm1, %v1178_v50, %v1176_v43  ;;  %v4848_v37 = vsel %vm291_vm1, %v1176_v43, %v1178_v50  ;;  %v1265_v43 = vrot.slane %v4804_v56, 7  ;;  %p1703_p13 = scmp.gt.s32.totalorder %s5663_s28, 0  ;;  %p2917_p0 = scmp.lt.s32.totalorder %s5663_s28, 15 }
 0x2d6   : > { %7609 = vst [vmem:[#allocation63_spill] sm:$0xff] %v4817_v60  ;;  %v4835_v0 = vsel %vm231_vm0, %v1225_v58, %v1227_v5 }
 0x2d7   : > { %7610 = vst [vmem:[#allocation14_spill] sm:$0xff] %v4829_v31 }
 0x2d8   : > { %7611 = vst [vmem:[#allocation17_spill] sm:$0xff] %v4835_v0 }
 0x2da   : > { %1149 = vrot.lane.b32.xlu1 %v4802_v54, %s3235_s22  ;;  %v1228_v54 = vrot.slane %v4831_v24, 1 }
 0x2db   : > { %1189 = vrot.lane.b32.xlu0 %v4812_v40, %s3236_s23  ;;  %1187 = vrot.lane.b32.xlu2 %v4817_v60, %s3236_s23  ;;  %v4840_v60 = vsel %vm163_vm3, %v4754_v20, %v1182_v21  ;;  %v1226_v40 = vrot.slane %v4829_v31, 1  ;;  %v1231_v21 = vsel %vm231_vm0, %v1227_v5, %v1225_v58  ;;  %v1266_v5 = vrot.slane %v4829_v31, 7 }
 0x2dc   : > { %7612 = vst [vmem:[#allocation21_spill] sm:$0xff] %v4840_v60 }
 0x2dd   : > { %v1232_v48 = vsel %vm231_vm0, %v1228_v54, %v1226_v40  ;;  %v4872_v58 = vsel %vm231_vm0, %v1226_v40, %v1228_v54 }
 0x2de   : > { %v4866_v50 = vsel %vm166_vm2, %v4831_v24, %v1232_v48  ;;  %7614 = vst [vmem:[#allocation15_spill] sm:$0xff] %v4872_v58 }
 0x2e2   : > { %1191 = vrot.lane.b32.xlu1 %v4840_v60, %s3236_s23  ;;  %v4861_v60 = vsel %vm166_vm2, %v4806_v4, %v1231_v21  ;;  %v1268_v21 = vrot.slane %v4831_v24, 7 }
 0x2e3   : > { %1237 = vrot.lane.b32.xlu0 %v4835_v0, %s3235_s22  ;;  %1193 = vrot.lane.b32.xlu2 %v4848_v37, %s3236_s23  ;;  %7613 = vst [vmem:[#allocation19_spill] sm:$0xff] %v4861_v60  ;;  %v1267_v0 = vrot.slane %v4806_v4, 7 }
 0x2e4   : > { %v1272_v48 = vsel %vm291_vm1, %v1268_v21, %v1266_v5 }
 0x2e5   : > { %v1271_v40 = vsel %vm291_vm1, %v1267_v0, %v1265_v43  ;;  %v4894_v4 = vsel %vm163_vm3, %v4829_v31, %v1272_v48  ;;  %v3093_v48 = vld [vmem:[%s3910_s7 + $0x8] sm:$0xff]  ;;  %v984_v31 = vsel %vm312_vm7, %v4585_v27, %v4601_v47 }
 0x2e6   : > { %v4889_v54 = vsel %vm163_vm3, %v4804_v56, %v1271_v40  ;;  %7616 = vst [vmem:[#allocation58_spill] sm:$0xff] %v4894_v4  ;;  %v4908_v40 = vsel %vm291_vm1, %v1266_v5, %v1268_v21  ;;  %v4911_v56 = vld [vmem:[%s3910_s7] sm:$0xff]  ;;  %v944_v21 = vsel %vm252_vm6, %v4575_v36, %v4589_v33 }
 0x2e7   : > { %7615 = vst [vmem:[#allocation67_spill] sm:$0xff] %v4889_v54 }
 0x2e8   : > { %7618 = vst [vmem:[#allocation62_spill] sm:$0xff] %v4908_v40 }
 0x2e9   : > { %7619 = vst [vmem:[#allocation61_spill] sm:$0xff] %v4911_v56 }
 0x2ea   : > { %1239 = vrot.lane.b32.xlu1 %v4861_v60, %s3235_s22  ;;  %v4898_v60 = vsel %vm291_vm1, %v1265_v43, %v1267_v0  ;;  %v4916_v0 = vld [vmem:[%s3910_s7 + $0x10] sm:$0xff]  ;;  %v1304_v43 = vld [vmem:[%s3910_s7 + $0x18] sm:$0xff]  ;;  %s1401_s7 = sadd.s32 4, %s3333_s14 }
 0x2eb   : > { %1243 = vrot.lane.b32.xlu0 %v4866_v50, %s3235_s22  ;;  %1241 = vrot.lane.b32.xlu2 %v4872_v58, %s3235_s22  ;;  %7617 = vst [vmem:[#allocation59_spill] sm:$0xff] %v4898_v60  ;;  %p1402_p11 = scmp.gt.s32.totalorder %s1401_s7, 0  ;;  %p2906_p12 = scmp.lt.s32.totalorder %s1401_s7, 15 }
 0x2ec   : > { %7620 = vst [vmem:[#allocation42_spill] sm:$0xff] %v4916_v0 }
 0x2ed   : > { %s7734_s7 = smov (!%p1402_p11, %s1401_s7), 0 }
 0x2ee   : > { %s7736_s7 = smov (!%p2906_p12, %s7734_s7), 15 }
 0x2ef   : > { %s2911_s17 = sshll.u32 %s7736_s7, 4 }
 0x2f0   : > { %s1407_s29 = sshra.s32 %s2911_s17, 3 }
 0x2f1   : > { %s2991_s3 = sshll.u32 %s1407_s29, 4 }
 0x2f2   : > { %1277 = vrot.lane.b32.xlu1 %v4889_v54, %s3236_s23  ;;  %v7622_v54 = vld [vmem:[#allocation73_spill] sm:$0xff]  ;;  %s5224_s4 = scalar_lea.vmem [#allocation2], %s2991_s3 }
 0x2f3   : > { %1281 = vrot.lane.b32.xlu0 %v4894_v4, %s3236_s23  ;;  %1279 = vrot.lane.b32.xlu2 %v4898_v60, %s3236_s23  ;;  %v946_v60 = vsel %vm252_vm6, %v4589_v33, %v4575_v36  ;;  %v7624_v36 = vld [vmem:[#allocation26_spill] sm:$0xff]  ;;  %s1704_s7 = scalar_select %p1703_p13, %s5663_s28, 0 }
 0x2f4   : > { %v949_v58 = vsel %vm3962_vm11, %v7622_v54, %v946_v60  ;;  %v956_v33 = vmul.f32 %v7624_v36, %v7623_v6  ;;  %v987_v60 = vsel %vm312_vm7, %v4595_v53, %v4593_v8  ;;  %v7628_v54 = vld [vmem:[#allocation39_spill] sm:$0xff]  ;;  %v7630_v53 = vld [vmem:[#allocation41_spill] sm:$0xff]  ;;  %s2003_s28 = sadd.s32 6, %s3333_s14 }
 0x2f5   : > { %v953_v36 = vmul.f32 %v949_v58, %v7561_v7  ;;  %s7738_s7 = smov (!%p2917_p0, %s1704_s7), 15  ;;  %p2004_p1 = scmp.gt.s32.totalorder %s2003_s28, 0 }
 0x2f6   : > { %p2928_p2 = scmp.lt.s32.totalorder %s2003_s28, 15 }
 0x2f7   : > { %s7740_s28 = smov (!%p2004_p1, %s2003_s28), 0 }
 0x2f8   : > { %s7742_s28 = smov (!%p2928_p2, %s7740_s28), 15 }
 0x2fa   : > { %1283 = vrot.lane.b32.xlu1 %v4908_v40, %s3236_s23  ;;  %v7632_v40 = vld [vmem:[#allocation27_spill] sm:$0xff] }
 0x2fb   : > { %1307 = vrot.lane.b32.xlu0 %v4916_v0, %s3237_s30  ;;  %1305 = vrot.lane.b32.xlu2 %v4911_v56, %s3237_s30  ;;  %v957_v56 = vmul.f32 %v7625_v9, %v7562_v17  ;;  %v945_v0 = vsel %vm252_vm6, %v4567_v45, %v4591_v10  ;;  %v1048_v45 = vsel %vm252_vm6, %v4735_v3, %v4731_v11 }
 0x2fc   : > { %v1050_v10 = vsel %vm252_vm6, %v4731_v11, %v4735_v3  ;;  %v958_v7 = vmul.f32 %v7632_v40, %v7623_v6  ;;  %v1052_v11 = vsel %vm3693_vm8, %v4653_v46, %v1048_v45  ;;  %v1086_v40 = vsel %vm312_vm7, %v4743_v35, %v4733_v18 }
 0x2fd   : > { %v1053_v3 = vsel %vm3962_vm11, %v4647_v42, %v1050_v10  ;;  %v1021_v42 = vmul.f32 %v4622_v49, %v7593_v62  ;;  %v1088_v49 = vsel %vm3717_vm9, %v4687_v44, %v1086_v40 }
 0x302   : > { %1309 = vrot.lane.b32.xlu1 %v3093_v48, %s3237_s30  ;;  %v7621_v48 = vld [vmem:[#allocation56_spill] sm:$0xff] }
 0x303   : > { %1311 = vrot.lane.b32.xlu2 %v1304_v43, %s3237_s30  ;;  %v986_v43 = vsel %vm312_vm7, %v4601_v47, %v4585_v27  ;;  %v948_v4 = vsel %vm3693_vm8, %v7621_v48, %v944_v21  ;;  %v7626_v27 = vld [vmem:[#allocation74_spill] sm:$0xff]  ;;  %v7627_v21 = vld [vmem:[#allocation75_spill] sm:$0xff] }
 0x304   : > { %v988_v47 = vsel %vm3717_vm9, %v7626_v27, %v986_v43  ;;  %v989_v48 = vsel %vm4002_vm12, %v7627_v21, %v984_v31  ;;  %v952_v9 = vmul.f32 %v948_v4, %v7628_v54  ;;  %v7629_v43 = vld [vmem:[#allocation57_spill] sm:$0xff]  ;;  %v7631_v27 = vld [vmem:[#allocation76_spill] sm:$0xff] }
 0x305   : > { %v950_v8 = vsel %vm3693_vm8, %v7629_v43, %v945_v0  ;;  %v992_v4 = vmul.f32 %v988_v47, %v7630_v53  ;;  %v993_v58 = vmul.f32 %v989_v48, %v7569_v55  ;;  %v990_v21 = vsel %vm3717_vm9, %v7631_v27, %v987_v60  ;;  %v7633_v60 = vld [vmem:[#allocation44_spill] sm:$0xff] }
 0x306   : > { %v960_v0 = vadd.f32 %v956_v33, %v952_v9  ;;  %v961_v43 = vadd.f32 %v957_v56, %v953_v36  ;;  %v1084_v47 = vsel %vm312_vm7, %v4733_v18, %v4743_v35  ;;  %v954_v48 = vmul.f32 %v950_v8, %v7628_v54  ;;  %v7634_v36 = vld [vmem:[#allocation23_spill] sm:$0xff] }
 0x307   : > { %v994_v46 = vmul.f32 %v990_v21, %v7630_v53  ;;  %v1020_v45 = vmul.f32 %v4627_v12, %v7633_v60  ;;  %v1056_v9 = vmul.f32 %v1052_v11, %v4072_v57  ;;  %v1057_v10 = vmul.f32 %v1053_v3, %v7634_v36 }
 0x308   : > { %v996_v56 = vadd.f32 %v992_v4, %v960_v0  ;;  %v997_v33 = vadd.f32 %v993_v58, %v961_v43  ;;  %v1049_v18 = vsel %vm252_vm6, %v4729_v63, %v4739_v34  ;;  %v1051_v35 = vsel %vm252_vm6, %v4739_v34, %v4729_v63 }
 0x309   : > { %v1089_v12 = vsel %vm4002_vm12, %v4702_v29, %v1084_v47  ;;  %v962_v8 = vadd.f32 %v958_v7, %v954_v48  ;;  %v1054_v27 = vsel %vm3693_vm8, %v4662_v22, %v1049_v18  ;;  %v1055_v21 = vsel %vm3962_vm11, %v4680_v52, %v1051_v35 }
 0x30a   : > { %v1025_v4 = vadd.f32 %v1021_v42, %v997_v33  ;;  %v1024_v58 = vadd.f32 %v1020_v45, %v996_v56  ;;  %v1092_v63 = vmul.f32 %v1088_v49, %v4098_v26  ;;  %v1093_v34 = vmul.f32 %v1089_v12, %v4100_v2  ;;  %v7635_v12 = vld [vmem:[#allocation28_spill] sm:$0xff] }
 0x30b   : > { %v998_v11 = vadd.f32 %v994_v46, %v962_v8  ;;  %v1022_v29 = vmul.f32 %v4636_v15, %v7633_v60  ;;  %v1085_v22 = vsel %vm312_vm7, %v4737_v13, %v4741_v16  ;;  %v1087_v52 = vsel %vm312_vm7, %v4741_v16, %v4737_v13 }
 0x30c   : > { %v1060_v7 = vadd.f32 %v1056_v9, %v1024_v58  ;;  %v1061_v3 = vadd.f32 %v1057_v10, %v1025_v4  ;;  %v1058_v40 = vmul.f32 %v1054_v27, %v4072_v57  ;;  %v1059_v48 = vmul.f32 %v1055_v21, %v7634_v36 }
 0x30d   : > { %v1090_v33 = vsel %vm3717_vm9, %v4674_v51, %v1087_v52  ;;  %v1091_v9 = vsel %vm4002_vm12, %v4710_v32, %v1085_v22  ;;  %v1026_v10 = vadd.f32 %v1022_v29, %v998_v11  ;;  %v7637_v11 = vld [vmem:[#allocation36_spill] sm:$0xff] }
 0x30e   : > { %v1096_v42 = vadd.f32 %v1092_v63, %v1060_v7  ;;  %v1097_v13 = vadd.f32 %v1093_v34, %v1061_v3  ;;  %v1063_v8 = vadd.f32 %v1059_v48, %v7635_v12  ;;  %v1094_v51 = vmul.f32 %v1090_v33, %v4098_v26  ;;  %v7636_v34 = vld [vmem:[#allocation33_spill] sm:$0xff]  ;;  %v7639_v48 = vld [vmem:[#allocation16_spill] sm:$0xff]  ;;  %v7641_v33 = vld [vmem:[#allocation35_spill] sm:$0xff] }
 0x30f   : > { %v1062_v49 = vadd.f32 %v1058_v40, %v1026_v10  ;;  %v1095_v21 = vmul.f32 %v1091_v9, %v4100_v2  ;;  %v7642_v10 = vld [vmem:[#allocation72_spill] sm:$0xff] }
 0x311   : > { %v1099_v22 = vadd.f32 %v1095_v21, %v1063_v8  ;;  %v7643_v8 = vld [vmem:[#allocation63_spill] sm:$0xff] }
 0x32d   : > { %v4926_v5 = vpop.permute.xlu2 %1145 }
 0x335   : > { %v4978_v31 = vpop.permute.xlu2 %1187 }
 0x33d   : > { %v1194_v0 = vpop.permute.xlu2 %1193 }
 0x344   : > { %v1144_v44 = vpop.permute.xlu1 %1143 }
 0x345   : > { %v1148_v43 = vpop.permute.xlu0 %1147  ;;  %v5077_v63 = vpop.permute.xlu2 %1241 }
 0x346   : > { %v1151_v47 = vsel %vm252_vm6, %v1144_v44, %v1148_v43  ;;  %v1153_v15 = vsel %vm252_vm6, %v1148_v43, %v1144_v44  ;;  %v1098_v43 = vadd.f32 %v1094_v51, %v1062_v49  ;;  %v7644_v51 = vld [vmem:[#allocation21_spill] sm:$0xff] }
 0x347   : > { %v1155_v46 = vsel %vm3693_vm8, %v4774_v30, %v1151_v47  ;;  %v1156_v45 = vsel %vm3962_vm11, %v4782_v38, %v1153_v15  ;;  %v1167_v30 = vmul.f32 %v4749_v41, %v4056_v14  ;;  %v1168_v38 = vmul.f32 %v4754_v20, %v4058_v25  ;;  %v7638_v47 = vld [vmem:[#allocation20_spill] sm:$0xff] }
 0x348   : > { %v1159_v16 = vmul.f32 %v1155_v46, %v4102_v19  ;;  %v1160_v56 = vmul.f32 %v1156_v45, %v4104_v59  ;;  %v1169_v46 = vmul.f32 %v7639_v48, %v4056_v14  ;;  %v7640_v45 = vld [vmem:[#allocation34_spill] sm:$0xff] }
 0x349   : > { %v7646_v48 = vld [vmem:[#allocation62_spill] sm:$0xff] }
 0x34a   : > { %v1163_v18 = vadd.f32 %v1159_v16, %v1096_v42  ;;  %v1164_v35 = vadd.f32 %v1160_v56, %v1097_v13 }
 0x34c   : > { %v1150_v4 = vpop.permute.xlu1 %1149  ;;  %v1171_v58 = vadd.f32 %v1167_v30, %v1163_v18  ;;  %v1172_v27 = vadd.f32 %v1168_v38, %v1164_v35 }
 0x34d   : > { %v1152_v32 = vsel %vm252_vm6, %v4926_v5, %v1150_v4  ;;  %v1154_v41 = vsel %vm252_vm6, %v1150_v4, %v4926_v5  ;;  %v1190_v20 = vpop.permute.xlu0 %1189 }
 0x34e   : > { %v1157_v44 = vsel %vm3693_vm8, %v7636_v34, %v1152_v32  ;;  %v1158_v29 = vsel %vm3962_vm11, %v7637_v11, %v1154_v41  ;;  %v1196_v7 = vsel %vm312_vm7, %v1190_v20, %v1194_v0  ;;  %v1198_v3 = vsel %vm312_vm7, %v1194_v0, %v1190_v20  ;;  %v5120_v20 = vpop.permute.xlu2 %1279 }
 0x34f   : > { %v1161_v5 = vmul.f32 %v1157_v44, %v4102_v19  ;;  %v1162_v52 = vmul.f32 %v1158_v29, %v4104_v59  ;;  %v1201_v15 = vsel %vm3717_vm9, %v7638_v47, %v1198_v3  ;;  %v1202_v40 = vsel %vm4002_vm12, %v4848_v37, %v1196_v7 }
 0x350   : > { %v1170_v0 = vmul.f32 %v7640_v45, %v4058_v25  ;;  %v1205_v9 = vmul.f32 %v1201_v15, %v7641_v33  ;;  %v1206_v30 = vmul.f32 %v1202_v40, %v7642_v10 }
 0x351   : > { %v1165_v42 = vadd.f32 %v1161_v5, %v1098_v43  ;;  %v1166_v13 = vadd.f32 %v1162_v52, %v1099_v22  ;;  %v7645_v22 = vld [vmem:[#allocation66_spill] sm:$0xff] }
 0x353   : > { %v1173_v16 = vadd.f32 %v1169_v46, %v1165_v42  ;;  %v1174_v56 = vadd.f32 %v1170_v0, %v1166_v13 }
 0x354   : > { %v1192_v38 = vpop.permute.xlu1 %1191 }
 0x355   : > { %v1209_v37 = vadd.f32 %v1205_v9, %v1173_v16  ;;  %v1210_v18 = vadd.f32 %v1206_v30, %v1174_v56  ;;  %v1195_v35 = vsel %vm312_vm7, %v4978_v31, %v1192_v38  ;;  %v1197_v49 = vsel %vm312_vm7, %v1192_v38, %v4978_v31  ;;  %v5109_v12 = vpop.permute.xlu0 %1237  ;;  %v7647_v56 = vld [vmem:[#allocation42_spill] sm:$0xff] }
 0x356   : > { %v1199_v4 = vsel %vm3717_vm9, %v7643_v8, %v1197_v49  ;;  %v1200_v21 = vsel %vm4002_vm12, %v7644_v51, %v1195_v35  ;;  %v1306_v29 = vpop.permute.xlu2 %1305  ;;  %v7648_v49 = vld [vmem:[#allocation61_spill] sm:$0xff] }
 0x357   : > { %1213 = vst [vmem:[%s4209_s24 + $0x50] sm:$0xff] %v1209_v37  ;;  %v1203_v32 = vmul.f32 %v1199_v4, %v7641_v33  ;;  %v1204_v41 = vmul.f32 %v1200_v21, %v7642_v10 }
 0x358   : > { %1214 = vst [vmem:[%s4209_s24 + $0x58] sm:$0xff] %v1210_v18 }
 0x359   : > { %v1207_v34 = vadd.f32 %v1203_v32, %v1171_v58  ;;  %v1208_v31 = vadd.f32 %v1204_v41, %v1172_v27  ;;  %v1260_v27 = vmul.f32 %v4831_v24, %v7562_v17 }
 0x35b   : > { %1211 = vst [vmem:[%s4209_s24 + $0x40] sm:$0xff] %v1207_v34 }
 0x35c   : > { %1212 = vst [vmem:[%s4209_s24 + $0x48] sm:$0xff] %v1208_v31  ;;  %v5125_v44 = vpop.permute.xlu1 %1239 }
 0x35d   : > { %v5127_v11 = vpop.permute.xlu0 %1243 }
 0x35e   : > { %v1248_v3 = vsel %vm252_vm6, %v5127_v11, %v5125_v44  ;;  %v1312_v52 = vpop.permute.xlu2 %1311 }
 0x35f   : > { %v1252_v58 = vsel %vm3962_vm11, %v4866_v50, %v1248_v3 }
 0x360   : > { %v1256_v5 = vmul.f32 %v1252_v58, %v7645_v22 }
 0x362   : > { %v1264_v24 = vadd.f32 %v1260_v27, %v1256_v5 }
 0x364   : > { %v5129_v7 = vpop.permute.xlu1 %1277 }
 0x365   : > { %v5135_v43 = vpop.permute.xlu0 %1281 }
 0x36c   : > { %v5143_v47 = vpop.permute.xlu1 %1283 }
 0x36d   : > { %v1286_v15 = vsel %vm312_vm7, %v5120_v20, %v5143_v47  ;;  %v1308_v40 = vpop.permute.xlu0 %1307 }
 0x36e   : > { %v1292_v46 = vsel %vm4002_vm12, %v7646_v48, %v1286_v15  ;;  %v1314_v50 = vsel %vm167_vm4, %v1308_v40, %v1312_v52  ;;  %v1316_v13 = vsel %vm167_vm4, %v1312_v52, %v1308_v40 }
 0x36f   : > { %v1296_v45 = vmul.f32 %v1292_v46, %v7569_v55  ;;  %v1324_v0 = vmul.f32 %v1314_v50, %v7593_v62  ;;  %v5164_v9 = vsel %vm167_vm4, %v7647_v56, %v1316_v13  ;;  %v1332_v38 = vrot.slane %v1314_v50, 1  ;;  %v5248_v13 = vld [vmem:[%s5224_s4 + $0x10] sm:$0xff]  ;;  %v5251_v56 = vld [vmem:[%s5224_s4 + $0x8] sm:$0xff] }
 0x370   : > { %v1331_v35 = vrot.slane %v5164_v9, 1  ;;  %v1367_v58 = vrot.slane %v5164_v9, 7  ;;  %v1368_v40 = vrot.slane %v1314_v50, 7  ;;  %7653 = vst [vmem:[#allocation65_spill] sm:$0xff] %v5248_v13 }
 0x371   : > { %v1300_v42 = vadd.f32 %v1296_v45, %v1264_v24  ;;  %7654 = vst [vmem:[#allocation64_spill] sm:$0xff] %v5251_v56 }
 0x373   : > { %v5159_v16 = vadd.f32 %v1324_v0, %v1300_v42  ;;  %v5245_v42 = vld [vmem:[%s5224_s4 + $0x18] sm:$0xff] }
 0x374   : > { %v1310_v30 = vpop.permute.xlu1 %1309  ;;  %7652 = vst [vmem:[#allocation43_spill] sm:$0xff] %v5245_v42 }
 0x375   : > { %v5168_v37 = vsel %vm167_vm4, %v1306_v29, %v1310_v30  ;;  %v1315_v18 = vsel %vm167_vm4, %v1310_v30, %v1306_v29  ;;  %v1245_v30 = vsel %vm252_vm6, %v5109_v12, %v5077_v63 }
 0x376   : > { %v1317_v8 = vsel %vm167_vm4, %v7648_v49, %v1315_v18  ;;  %v1330_v4 = vrot.slane %v5168_v37, 1  ;;  %v1366_v48 = vrot.slane %v5168_v37, 7  ;;  %v7655_v18 = vld [vmem:[#allocation17_spill] sm:$0xff]  ;;  %v1285_v49 = vsel %vm312_vm7, %v5129_v7, %v5135_v43 }
 0x377   : > { %v1329_v51 = vrot.slane %v1317_v8, 1  ;;  %v1365_v3 = vrot.slane %v1317_v8, 7 }
 0x378   : > { %v5179_v32 = vsel %vm231_vm0, %v1330_v4, %v1332_v38  ;;  %v1336_v27 = vsel %vm231_vm0, %v1332_v38, %v1330_v4  ;;  %v1372_v24 = vsel %vm291_vm1, %v1368_v40, %v1366_v48  ;;  %v5240_v0 = vsel %vm291_vm1, %v1366_v48, %v1368_v40  ;;  %v7659_v40 = vld [vmem:[#allocation58_spill] sm:$0xff] }
 0x379   : > { %1345 = vrot.lane.b32.xlu2 %v5179_v32, %s3235_s22  ;;  %v5185_v41 = vsel %vm231_vm0, %v1329_v51, %v1331_v35  ;;  %v1335_v34 = vsel %vm231_vm0, %v1331_v35, %v1329_v51  ;;  %v1371_v5 = vsel %vm291_vm1, %v1367_v58, %v1365_v3  ;;  %v5205_v52 = vsel %vm291_vm1, %v1365_v3, %v1367_v58  ;;  %v7656_v51 = vld [vmem:[#allocation15_spill] sm:$0xff] }
 0x37a   : > { %1341 = vrot.lane.b32.xlu0 %v5185_v41, %s3235_s22  ;;  %v5194_v29 = vsel %vm166_vm2, %v5164_v9, %v1335_v34  ;;  %v5211_v15 = vsel %vm166_vm2, %v1314_v50, %v1336_v27  ;;  %v5218_v46 = vsel %vm163_vm3, %v1317_v8, %v1371_v5  ;;  %v5227_v50 = vld [vmem:[%s5224_s4] sm:$0xff]  ;;  %v5232_v45 = vsel %vm163_vm3, %v5168_v37, %v1372_v24  ;;  %v7660_v24 = vld [vmem:[#allocation14_spill] sm:$0xff] }
 0x37b   : > { %1343 = vrot.lane.b32.xlu1 %v5194_v29, %s3235_s22  ;;  %7651 = vst [vmem:[#allocation45_spill] sm:$0xff] %v5227_v50  ;;  %v1247_v38 = vsel %vm252_vm6, %v5077_v63, %v5109_v12  ;;  %v1249_v35 = vsel %vm3693_vm8, %v7655_v18, %v1245_v30  ;;  %v1287_v4 = vsel %vm312_vm7, %v5135_v43, %v5129_v7  ;;  %v7657_v63 = vld [vmem:[#allocation32_spill] sm:$0xff]  ;;  %v7658_v27 = vld [vmem:[#allocation67_spill] sm:$0xff] }
 0x37c   : > { %v1250_v34 = vsel %vm3962_vm11, %v7656_v51, %v1247_v38  ;;  %v1257_v12 = vmul.f32 %v7657_v63, %v7623_v6  ;;  %v1253_v3 = vmul.f32 %v1249_v35, %v7628_v54  ;;  %v1246_v58 = vsel %vm252_vm6, %v5125_v44, %v5127_v11  ;;  %v7661_v44 = vld [vmem:[#allocation19_spill] sm:$0xff] }
 0x37d   : > { %v1289_v5 = vsel %vm3717_vm9, %v7658_v27, %v1287_v4  ;;  %v1290_v7 = vsel %vm4002_vm12, %v7659_v40, %v1285_v49  ;;  %v1254_v48 = vmul.f32 %v1250_v34, %v7645_v22  ;;  %v1258_v30 = vmul.f32 %v7660_v24, %v7562_v17  ;;  %v7662_v51 = vld [vmem:[#allocation59_spill] sm:$0xff] }
 0x37e   : > { %v1288_v38 = vsel %vm312_vm7, %v5143_v47, %v5120_v20  ;;  %v1251_v11 = vsel %vm3693_vm8, %v7661_v44, %v1246_v58  ;;  %v1293_v18 = vmul.f32 %v1289_v5, %v7630_v53  ;;  %v1294_v35 = vmul.f32 %v1290_v7, %v7569_v55  ;;  %v7663_v47 = vld [vmem:[#allocation13_spill] sm:$0xff] }
 0x37f   : > { %v1261_v49 = vadd.f32 %v1257_v12, %v1253_v3  ;;  %v1262_v4 = vadd.f32 %v1258_v30, %v1254_v48  ;;  %v1291_v34 = vsel %vm3717_vm9, %v7662_v51, %v1288_v38  ;;  %v1321_v63 = vmul.f32 %v1317_v8, %v7633_v60 }
 0x380   : > { %v1322_v27 = vmul.f32 %v5168_v37, %v7593_v62  ;;  %v1255_v20 = vmul.f32 %v1251_v11, %v7628_v54  ;;  %v1259_v58 = vmul.f32 %v7663_v47, %v7623_v6  ;;  %v1295_v8 = vmul.f32 %v1291_v34, %v7630_v53 }
 0x381   : > { %1379 = vrot.lane.b32.xlu2 %v5205_v52, %s3236_s23  ;;  %v1297_v5 = vadd.f32 %v1293_v18, %v1261_v49  ;;  %v1298_v24 = vadd.f32 %v1294_v35, %v1262_v4  ;;  %v1323_v51 = vmul.f32 %v5164_v9, %v7633_v60 }
 0x382   : > { %1347 = vrot.lane.b32.xlu0 %v5211_v15, %s3235_s22  ;;  %v1263_v35 = vadd.f32 %v1259_v58, %v1255_v20 }
 0x383   : > { %1377 = vrot.lane.b32.xlu1 %v5218_v46, %s3236_s23  ;;  %v1326_v30 = vadd.f32 %v1322_v27, %v1298_v24  ;;  %v1325_v38 = vadd.f32 %v1321_v63, %v1297_v5 }
 0x384   : > { %v1299_v4 = vadd.f32 %v1295_v8, %v1263_v35 }
 0x386   : > { %v1327_v47 = vadd.f32 %v1323_v51, %v1299_v4 }
 0x389   : > { %1416 = vrot.lane.b32.xlu2 %v5227_v50, %s3238_s21 }
 0x38a   : > { %1381 = vrot.lane.b32.xlu0 %v5232_v45, %s3236_s23 }
 0x38b   : > { %1383 = vrot.lane.b32.xlu1 %v5240_v0, %s3236_s23 }
 0x391   : > { %1422 = vrot.lane.b32.xlu2 %v5245_v42, %s3238_s21 }
 0x392   : > { %1418 = vrot.lane.b32.xlu0 %v5248_v13, %s3238_s21 }
 0x393   : > { %1420 = vrot.lane.b32.xlu1 %v5251_v56, %s3238_s21 }
 0x3d3   : > { %v1346_v43 = vpop.permute.xlu2 %1345 }
 0x3db   : > { %v1380_v18 = vpop.permute.xlu2 %1379 }
 0x3ec   : > { %v1342_v40 = vpop.permute.xlu0 %1341 }
 0x3ed   : > { %v1349_v12 = vsel %vm252_vm6, %v1342_v40, %v1346_v43  ;;  %v1351_v3 = vsel %vm252_vm6, %v1346_v43, %v1342_v40  ;;  %v1344_v7 = vpop.permute.xlu1 %1343  ;;  %v1417_v40 = vpop.permute.xlu2 %1416 }
 0x3ee   : > { %v1353_v37 = vsel %vm3693_vm8, %v5185_v41, %v1349_v12  ;;  %v1354_v48 = vsel %vm3962_vm11, %v5179_v32, %v1351_v3 }
 0x3ef   : > { %v1357_v44 = vmul.f32 %v1353_v37, %v4072_v57  ;;  %v1358_v11 = vmul.f32 %v1354_v48, %v7634_v36 }
 0x3f1   : > { %v1361_v43 = vadd.f32 %v1357_v44, %v1325_v38  ;;  %v1362_v49 = vadd.f32 %v1358_v11, %v1326_v30 }
 0x3f4   : > { %v1348_v34 = vpop.permute.xlu0 %1347 }
 0x3f5   : > { %v1350_v41 = vsel %vm252_vm6, %v1344_v7, %v1348_v34  ;;  %v1352_v32 = vsel %vm252_vm6, %v1348_v34, %v1344_v7  ;;  %v1378_v63 = vpop.permute.xlu1 %1377  ;;  %v1423_v51 = vpop.permute.xlu2 %1422 }
 0x3f6   : > { %v1355_v27 = vsel %vm3693_vm8, %v5194_v29, %v1350_v41  ;;  %v1356_v20 = vsel %vm3962_vm11, %v5211_v15, %v1352_v32 }
 0x3f7   : > { %v1359_v58 = vmul.f32 %v1355_v27, %v4072_v57  ;;  %v1360_v9 = vmul.f32 %v1356_v20, %v7634_v36 }
 0x3f9   : > { %v1363_v5 = vadd.f32 %v1359_v58, %v1327_v47  ;;  %v1364_v24 = vadd.f32 %v1360_v9, %v5159_v16 }
 0x3fc   : > { %v1382_v12 = vpop.permute.xlu0 %1381 }
 0x3fd   : > { %v1385_v3 = vsel %vm312_vm7, %v1378_v63, %v1382_v12  ;;  %v1387_v29 = vsel %vm312_vm7, %v1382_v12, %v1378_v63  ;;  %v1384_v7 = vpop.permute.xlu1 %1383 }
 0x3fe   : > { %v1389_v15 = vsel %vm3717_vm9, %v5218_v46, %v1387_v29  ;;  %v1390_v8 = vsel %vm4002_vm12, %v5232_v45, %v1385_v3  ;;  %v1386_v37 = vsel %vm312_vm7, %v1380_v18, %v1384_v7  ;;  %v1388_v16 = vsel %vm312_vm7, %v1384_v7, %v1380_v18 }
 0x3ff   : > { %v1393_v48 = vmul.f32 %v1389_v15, %v4098_v26  ;;  %v1394_v30 = vmul.f32 %v1390_v8, %v4100_v2  ;;  %v1391_v38 = vsel %vm3717_vm9, %v5205_v52, %v1388_v16  ;;  %v1392_v46 = vsel %vm4002_vm12, %v5240_v0, %v1386_v37 }
 0x400   : > { %v1395_v45 = vmul.f32 %v1391_v38, %v4098_v26  ;;  %v1396_v44 = vmul.f32 %v1392_v46, %v4100_v2  ;;  %v5451_v38 = vld [vmem:[%s1521_s27] sm:$0xff]  ;;  %v5453_v46 = vld [vmem:[%s1521_s27 + $0x10] sm:$0xff] }
 0x401   : > { %v5367_v11 = vadd.f32 %v1393_v48, %v1361_v43  ;;  %v5369_v35 = vadd.f32 %v1394_v30, %v1362_v49 }
 0x402   : > { %v5371_v18 = vadd.f32 %v1395_v45, %v1363_v5  ;;  %v5373_v4 = vadd.f32 %v1396_v44, %v1364_v24  ;;  %v1526_v44 = vrot.slane %v5451_v38, 1 }
 0x404   : > { %v1419_v34 = vpop.permute.xlu0 %1418 }
 0x405   : > { %v1421_v52 = vpop.permute.xlu1 %1420  ;;  %v5377_v41 = vsel %vm491_vm5, %v1419_v34, %v1423_v51  ;;  %v1427_v0 = vsel %vm491_vm5, %v1423_v51, %v1419_v34  ;;  %v1528_v51 = vrot.slane %v5453_v46, 1 }
 0x406   : > { %v5383_v43 = vsel %vm491_vm5, %v1417_v40, %v1421_v52  ;;  %v1426_v49 = vsel %vm491_vm5, %v1421_v52, %v1417_v40  ;;  %v1434_v32 = vrot.slane %v5377_v41, 1  ;;  %v5397_v47 = vsel %vm170_vm10, %v5245_v42, %v1427_v0  ;;  %v5466_v52 = vld [vmem:[%s1521_s27 + $0x8] sm:$0xff]  ;;  %v5468_v0 = vld [vmem:[%s1521_s27 + $0x18] sm:$0xff]  ;;  %s1822_s27 = scalar_lea.vmem [#allocation2], %s3000_s26 }
 0x407   : > { %v5391_v27 = vsel %vm170_vm10, %v5251_v56, %v1426_v49  ;;  %v1432_v20 = vrot.slane %v5383_v43, 1  ;;  %v1435_v40 = vrot.slane %v5397_v47, 1  ;;  %v1476_v12 = vrot.slane %v5383_v43, 7 }
 0x408   : > { %v1433_v9 = vrot.slane %v5391_v27, 1  ;;  %v1478_v3 = vrot.slane %v5377_v41, 7  ;;  %v1477_v37 = vrot.slane %v5391_v27, 7  ;;  %v1479_v16 = vrot.slane %v5397_v47, 7 }
 0x409   : > { %v5401_v58 = vsel %vm231_vm0, %v1432_v20, %v1434_v32  ;;  %v1438_v5 = vsel %vm231_vm0, %v1434_v32, %v1432_v20  ;;  %v5472_v49 = vsel %vm231_vm0, %v1526_v44, %v1528_v51  ;;  %v1532_v20 = vsel %vm231_vm0, %v1528_v51, %v1526_v44 }
 0x40a   : > { %1444 = vrot.lane.b32.xlu0 %v5401_v58, %s3235_s22  ;;  %v5413_v24 = vsel %vm166_vm2, %v5377_v41, %v1438_v5  ;;  %v5419_v29 = vsel %vm231_vm0, %v1433_v9, %v1435_v40  ;;  %v1439_v7 = vsel %vm231_vm0, %v1435_v40, %v1433_v9  ;;  %v1482_v15 = vsel %vm291_vm1, %v1478_v3, %v1476_v12 }
 0x40b   : > { %1446 = vrot.lane.b32.xlu1 %v5413_v24, %s3235_s22  ;;  %1448 = vrot.lane.b32.xlu2 %v5419_v29, %s3235_s22  ;;  %v5432_v8 = vsel %vm166_vm2, %v5397_v47, %v1439_v7  ;;  %v5441_v48 = vsel %vm163_vm3, %v5383_v43, %v1482_v15  ;;  %v5445_v30 = vsel %vm291_vm1, %v1476_v12, %v1478_v3  ;;  %v1527_v9 = vrot.slane %v5466_v52, 1 }
 0x40c   : > { %v1483_v45 = vsel %vm291_vm1, %v1479_v16, %v1477_v37  ;;  %v5476_v32 = vsel %vm291_vm1, %v1477_v37, %v1479_v16  ;;  %v1529_v40 = vrot.slane %v5468_v0, 1  ;;  %v5489_v5 = vsel %vm166_vm2, %v5453_v46, %v1532_v20 }
 0x40d   : > { %v5462_v34 = vsel %vm163_vm3, %v5391_v27, %v1483_v45  ;;  %v1566_v3 = vrot.slane %v5451_v38, 7  ;;  %v1568_v7 = vrot.slane %v5453_v46, 7  ;;  %v1567_v45 = vrot.slane %v5466_v52, 7 }
 0x40e   : > { %v1533_v12 = vsel %vm231_vm0, %v1529_v40, %v1527_v9  ;;  %v5497_v15 = vsel %vm231_vm0, %v1527_v9, %v1529_v40  ;;  %v1569_v44 = vrot.slane %v5468_v0, 7  ;;  %v1468_v63 = vmul.f32 %v5383_v43, %v4056_v14 }
 0x40f   : > { %v5504_v37 = vsel %vm166_vm2, %v5468_v0, %v1533_v12  ;;  %v1572_v16 = vsel %vm291_vm1, %v1568_v7, %v1566_v3  ;;  %v5523_v9 = vsel %vm291_vm1, %v1566_v3, %v1568_v7  ;;  %v7665_v3 = vld [vmem:[#allocation25_spill] sm:$0xff] }
 0x410   : > { %v5517_v51 = vsel %vm163_vm3, %v5451_v38, %v1572_v16  ;;  %v1573_v20 = vsel %vm291_vm1, %v1569_v44, %v1567_v45  ;;  %v5538_v12 = vsel %vm291_vm1, %v1567_v45, %v1569_v44  ;;  %v7666_v7 = vld [vmem:[#allocation29_spill] sm:$0xff]  ;;  %v7667_v16 = vld [vmem:[#allocation30_spill] sm:$0xff] }
 0x411   : > { %v5530_v40 = vsel %vm163_vm3, %v5466_v52, %v1573_v20  ;;  %v7668_v20 = vld [vmem:[#allocation18_spill] sm:$0xff] }
 0x412   : > { %1450 = vrot.lane.b32.xlu0 %v5432_v8, %s3235_s22 }
 0x413   : > { %1488 = vrot.lane.b32.xlu1 %v5441_v48, %s3236_s23  ;;  %1490 = vrot.lane.b32.xlu2 %v5445_v30, %s3236_s23 }
 0x41a   : > { %1492 = vrot.lane.b32.xlu0 %v5462_v34, %s3236_s23 }
 0x41b   : > { %1494 = vrot.lane.b32.xlu1 %v5476_v32, %s3236_s23  ;;  %1538 = vrot.lane.b32.xlu2 %v5472_v49, %s3235_s22 }
 0x422   : > { %1540 = vrot.lane.b32.xlu0 %v5489_v5, %s3235_s22 }
 0x423   : > { %1542 = vrot.lane.b32.xlu1 %v5497_v15, %s3235_s22  ;;  %1544 = vrot.lane.b32.xlu2 %v5504_v37, %s3235_s22 }
 0x42a   : > { %1578 = vrot.lane.b32.xlu0 %v5517_v51, %s3236_s23 }
 0x42b   : > { %1580 = vrot.lane.b32.xlu1 %v5523_v9, %s3236_s23  ;;  %1582 = vrot.lane.b32.xlu2 %v5530_v40, %s3236_s23 }
 0x432   : > { %1584 = vrot.lane.b32.xlu0 %v5538_v12, %s3236_s23 }
 0x433   : > { %1606 = vrot.lane.b32.xlu1 %v7665_v3, %s3237_s30  ;;  %1608 = vrot.lane.b32.xlu2 %v7666_v7, %s3237_s30 }
 0x43a   : > { %1610 = vrot.lane.b32.xlu0 %v7667_v16, %s3237_s30 }
 0x43b   : > { %1612 = vrot.lane.b32.xlu1 %v7668_v20, %s3237_s30 }
 0x465   : > { %v1449_v42 = vpop.permute.xlu2 %1448 }
 0x46d   : > { %v1491_v13 = vpop.permute.xlu2 %1490 }
 0x47c   : > { %v1445_v56 = vpop.permute.xlu0 %1444 }
 0x47d   : > { %v1452_v45 = vsel %vm252_vm6, %v1445_v56, %v1449_v42  ;;  %v1454_v44 = vsel %vm252_vm6, %v1449_v42, %v1445_v56  ;;  %v1447_v16 = vpop.permute.xlu1 %1446  ;;  %v1469_v42 = vmul.f32 %v5391_v27, %v4058_v25 }
 0x47e   : > { %v1456_v3 = vsel %vm3693_vm8, %v5401_v58, %v1452_v45  ;;  %v1457_v7 = vsel %vm3962_vm11, %v5419_v29, %v1454_v44 }
 0x47f   : > { %v1460_v20 = vmul.f32 %v1456_v3, %v4102_v19  ;;  %v1461_v50 = vmul.f32 %v1457_v7, %v4104_v59  ;;  %v1539_v3 = vpop.permute.xlu2 %1538 }
 0x481   : > { %v1464_v56 = vadd.f32 %v1460_v20, %v5367_v11  ;;  %v1465_v2 = vadd.f32 %v1461_v50, %v5369_v35  ;;  %v1470_v35 = vmul.f32 %v5377_v41, %v4056_v14 }
 0x483   : > { %v1472_v58 = vadd.f32 %v1468_v63, %v1464_v56  ;;  %v1473_v45 = vadd.f32 %v1469_v42, %v1465_v2 }
 0x484   : > { %v1451_v26 = vpop.permute.xlu0 %1450 }
 0x485   : > { %v1453_v29 = vsel %vm252_vm6, %v1447_v16, %v1451_v26  ;;  %v1455_v44 = vsel %vm252_vm6, %v1451_v26, %v1447_v16  ;;  %v1489_v11 = vpop.permute.xlu1 %1488  ;;  %v1471_v26 = vmul.f32 %v5397_v47, %v4058_v25 }
 0x486   : > { %v1458_v43 = vsel %vm3693_vm8, %v5413_v24, %v1453_v29  ;;  %v1459_v27 = vsel %vm3962_vm11, %v5432_v8, %v1455_v44 }
 0x487   : > { %v1462_v50 = vmul.f32 %v1458_v43, %v4102_v19  ;;  %v1463_v2 = vmul.f32 %v1459_v27, %v4104_v59  ;;  %v1545_v43 = vpop.permute.xlu2 %1544 }
 0x489   : > { %v1466_v63 = vadd.f32 %v1462_v50, %v5371_v18  ;;  %v1467_v24 = vadd.f32 %v1463_v2, %v5373_v4 }
 0x48b   : > { %v1474_v7 = vadd.f32 %v1470_v35, %v1466_v63  ;;  %v1475_v16 = vadd.f32 %v1471_v26, %v1467_v24 }
 0x48c   : > { %v1493_v20 = vpop.permute.xlu0 %1492 }
 0x48d   : > { %v1496_v8 = vsel %vm312_vm7, %v1489_v11, %v1493_v20  ;;  %v1498_v42 = vsel %vm312_vm7, %v1493_v20, %v1489_v11  ;;  %v1495_v4 = vpop.permute.xlu1 %1494 }
 0x48e   : > { %v1500_v41 = vsel %vm3717_vm9, %v5441_v48, %v1498_v42  ;;  %v1501_v18 = vsel %vm4002_vm12, %v5462_v34, %v1496_v8  ;;  %v1497_v29 = vsel %vm312_vm7, %v1491_v13, %v1495_v4  ;;  %v1499_v44 = vsel %vm312_vm7, %v1495_v4, %v1491_v13 }
 0x48f   : > { %v1504_v47 = vmul.f32 %v1500_v41, %v7641_v33  ;;  %v1505_v56 = vmul.f32 %v1501_v18, %v7642_v10  ;;  %v1502_v48 = vsel %vm3717_vm9, %v5445_v30, %v1499_v44  ;;  %v1503_v34 = vsel %vm4002_vm12, %v5476_v32, %v1497_v29 }
 0x490   : > { %v1506_v50 = vmul.f32 %v1502_v48, %v7641_v33  ;;  %v1507_v2 = vmul.f32 %v1503_v34, %v7642_v10  ;;  %v1558_v42 = vmul.f32 %v5451_v38, %v7623_v6  ;;  %v1559_v41 = vmul.f32 %v5466_v52, %v7562_v17 }
 0x491   : > { %v1508_v27 = vadd.f32 %v1504_v47, %v1472_v58  ;;  %v1509_v11 = vadd.f32 %v1505_v56, %v1473_v45 }
 0x492   : > { %v1510_v35 = vadd.f32 %v1506_v50, %v1474_v7  ;;  %v1511_v26 = vadd.f32 %v1507_v2, %v1475_v16  ;;  %v1583_v16 = vpop.permute.xlu2 %1582 }
 0x493   : > { %1512 = vst [vmem:[%s4209_s24 + $0x60] sm:$0xff] %v1508_v27  ;;  %v1560_v27 = vmul.f32 %v5453_v46, %v7623_v6 }
 0x494   : > { %1513 = vst [vmem:[%s4209_s24 + $0x68] sm:$0xff] %v1509_v11  ;;  %v1541_v13 = vpop.permute.xlu0 %1540  ;;  %v1561_v11 = vmul.f32 %v5468_v0, %v7562_v17 }
 0x495   : > { %1514 = vst [vmem:[%s4209_s24 + $0x70] sm:$0xff] %v1510_v35  ;;  %v1547_v30 = vsel %vm252_vm6, %v1541_v13, %v1545_v43  ;;  %v1549_v63 = vsel %vm252_vm6, %v1545_v43, %v1541_v13  ;;  %v1543_v32 = vpop.permute.xlu1 %1542 }
 0x496   : > { %1515 = vst [vmem:[%s4209_s24 + $0x78] sm:$0xff] %v1511_v26  ;;  %v1546_v58 = vsel %vm252_vm6, %v1539_v3, %v1543_v32  ;;  %v1548_v45 = vsel %vm252_vm6, %v1543_v32, %v1539_v3  ;;  %v1552_v44 = vsel %vm3693_vm8, %v5489_v5, %v1547_v30 }
 0x497   : > { %v1550_v24 = vsel %vm3693_vm8, %v5472_v49, %v1546_v58  ;;  %v1551_v7 = vsel %vm3962_vm11, %v5497_v15, %v1548_v45 }
 0x498   : > { %v1554_v20 = vmul.f32 %v1550_v24, %v7628_v54  ;;  %v1555_v8 = vmul.f32 %v1551_v7, %v7645_v22  ;;  %v3094_v24 = vld [vmem:[%s4694_s16] sm:$0xff] }
 0x49a   : > { %v1562_v38 = vadd.f32 %v1558_v42, %v1554_v20  ;;  %v1563_v56 = vadd.f32 %v1559_v41, %v1555_v8  ;;  %v1609_v45 = vpop.permute.xlu2 %1608 }
 0x49c   : > { %v1579_v3 = vpop.permute.xlu0 %1578 }
 0x49d   : > { %v1586_v18 = vsel %vm312_vm7, %v1579_v3, %v1583_v16  ;;  %v1588_v49 = vsel %vm312_vm7, %v1583_v16, %v1579_v3  ;;  %v1581_v47 = vpop.permute.xlu1 %1580 }
 0x49e   : > { %v1590_v15 = vsel %vm3717_vm9, %v5517_v51, %v1588_v49  ;;  %v1591_v4 = vsel %vm4002_vm12, %v5530_v40, %v1586_v18  ;;  %v1553_v51 = vsel %vm3962_vm11, %v5504_v37, %v1549_v63  ;;  %v1556_v40 = vmul.f32 %v1552_v44, %v7628_v54  ;;  %v3095_v49 = vld [vmem:[%s4694_s16 + $0x10] sm:$0xff]  ;;  %s2922_s16 = sshll.u32 %s7738_s7, 4 }
 0x49f   : > { %v1594_v52 = vmul.f32 %v1590_v15, %v7630_v53  ;;  %v1595_v29 = vmul.f32 %v1591_v4, %v7569_v55  ;;  %v1557_v43 = vmul.f32 %v1553_v51, %v7645_v22  ;;  %s1708_s17 = sshra.s32 %s2922_s16, 3 }
 0x4a0   : > { %v1564_v35 = vadd.f32 %v1560_v27, %v1556_v40  ;;  %s2997_s29 = sshll.u32 %s1708_s17, 4 }
 0x4a1   : > { %v1598_v48 = vadd.f32 %v1594_v52, %v1562_v38  ;;  %v1599_v34 = vadd.f32 %v1595_v29, %v1563_v56  ;;  %v1565_v26 = vadd.f32 %v1561_v11, %v1557_v43  ;;  %s5724_s3 = scalar_lea.vmem [#allocation2], %s2997_s29  ;;  %s3005_s29 = sadd.s32 96, %s3329_s6 }
 0x4a2   : > { %s2119_s5 = sshra.s32 %s3005_s29, 3 }
 0x4a3   : > { %s3006_s25 = sshll.u32 %s2119_s5, 4 }
 0x4a4   : > { %v1585_v50 = vpop.permute.xlu0 %1584  ;;  %s2123_s26 = scalar_lea.vmem [#allocation2], %s3006_s25  ;;  %s3011_s25 = sadd.s32 112, %s3329_s6 }
 0x4a5   : > { %v1587_v5 = vsel %vm312_vm7, %v1581_v47, %v1585_v50  ;;  %v1589_v2 = vsel %vm312_vm7, %v1585_v50, %v1581_v47  ;;  %v1607_v0 = vpop.permute.xlu1 %1606  ;;  %s3017_s6 = sshll.u32 %s3276_s13, 8  ;;  %s2734_s13 = sshll.u32 %s4209_s24, 4  ;;  %s2735_s13 = int_to_ptr.vmem [resolvable:$true] %s2734_s13 }
 0x4a6   : > { %v1592_v37 = vsel %vm3717_vm9, %v5523_v9, %v1589_v2  ;;  %v1593_v46 = vsel %vm4002_vm12, %v5538_v12, %v1587_v5 }
 0x4a7   : > { %v1596_v13 = vmul.f32 %v1592_v37, %v7630_v53  ;;  %v1597_v30 = vmul.f32 %v1593_v46, %v7569_v55 }
 0x4a9   : > { %v1600_v63 = vadd.f32 %v1596_v13, %v1564_v35  ;;  %v1601_v32 = vadd.f32 %v1597_v30, %v1565_v26  ;;  %v5727_v13 = vld [vmem:[%s5724_s3] sm:$0xff] }
 0x4aa   : > { %7669 = vst [vmem:[#allocation60_spill] sm:$0xff] %v5727_v13 }
 0x4ac   : > { %v1611_v58 = vpop.permute.xlu0 %1610 }
 0x4ad   : > { %v1614_v9 = vsel %vm167_vm4, %v1607_v0, %v1611_v58  ;;  %v1616_v12 = vsel %vm167_vm4, %v1611_v58, %v1607_v0  ;;  %v1613_v8 = vpop.permute.xlu1 %1612  ;;  %v5741_v58 = vld [vmem:[%s5724_s3 + $0x10] sm:$0xff] }
 0x4ae   : > { %v1618_v7 = vsel %vm167_vm4, %v3094_v24, %v1616_v12  ;;  %v1623_v16 = vmul.f32 %v1614_v9, %v7593_v62  ;;  %v1631_v20 = vrot.slane %v1614_v9, 1  ;;  %v1615_v42 = vsel %vm167_vm4, %v1609_v45, %v1613_v8  ;;  %7671 = vst [vmem:[#allocation46_spill] sm:$0xff] %v5741_v58 }
 0x4af   : > { %v1617_v41 = vsel %vm167_vm4, %v1613_v8, %v1609_v45  ;;  %v1630_v3 = vrot.slane %v1618_v7, 1  ;;  %v1625_v4 = vmul.f32 %v1615_v42, %v7593_v62  ;;  %v1633_v47 = vrot.slane %v1615_v42, 1  ;;  %v5744_v45 = vld [vmem:[%s5724_s3 + $0x8] sm:$0xff] }
 0x4b0   : > { %v5688_v18 = vadd.f32 %v1623_v16, %v1599_v34  ;;  %v1620_v15 = vsel %vm167_vm4, %v3095_v49, %v1617_v41  ;;  %v1622_v38 = vmul.f32 %v1618_v7, %v7633_v60  ;;  %v1666_v43 = vrot.slane %v1618_v7, 7  ;;  %7672 = vst [vmem:[#allocation48_spill] sm:$0xff] %v5744_v45 }
 0x4b1   : > { %v1624_v56 = vmul.f32 %v1620_v15, %v7633_v60  ;;  %v1632_v52 = vrot.slane %v1620_v15, 1  ;;  %v1629_v29 = vadd.f32 %v1625_v4, %v1601_v32  ;;  %v1635_v44 = vsel %vm231_vm0, %v1631_v20, %v1633_v47  ;;  %v5738_v32 = vld [vmem:[%s5724_s3 + $0x18] sm:$0xff] }
 0x4b2   : > { %1646 = vrot.lane.b32.xlu1 %v1635_v44, %s3235_s22  ;;  %v1668_v27 = vrot.slane %v1620_v15, 7  ;;  %v1626_v11 = vadd.f32 %v1622_v38, %v1598_v48  ;;  %v1637_v5 = vsel %vm231_vm0, %v1633_v47, %v1631_v20  ;;  %v1667_v0 = vrot.slane %v1614_v9, 7  ;;  %7670 = vst [vmem:[#allocation47_spill] sm:$0xff] %v5738_v32 }
 0x4b3   : > { %v1634_v51 = vsel %vm231_vm0, %v1630_v3, %v1632_v52  ;;  %v1636_v34 = vsel %vm231_vm0, %v1632_v52, %v1630_v3  ;;  %v1628_v50 = vadd.f32 %v1624_v56, %v1600_v63  ;;  %v1641_v46 = vsel %vm166_vm2, %v1615_v42, %v1637_v5 }
 0x4b4   : > { %1642 = vrot.lane.b32.xlu2 %v1634_v51, %s3235_s22  ;;  %v1640_v40 = vsel %vm166_vm2, %v1620_v15, %v1636_v34  ;;  %v1672_v2 = vsel %vm291_vm1, %v1668_v27, %v1666_v43  ;;  %v1670_v37 = vsel %vm291_vm1, %v1666_v43, %v1668_v27  ;;  %v1669_v35 = vrot.slane %v1615_v42, 7 }
 0x4b5   : > { %1644 = vrot.lane.b32.xlu0 %v1640_v40, %s3235_s22  ;;  %v1674_v48 = vsel %vm163_vm3, %v1618_v7, %v1672_v2 }
 0x4b6   : > { %v1673_v26 = vsel %vm291_vm1, %v1669_v35, %v1667_v0  ;;  %v1671_v63 = vsel %vm291_vm1, %v1667_v0, %v1669_v35  ;;  %v7674_v35 = vld [vmem:[#allocation24_spill] sm:$0xff] }
 0x4b7   : > { %v1675_v30 = vsel %vm163_vm3, %v1614_v9, %v1673_v26 }
 0x4ba   : > { %1680 = vrot.lane.b32.xlu1 %v1670_v37, %s3236_s23 }
 0x4bc   : > { %1648 = vrot.lane.b32.xlu2 %v1641_v46, %s3235_s22 }
 0x4bd   : > { %1678 = vrot.lane.b32.xlu0 %v1674_v48, %s3236_s23 }
 0x4c2   : > { %1717 = vrot.lane.b32.xlu1 %v5727_v13, %s3238_s21 }
 0x4c4   : > { %1682 = vrot.lane.b32.xlu2 %v1675_v30, %s3236_s23 }
 0x4c5   : > { %1684 = vrot.lane.b32.xlu0 %v1671_v63, %s3236_s23 }
 0x4ca   : > { %1723 = vrot.lane.b32.xlu1 %v5738_v32, %s3238_s21 }
 0x4cc   : > { %1719 = vrot.lane.b32.xlu2 %v5741_v58, %s3238_s21 }
 0x4cd   : > { %1721 = vrot.lane.b32.xlu0 %v5744_v45, %s3238_s21 }
 0x50e   : > { %v1643_v9 = vpop.permute.xlu2 %1642 }
 0x516   : > { %v1649_v12 = vpop.permute.xlu2 %1648 }
 0x51e   : > { %v1683_v27 = vpop.permute.xlu2 %1682 }
 0x524   : > { %v1647_v24 = vpop.permute.xlu1 %1646 }
 0x525   : > { %v1650_v7 = vsel %vm252_vm6, %v1643_v9, %v1647_v24  ;;  %v1652_v16 = vsel %vm252_vm6, %v1647_v24, %v1643_v9 }
 0x526   : > { %v1654_v20 = vsel %vm3693_vm8, %v1634_v51, %v1650_v7  ;;  %v1655_v8 = vsel %vm3962_vm11, %v1635_v44, %v1652_v16 }
 0x527   : > { %v1645_v42 = vpop.permute.xlu0 %1644  ;;  %v1658_v41 = vmul.f32 %v1654_v20, %v4072_v57  ;;  %v1659_v3 = vmul.f32 %v1655_v8, %v7634_v36  ;;  %v1720_v8 = vpop.permute.xlu2 %1719 }
 0x528   : > { %v1651_v49 = vsel %vm252_vm6, %v1645_v42, %v1649_v12  ;;  %v1653_v15 = vsel %vm252_vm6, %v1649_v12, %v1645_v42 }
 0x529   : > { %v1656_v4 = vsel %vm3693_vm8, %v1640_v40, %v1651_v49  ;;  %v1657_v47 = vsel %vm3962_vm11, %v1641_v46, %v1653_v15  ;;  %v1662_v38 = vadd.f32 %v1658_v41, %v1626_v11  ;;  %v1663_v56 = vadd.f32 %v1659_v3, %v5688_v18  ;;  %v7673_v46 = vld [vmem:[#allocation31_spill] sm:$0xff] }
 0x52a   : > { %v1660_v52 = vmul.f32 %v1656_v4, %v4072_v57  ;;  %v1661_v44 = vmul.f32 %v1657_v47, %v7634_v36 }
 0x52c   : > { %v1664_v51 = vadd.f32 %v1660_v52, %v1628_v50  ;;  %v1665_v34 = vadd.f32 %v1661_v44, %v1629_v29  ;;  %v1681_v43 = vpop.permute.xlu1 %1680 }
 0x52f   : > { %v1679_v5 = vpop.permute.xlu0 %1678 }
 0x530   : > { %v1686_v2 = vsel %vm312_vm7, %v1679_v5, %v1683_v27  ;;  %v1688_v40 = vsel %vm312_vm7, %v1683_v27, %v1679_v5 }
 0x531   : > { %v1690_v11 = vsel %vm3717_vm9, %v1674_v48, %v1688_v40  ;;  %v1691_v18 = vsel %vm4002_vm12, %v1675_v30, %v1686_v2 }
 0x532   : > { %v1694_v0 = vmul.f32 %v1690_v11, %v7673_v46  ;;  %v1695_v50 = vmul.f32 %v1691_v18, %v7674_v35 }
 0x534   : > { %v5783_v29 = vadd.f32 %v1694_v0, %v1662_v38  ;;  %v5785_v26 = vadd.f32 %v1695_v50, %v1663_v56  ;;  %v1718_v9 = vpop.permute.xlu1 %1717 }
 0x537   : > { %v1685_v12 = vpop.permute.xlu0 %1684 }
 0x538   : > { %v1687_v24 = vsel %vm312_vm7, %v1681_v43, %v1685_v12  ;;  %v1689_v48 = vsel %vm312_vm7, %v1685_v12, %v1681_v43  ;;  %v5862_v12 = vld [vmem:[%s1822_s27 + $0x10] sm:$0xff] }
 0x539   : > { %v1692_v30 = vsel %vm3717_vm9, %v1670_v37, %v1689_v48  ;;  %v1693_v7 = vsel %vm4002_vm12, %v1671_v63, %v1687_v24 }
 0x53a   : > { %v1696_v16 = vmul.f32 %v1692_v30, %v7673_v46  ;;  %v1697_v20 = vmul.f32 %v1693_v7, %v7674_v35 }
 0x53c   : > { %v5797_v42 = vadd.f32 %v1696_v16, %v1664_v51  ;;  %v5799_v41 = vadd.f32 %v1697_v20, %v1665_v34  ;;  %v1724_v3 = vpop.permute.xlu1 %1723  ;;  %v1829_v20 = vrot.slane %v5862_v12, 1 }
 0x53d   : > { %v5803_v49 = vsel %vm491_vm5, %v1720_v8, %v1724_v3  ;;  %v1728_v37 = vsel %vm491_vm5, %v1724_v3, %v1720_v8  ;;  %v5885_v3 = vld [vmem:[%s1822_s27 + $0x8] sm:$0xff] }
 0x53e   : > { %v5810_v4 = vsel %vm170_vm10, %v5738_v32, %v1728_v37  ;;  %v1735_v47 = vrot.slane %v5803_v49, 1  ;;  %v1779_v11 = vrot.slane %v5803_v49, 7  ;;  %v5887_v37 = vld [vmem:[%s1822_s27 + $0x18] sm:$0xff] }
 0x53f   : > { %v1722_v15 = vpop.permute.xlu0 %1721  ;;  %v1736_v34 = vrot.slane %v5810_v4, 1  ;;  %v1780_v48 = vrot.slane %v5810_v4, 7 }
 0x540   : > { %v5816_v38 = vsel %vm491_vm5, %v1718_v9, %v1722_v15  ;;  %v1727_v56 = vsel %vm491_vm5, %v1722_v15, %v1718_v9  ;;  %v5860_v9 = vld [vmem:[%s1822_s27] sm:$0xff]  ;;  %s6508_s27 = sadd.s32 7, %s3333_s14 }
 0x541   : > { %v5823_v52 = vsel %vm170_vm10, %v5744_v45, %v1727_v56  ;;  %v1733_v44 = vrot.slane %v5816_v38, 1  ;;  %v1777_v40 = vrot.slane %v5816_v38, 7  ;;  %v1827_v16 = vrot.slane %v5860_v9, 1  ;;  %p2305_p3 = scmp.gt.s32.totalorder %s6508_s27, 0  ;;  %p2939_p4 = scmp.lt.s32.totalorder %s6508_s27, 15 }
 0x542   : > { %v1734_v51 = vrot.slane %v5823_v52, 1  ;;  %v1778_v24 = vrot.slane %v5823_v52, 7  ;;  %v1828_v56 = vrot.slane %v5885_v3, 1 }
 0x543   : > { %v5830_v43 = vsel %vm231_vm0, %v1733_v44, %v1735_v47  ;;  %v1739_v27 = vsel %vm231_vm0, %v1735_v47, %v1733_v44  ;;  %v1783_v0 = vsel %vm291_vm1, %v1779_v11, %v1777_v40  ;;  %v5870_v30 = vsel %vm291_vm1, %v1777_v40, %v1779_v11 }
 0x544   : > { %1745 = vrot.lane.b32.xlu2 %v5830_v43, %s3235_s22  ;;  %v5838_v5 = vsel %vm231_vm0, %v1734_v51, %v1736_v34  ;;  %v5843_v2 = vsel %vm166_vm2, %v5803_v49, %v1739_v27  ;;  %v1740_v18 = vsel %vm231_vm0, %v1736_v34, %v1734_v51  ;;  %v5875_v7 = vsel %vm163_vm3, %v5816_v38, %v1783_v0 }
 0x545   : > { %1749 = vrot.lane.b32.xlu1 %v5838_v5, %s3235_s22  ;;  %1747 = vrot.lane.b32.xlu0 %v5843_v2, %s3235_s22  ;;  %v5858_v50 = vsel %vm166_vm2, %v5810_v4, %v1740_v18  ;;  %v1784_v8 = vsel %vm291_vm1, %v1780_v48, %v1778_v24  ;;  %v5891_v15 = vsel %vm231_vm0, %v1827_v16, %v1829_v20  ;;  %v1830_v44 = vrot.slane %v5887_v37, 1 }
 0x546   : > { %v5896_v47 = vsel %vm163_vm3, %v5823_v52, %v1784_v8  ;;  %v5904_v51 = vsel %vm291_vm1, %v1778_v24, %v1780_v48  ;;  %v1833_v34 = vsel %vm231_vm0, %v1829_v20, %v1827_v16  ;;  %v1868_v0 = vrot.slane %v5885_v3, 7 }
 0x547   : > { %v1834_v27 = vsel %vm231_vm0, %v1830_v44, %v1828_v56  ;;  %v5917_v40 = vsel %vm166_vm2, %v5862_v12, %v1833_v34  ;;  %v5926_v18 = vsel %vm231_vm0, %v1828_v56, %v1830_v44  ;;  %v1870_v24 = vrot.slane %v5887_v37, 7 }
 0x548   : > { %v5922_v11 = vsel %vm166_vm2, %v5887_v37, %v1834_v27  ;;  %v1867_v48 = vrot.slane %v5860_v9, 7  ;;  %v1869_v16 = vrot.slane %v5862_v12, 7 }
 0x549   : > { %v1874_v8 = vsel %vm291_vm1, %v1870_v24, %v1868_v0  ;;  %v5964_v27 = vsel %vm291_vm1, %v1868_v0, %v1870_v24 }
 0x54a   : > { %v1873_v20 = vsel %vm291_vm1, %v1869_v16, %v1867_v48  ;;  %v5950_v44 = vsel %vm163_vm3, %v5885_v3, %v1874_v8  ;;  %v5954_v34 = vsel %vm291_vm1, %v1867_v48, %v1869_v16  ;;  %v7677_v48 = vld [vmem:[#allocation65_spill] sm:$0xff]  ;;  %v7678_v16 = vld [vmem:[#allocation64_spill] sm:$0xff]  ;;  %v7679_v8 = vld [vmem:[#allocation43_spill] sm:$0xff] }
 0x54b   : > { %v5945_v56 = vsel %vm163_vm3, %v5860_v9, %v1873_v20  ;;  %v7676_v20 = vld [vmem:[#allocation45_spill] sm:$0xff] }
 0x54c   : > { %1751 = vrot.lane.b32.xlu2 %v5858_v50, %s3235_s22 }
 0x54d   : > { %1791 = vrot.lane.b32.xlu1 %v5870_v30, %s3236_s23  ;;  %1789 = vrot.lane.b32.xlu0 %v5875_v7, %s3236_s23 }
 0x554   : > { %1793 = vrot.lane.b32.xlu2 %v5896_v47, %s3236_s23 }
 0x555   : > { %1839 = vrot.lane.b32.xlu1 %v5891_v15, %s3235_s22  ;;  %1795 = vrot.lane.b32.xlu0 %v5904_v51, %s3236_s23 }
 0x55c   : > { %1841 = vrot.lane.b32.xlu2 %v5917_v40, %s3235_s22 }
 0x55d   : > { %1845 = vrot.lane.b32.xlu1 %v5922_v11, %s3235_s22  ;;  %1843 = vrot.lane.b32.xlu0 %v5926_v18, %s3235_s22 }
 0x564   : > { %1879 = vrot.lane.b32.xlu2 %v5945_v56, %s3236_s23 }
 0x565   : > { %1883 = vrot.lane.b32.xlu1 %v5950_v44, %s3236_s23  ;;  %1881 = vrot.lane.b32.xlu0 %v5954_v34, %s3236_s23 }
 0x56c   : > { %1885 = vrot.lane.b32.xlu2 %v5964_v27, %s3236_s23 }
 0x56d   : > { %1907 = vrot.lane.b32.xlu0 %v7676_v20, %s3237_s30  ;;  %1909 = vrot.lane.b32.xlu1 %v7677_v48, %s3237_s30 }
 0x574   : > { %1911 = vrot.lane.b32.xlu2 %v7678_v16, %s3237_s30 }
 0x575   : > { %1913 = vrot.lane.b32.xlu0 %v7679_v8, %s3237_s30 }
 0x59e   : > { %v1746_v32 = vpop.permute.xlu2 %1745 }
 0x5a6   : > { %v1752_v45 = vpop.permute.xlu2 %1751 }
 0x5ae   : > { %v1794_v13 = vpop.permute.xlu2 %1793 }
 0x5b7   : > { %v1750_v0 = vpop.permute.xlu1 %1749  ;;  %v1748_v24 = vpop.permute.xlu0 %1747 }
 0x5b8   : > { %v1753_v58 = vsel %vm252_vm6, %v1746_v32, %v1750_v0  ;;  %v1755_v20 = vsel %vm252_vm6, %v1750_v0, %v1746_v32  ;;  %v1754_v48 = vsel %vm252_vm6, %v1748_v24, %v1752_v45  ;;  %v1756_v16 = vsel %vm252_vm6, %v1752_v45, %v1748_v24 }
 0x5b9   : > { %v1757_v8 = vsel %vm3693_vm8, %v5830_v43, %v1753_v58  ;;  %v1758_v63 = vsel %vm3962_vm11, %v5838_v5, %v1755_v20  ;;  %v1759_v35 = vsel %vm3693_vm8, %v5843_v2, %v1754_v48  ;;  %v1760_v32 = vsel %vm3962_vm11, %v5858_v50, %v1756_v16 }
 0x5ba   : > { %v1761_v0 = vmul.f32 %v1757_v8, %v4102_v19  ;;  %v1762_v45 = vmul.f32 %v1758_v63, %v4104_v59  ;;  %v1763_v24 = vmul.f32 %v1759_v35, %v4102_v19  ;;  %v1764_v58 = vmul.f32 %v1760_v32, %v4104_v59  ;;  %v1842_v32 = vpop.permute.xlu2 %1841 }
 0x5bb   : > { %v1769_v43 = vmul.f32 %v5816_v38, %v4056_v14  ;;  %v1770_v5 = vmul.f32 %v5823_v52, %v4058_v25  ;;  %v1771_v2 = vmul.f32 %v5803_v49, %v4056_v14  ;;  %v1772_v50 = vmul.f32 %v5810_v4, %v4058_v25 }
 0x5bc   : > { %v1765_v20 = vadd.f32 %v1761_v0, %v5783_v29  ;;  %v1766_v63 = vadd.f32 %v1762_v45, %v5785_v26  ;;  %v1767_v35 = vadd.f32 %v1763_v24, %v5797_v42  ;;  %v1768_v48 = vadd.f32 %v1764_v58, %v5799_v41 }
 0x5be   : > { %v1773_v16 = vadd.f32 %v1769_v43, %v1765_v20  ;;  %v1774_v38 = vadd.f32 %v1770_v5, %v1766_v63  ;;  %v1775_v8 = vadd.f32 %v1771_v2, %v1767_v35  ;;  %v1776_v52 = vadd.f32 %v1772_v50, %v1768_v48 }
 0x5bf   : > { %v1792_v59 = vpop.permute.xlu1 %1791  ;;  %v1790_v49 = vpop.permute.xlu0 %1789 }
 0x5c0   : > { %v1797_v4 = vsel %vm312_vm7, %v1790_v49, %v1794_v13  ;;  %v1799_v29 = vsel %vm312_vm7, %v1794_v13, %v1790_v49 }
 0x5c1   : > { %v1801_v26 = vsel %vm3717_vm9, %v5875_v7, %v1799_v29  ;;  %v1802_v42 = vsel %vm4002_vm12, %v5896_v47, %v1797_v4  ;;  %v1861_v4 = vmul.f32 %v5862_v12, %v7623_v6  ;;  %v1862_v29 = vmul.f32 %v5887_v37, %v7562_v17 }
 0x5c2   : > { %v1805_v41 = vmul.f32 %v1801_v26, %v7641_v33  ;;  %v1806_v0 = vmul.f32 %v1802_v42, %v7642_v10  ;;  %v1880_v2 = vpop.permute.xlu2 %1879 }
 0x5c4   : > { %v1809_v45 = vadd.f32 %v1805_v41, %v1773_v16  ;;  %v1810_v24 = vadd.f32 %v1806_v0, %v1774_v38 }
 0x5c6   : > { %1813 = vst [vmem:[%s4209_s24 + $0x80] sm:$0xff] %v1809_v45 }
 0x5c7   : > { %1814 = vst [vmem:[%s4209_s24 + $0x88] sm:$0xff] %v1810_v24  ;;  %v1840_v58 = vpop.permute.xlu1 %1839  ;;  %v1796_v13 = vpop.permute.xlu0 %1795 }
 0x5c8   : > { %v1798_v43 = vsel %vm312_vm7, %v1792_v59, %v1796_v13  ;;  %v1800_v7 = vsel %vm312_vm7, %v1796_v13, %v1792_v59 }
 0x5c9   : > { %v1803_v47 = vsel %vm3717_vm9, %v5870_v30, %v1800_v7  ;;  %v1804_v5 = vsel %vm4002_vm12, %v5904_v51, %v1798_v43 }
 0x5ca   : > { %v1807_v50 = vmul.f32 %v1803_v47, %v7641_v33  ;;  %v1808_v20 = vmul.f32 %v1804_v5, %v7642_v10  ;;  %v1886_v41 = vpop.permute.xlu2 %1885 }
 0x5cc   : > { %v1811_v63 = vadd.f32 %v1807_v50, %v1775_v8  ;;  %v1812_v35 = vadd.f32 %v1808_v20, %v1776_v52 }
 0x5ce   : > { %1815 = vst [vmem:[%s4209_s24 + $0x90] sm:$0xff] %v1811_v63 }
 0x5cf   : > { %1816 = vst [vmem:[%s4209_s24 + $0x98] sm:$0xff] %v1812_v35  ;;  %v1846_v48 = vpop.permute.xlu1 %1845  ;;  %v1844_v16 = vpop.permute.xlu0 %1843 }
 0x5d0   : > { %v1848_v59 = vsel %vm252_vm6, %v1842_v32, %v1846_v48  ;;  %v1850_v30 = vsel %vm252_vm6, %v1846_v48, %v1842_v32  ;;  %v1847_v51 = vsel %vm252_vm6, %v1840_v58, %v1844_v16  ;;  %v1849_v38 = vsel %vm252_vm6, %v1844_v16, %v1840_v58 }
 0x5d1   : > { %v1853_v8 = vsel %vm3693_vm8, %v5917_v40, %v1848_v59  ;;  %v1854_v52 = vsel %vm3962_vm11, %v5922_v11, %v1850_v30  ;;  %v1851_v49 = vsel %vm3693_vm8, %v5891_v15, %v1847_v51  ;;  %v1852_v32 = vsel %vm3962_vm11, %v5926_v18, %v1849_v38  ;;  %v3096_v51 = vld [vmem:[%s5224_s4] sm:$0xff] }
 0x5d2   : > { %v1859_v40 = vmul.f32 %v5860_v9, %v7623_v6  ;;  %v1860_v11 = vmul.f32 %v5885_v3, %v7562_v17  ;;  %v1857_v26 = vmul.f32 %v1853_v8, %v7628_v54  ;;  %v1858_v15 = vmul.f32 %v1854_v52, %v7645_v22  ;;  %v1912_v59 = vpop.permute.xlu2 %1911 }
 0x5d3   : > { %v1855_v42 = vmul.f32 %v1851_v49, %v7628_v54  ;;  %v1856_v18 = vmul.f32 %v1852_v32, %v7645_v22 }
 0x5d4   : > { %v1865_v0 = vadd.f32 %v1861_v4, %v1857_v26  ;;  %v1866_v12 = vadd.f32 %v1862_v29, %v1858_v15  ;;  %v3097_v15 = vld [vmem:[%s5224_s4 + $0x10] sm:$0xff]  ;;  %s2933_s4 = sshll.u32 %s7742_s28, 4 }
 0x5d5   : > { %v1863_v45 = vadd.f32 %v1859_v40, %v1855_v42  ;;  %v1864_v24 = vadd.f32 %v1860_v11, %v1856_v18  ;;  %s2009_s7 = sshra.s32 %s2933_s4, 3 }
 0x5d6   : > { %s3003_s16 = sshll.u32 %s2009_s7, 4 }
 0x5d7   : > { %v1884_v37 = vpop.permute.xlu1 %1883  ;;  %v1882_v58 = vpop.permute.xlu0 %1881  ;;  %s2013_s17 = scalar_lea.vmem [#allocation2], %s3003_s16 }
 0x5d8   : > { %v1887_v9 = vsel %vm312_vm7, %v1880_v2, %v1884_v37  ;;  %v1889_v3 = vsel %vm312_vm7, %v1884_v37, %v1880_v2  ;;  %v1888_v13 = vsel %vm312_vm7, %v1882_v58, %v1886_v41  ;;  %v1890_v43 = vsel %vm312_vm7, %v1886_v41, %v1882_v58  ;;  %s2306_s28 = scalar_select %p2305_p3, %s6508_s27, 0 }
 0x5d9   : > { %v1891_v7 = vsel %vm3717_vm9, %v5945_v56, %v1889_v3  ;;  %v1892_v47 = vsel %vm4002_vm12, %v5950_v44, %v1887_v9  ;;  %v1893_v5 = vsel %vm3717_vm9, %v5954_v34, %v1890_v43  ;;  %v1894_v2 = vsel %vm4002_vm12, %v5964_v27, %v1888_v13 }
 0x5da   : > { %v1895_v50 = vmul.f32 %v1891_v7, %v7630_v53  ;;  %v1896_v20 = vmul.f32 %v1892_v47, %v7569_v55  ;;  %v1897_v63 = vmul.f32 %v1893_v5, %v7630_v53  ;;  %v1898_v56 = vmul.f32 %v1894_v2, %v7569_v55  ;;  %s7744_s28 = smov (!%p2939_p4, %s2306_s28), 15 }
 0x5dc   : > { %v1899_v35 = vadd.f32 %v1895_v50, %v1863_v45  ;;  %v1900_v48 = vadd.f32 %v1896_v20, %v1864_v24  ;;  %v1901_v44 = vadd.f32 %v1897_v63, %v1865_v0  ;;  %v1902_v16 = vadd.f32 %v1898_v56, %v1866_v12 }
 0x5df   : > { %v1908_v30 = vpop.permute.xlu0 %1907  ;;  %v1910_v4 = vpop.permute.xlu1 %1909 }
 0x5e0   : > { %v1915_v34 = vsel %vm167_vm4, %v1908_v30, %v1912_v59  ;;  %v1917_v27 = vsel %vm167_vm4, %v1912_v59, %v1908_v30  ;;  %v6157_v59 = vld [vmem:[%s2013_s17 + $0x18] sm:$0xff]  ;;  %v6159_v30 = vld [vmem:[%s2013_s17 + $0x10] sm:$0xff] }
 0x5e1   : > { %v1919_v38 = vsel %vm167_vm4, %v3096_v51, %v1917_v27  ;;  %v1924_v8 = vmul.f32 %v1915_v34, %v7593_v62  ;;  %v1932_v26 = vrot.slane %v1915_v34, 1  ;;  %v1968_v56 = vrot.slane %v1915_v34, 7  ;;  %7681 = vst [vmem:[#allocation52_spill] sm:$0xff] %v6157_v59  ;;  %v6161_v27 = vld [vmem:[%s2013_s17 + $0x8] sm:$0xff] }
 0x5e2   : > { %v1923_v52 = vmul.f32 %v1919_v38, %v7633_v60  ;;  %v1931_v12 = vrot.slane %v1919_v38, 1  ;;  %v1967_v7 = vrot.slane %v1919_v38, 7  ;;  %7682 = vst [vmem:[#allocation54_spill] sm:$0xff] %v6159_v30 }
 0x5e3   : > { %v6106_v49 = vadd.f32 %v1924_v8, %v1900_v48  ;;  %v6147_v48 = vld [vmem:[%s2013_s17] sm:$0xff]  ;;  %7683 = vst [vmem:[#allocation53_spill] sm:$0xff] %v6161_v27  ;;  %s2605_s17 = sadd.s32 8, %s3333_s14 }
 0x5e4   : > { %v6108_v32 = vadd.f32 %v1923_v52, %v1899_v35  ;;  %7680 = vst [vmem:[#allocation51_spill] sm:$0xff] %v6147_v48  ;;  %p2606_p7 = scmp.gt.s32.totalorder %s2605_s17, 0  ;;  %p2950_p8 = scmp.lt.s32.totalorder %s2605_s17, 15 }
 0x5e6   : > { %s7746_s17 = smov (!%p2606_p7, %s2605_s17), 0 }
 0x5e7   : > { %v1914_v29 = vpop.permute.xlu0 %1913  ;;  %s7748_s17 = smov (!%p2950_p8, %s7746_s17), 15 }
 0x5e8   : > { %v1916_v40 = vsel %vm167_vm4, %v1910_v4, %v1914_v29  ;;  %v1918_v11 = vsel %vm167_vm4, %v1914_v29, %v1910_v4  ;;  %s2955_s14 = sshll.u32 %s7748_s17, 4 }
 0x5e9   : > { %v1921_v42 = vsel %vm167_vm4, %v3097_v15, %v1918_v11  ;;  %v1926_v18 = vmul.f32 %v1916_v40, %v7593_v62  ;;  %v1934_v41 = vrot.slane %v1916_v40, 1  ;;  %v1970_v20 = vrot.slane %v1916_v40, 7  ;;  %s2611_s29 = sshra.s32 %s2955_s14, 3 }
 0x5ea   : > { %v1925_v0 = vmul.f32 %v1921_v42, %v7633_v60  ;;  %v1933_v45 = vrot.slane %v1921_v42, 1  ;;  %v1969_v13 = vrot.slane %v1921_v42, 7  ;;  %s3015_s5 = sshll.u32 %s2611_s29, 4 }
 0x5eb   : > { %v6119_v24 = vadd.f32 %v1926_v18, %v1902_v16  ;;  %v1936_v37 = vsel %vm231_vm0, %v1932_v26, %v1934_v41  ;;  %v1938_v47 = vsel %vm231_vm0, %v1934_v41, %v1932_v26  ;;  %v1974_v35 = vsel %vm291_vm1, %v1970_v20, %v1968_v56  ;;  %s2615_s27 = scalar_lea.vmem [#allocation2], %s3015_s5  ;;  %s3179_s5 = scalar_lea.hbm %s7278_s2, 512 }
 0x5ec   : > { %1947 = vrot.lane.b32.xlu0 %v1936_v37, %s3235_s22  ;;  %v1935_v58 = vsel %vm231_vm0, %v1931_v12, %v1933_v45  ;;  %v1937_v9 = vsel %vm231_vm0, %v1933_v45, %v1931_v12  ;;  %v1929_v43 = vadd.f32 %v1925_v0, %v1901_v44  ;;  %v1973_v5 = vsel %vm291_vm1, %v1969_v13, %v1967_v7 }
 0x5ed   : > { %1943 = vrot.lane.b32.xlu1 %v1935_v58, %s3235_s22  ;;  %v1941_v3 = vsel %vm166_vm2, %v1921_v42, %v1937_v9  ;;  %v1971_v2 = vsel %vm291_vm1, %v1967_v7, %v1969_v13  ;;  %v1942_v50 = vsel %vm166_vm2, %v1916_v40, %v1938_v47  ;;  %v1975_v63 = vsel %vm163_vm3, %v1919_v38, %v1973_v5 }
 0x5ee   : > { %1945 = vrot.lane.b32.xlu2 %v1941_v3, %s3235_s22  ;;  %v1976_v44 = vsel %vm163_vm3, %v1915_v34, %v1974_v35  ;;  %v1972_v16 = vsel %vm291_vm1, %v1968_v56, %v1970_v20  ;;  %v7684_v20 = vld [vmem:[#allocation24_spill] sm:$0xff] }
 0x5f4   : > { %1981 = vrot.lane.b32.xlu0 %v1971_v2, %s3236_s23 }
 0x5f5   : > { %1949 = vrot.lane.b32.xlu1 %v1942_v50, %s3235_s22 }
 0x5f6   : > { %1979 = vrot.lane.b32.xlu2 %v1975_v63, %s3236_s23 }
 0x5fc   : > { %2018 = vrot.lane.b32.xlu0 %v6147_v48, %s3238_s21 }
 0x5fd   : > { %1983 = vrot.lane.b32.xlu1 %v1976_v44, %s3236_s23 }
 0x5fe   : > { %1985 = vrot.lane.b32.xlu2 %v1972_v16, %s3236_s23 }
 0x604   : > { %2024 = vrot.lane.b32.xlu0 %v6157_v59, %s3238_s21 }
 0x605   : > { %2020 = vrot.lane.b32.xlu1 %v6159_v30, %s3238_s21 }
 0x606   : > { %2022 = vrot.lane.b32.xlu2 %v6161_v27, %s3238_s21 }
 0x648   : > { %v1946_v34 = vpop.permute.xlu2 %1945 }
 0x650   : > { %v1980_v51 = vpop.permute.xlu2 %1979 }
 0x658   : > { %v1986_v18 = vpop.permute.xlu2 %1985 }
 0x65e   : > { %v1948_v38 = vpop.permute.xlu0 %1947 }
 0x65f   : > { %v1944_v8 = vpop.permute.xlu1 %1943 }
 0x660   : > { %v1951_v52 = vsel %vm252_vm6, %v1944_v8, %v1948_v38  ;;  %v1953_v4 = vsel %vm252_vm6, %v1948_v38, %v1944_v8 }
 0x661   : > { %v1955_v29 = vsel %vm3693_vm8, %v1935_v58, %v1951_v52  ;;  %v1956_v40 = vsel %vm3962_vm11, %v1936_v37, %v1953_v4  ;;  %v2023_v52 = vpop.permute.xlu2 %2022 }
 0x662   : > { %v1959_v11 = vmul.f32 %v1955_v29, %v4072_v57  ;;  %v1960_v26 = vmul.f32 %v1956_v40, %v7634_v36 }
 0x664   : > { %v1963_v15 = vadd.f32 %v1959_v11, %v6108_v32  ;;  %v1964_v42 = vadd.f32 %v1960_v26, %v6106_v49 }
 0x666   : > { %v1982_v41 = vpop.permute.xlu0 %1981 }
 0x667   : > { %v1988_v0 = vsel %vm312_vm7, %v1982_v41, %v1986_v18  ;;  %v1990_v12 = vsel %vm312_vm7, %v1986_v18, %v1982_v41  ;;  %v1950_v45 = vpop.permute.xlu1 %1949 }
 0x668   : > { %v1952_v37 = vsel %vm252_vm6, %v1946_v34, %v1950_v45  ;;  %v1954_v58 = vsel %vm252_vm6, %v1950_v45, %v1946_v34  ;;  %v1993_v32 = vsel %vm3717_vm9, %v1971_v2, %v1990_v12  ;;  %v1994_v49 = vsel %vm4002_vm12, %v1972_v16, %v1988_v0 }
 0x669   : > { %v1957_v9 = vsel %vm3693_vm8, %v1941_v3, %v1952_v37  ;;  %v1958_v13 = vsel %vm3962_vm11, %v1942_v50, %v1954_v58  ;;  %v1997_v5 = vmul.f32 %v1993_v32, %v7673_v46  ;;  %v1998_v56 = vmul.f32 %v1994_v49, %v7684_v20 }
 0x66a   : > { %v1961_v7 = vmul.f32 %v1957_v9, %v4072_v57  ;;  %v1962_v47 = vmul.f32 %v1958_v13, %v7634_v36 }
 0x66c   : > { %v1965_v35 = vadd.f32 %v1961_v7, %v1929_v43  ;;  %v1966_v2 = vadd.f32 %v1962_v47, %v6119_v24 }
 0x66e   : > { %v2019_v34 = vpop.permute.xlu0 %2018  ;;  %v6202_v38 = vadd.f32 %v1997_v5, %v1965_v35  ;;  %v6204_v16 = vadd.f32 %v1998_v56, %v1966_v2  ;;  %v6279_v2 = vld [vmem:[%s2123_s26] sm:$0xff] }
 0x66f   : > { %v1984_v3 = vpop.permute.xlu1 %1983  ;;  %v2028_v26 = vsel %vm491_vm5, %v2023_v52, %v2019_v34 }
 0x670   : > { %v1987_v50 = vsel %vm312_vm7, %v1980_v51, %v1984_v3  ;;  %v1989_v8 = vsel %vm312_vm7, %v1984_v3, %v1980_v51  ;;  %v6224_v51 = vsel %vm491_vm5, %v2019_v34, %v2023_v52  ;;  %v6281_v34 = vld [vmem:[%s2123_s26 + $0x10] sm:$0xff] }
 0x671   : > { %v1991_v4 = vsel %vm3717_vm9, %v1975_v63, %v1989_v8  ;;  %v1992_v24 = vsel %vm4002_vm12, %v1976_v44, %v1987_v50  ;;  %v6229_v44 = vsel %vm170_vm10, %v6161_v27, %v2028_v26  ;;  %v2034_v0 = vrot.slane %v6224_v51, 1  ;;  %v6306_v26 = vld [vmem:[%s2123_s26 + $0x18] sm:$0xff]  ;;  %v7690_v63 = vld [vmem:[#allocation71_spill] sm:$0xff] }
 0x672   : > { %v1995_v43 = vmul.f32 %v1991_v4, %v7673_v46  ;;  %v1996_v29 = vmul.f32 %v1992_v24, %v7684_v20  ;;  %v2035_v37 = vrot.slane %v6229_v44, 1  ;;  %v2078_v47 = vrot.slane %v6224_v51, 7 }
 0x673   : > { %v2079_v52 = vrot.slane %v6229_v44, 7  ;;  %v2128_v4 = vrot.slane %v6279_v2, 1  ;;  %v2130_v24 = vrot.slane %v6281_v34, 1  ;;  %v2070_v46 = vmul.f32 %v6224_v51, %v4056_v14 }
 0x674   : > { %v6216_v40 = vadd.f32 %v1995_v43, %v1963_v15  ;;  %v6218_v11 = vadd.f32 %v1996_v29, %v1964_v42  ;;  %v6304_v29 = vld [vmem:[%s2123_s26 + $0x8] sm:$0xff]  ;;  %v2071_v36 = vmul.f32 %v6229_v44, %v4058_v25  ;;  %s2420_s26 = sshra.s32 %s3011_s25, 3 }
 0x676   : > { %v2025_v18 = vpop.permute.xlu0 %2024 }
 0x677   : > { %v2021_v41 = vpop.permute.xlu1 %2020 }
 0x678   : > { %v6234_v15 = vsel %vm491_vm5, %v2021_v41, %v2025_v18  ;;  %v2029_v42 = vsel %vm491_vm5, %v2025_v18, %v2021_v41  ;;  %v6310_v18 = vsel %vm231_vm0, %v2128_v4, %v2130_v24 }
 0x679   : > { %v6242_v12 = vsel %vm170_vm10, %v6157_v59, %v2029_v42  ;;  %v2036_v45 = vrot.slane %v6234_v15, 1  ;;  %v2080_v7 = vrot.slane %v6234_v15, 7  ;;  %v2129_v42 = vrot.slane %v6304_v29, 1 }
 0x67a   : > { %v2037_v58 = vrot.slane %v6242_v12, 1  ;;  %v2081_v3 = vrot.slane %v6242_v12, 7 }
 0x67b   : > { %v6249_v32 = vsel %vm231_vm0, %v2034_v0, %v2036_v45  ;;  %v2040_v49 = vsel %vm231_vm0, %v2036_v45, %v2034_v0  ;;  %v2084_v56 = vsel %vm291_vm1, %v2080_v7, %v2078_v47  ;;  %v6288_v50 = vsel %vm291_vm1, %v2078_v47, %v2080_v7 }
 0x67c   : > { %2046 = vrot.lane.b32.xlu1 %v6249_v32, %s3235_s22  ;;  %v6257_v9 = vsel %vm231_vm0, %v2035_v37, %v2037_v58  ;;  %v6262_v13 = vsel %vm166_vm2, %v6234_v15, %v2040_v49  ;;  %v2041_v5 = vsel %vm231_vm0, %v2037_v58, %v2035_v37  ;;  %v6293_v8 = vsel %vm163_vm3, %v6224_v51, %v2084_v56 }
 0x67d   : > { %2050 = vrot.lane.b32.xlu0 %v6257_v9, %s3235_s22  ;;  %2048 = vrot.lane.b32.xlu2 %v6262_v13, %s3235_s22  ;;  %v6277_v35 = vsel %vm166_vm2, %v6242_v12, %v2041_v5  ;;  %v2085_v43 = vsel %vm291_vm1, %v2081_v3, %v2079_v52  ;;  %v2131_v0 = vrot.slane %v6306_v26, 1  ;;  %v6323_v45 = vsel %vm291_vm1, %v2079_v52, %v2081_v3 }
 0x67e   : > { %v6315_v41 = vsel %vm163_vm3, %v6229_v44, %v2085_v43  ;;  %v2134_v37 = vsel %vm231_vm0, %v2130_v24, %v2128_v4  ;;  %v2168_v47 = vrot.slane %v6279_v2, 7  ;;  %v2170_v5 = vrot.slane %v6281_v34, 7 }
 0x67f   : > { %v2135_v58 = vsel %vm231_vm0, %v2131_v0, %v2129_v42  ;;  %v6336_v49 = vsel %vm166_vm2, %v6281_v34, %v2134_v37  ;;  %v6347_v56 = vsel %vm231_vm0, %v2129_v42, %v2131_v0  ;;  %v2169_v3 = vrot.slane %v6304_v29, 7 }
 0x680   : > { %v6341_v7 = vsel %vm166_vm2, %v6306_v26, %v2135_v58  ;;  %v2171_v52 = vrot.slane %v6306_v26, 7  ;;  %v2174_v4 = vsel %vm291_vm1, %v2170_v5, %v2168_v47  ;;  %v6373_v0 = vsel %vm291_vm1, %v2168_v47, %v2170_v5  ;;  %v7686_v58 = vld [vmem:[#allocation46_spill] sm:$0xff]  ;;  %v7687_v47 = vld [vmem:[#allocation60_spill] sm:$0xff] }
 0x681   : > { %v6364_v43 = vsel %vm163_vm3, %v6279_v2, %v2174_v4  ;;  %v7688_v5 = vld [vmem:[#allocation48_spill] sm:$0xff]  ;;  %v7689_v4 = vld [vmem:[#allocation47_spill] sm:$0xff] }
 0x682   : > { %v2175_v24 = vsel %vm291_vm1, %v2171_v52, %v2169_v3  ;;  %v6383_v37 = vsel %vm291_vm1, %v2169_v3, %v2171_v52 }
 0x683   : > { %v6369_v42 = vsel %vm163_vm3, %v6304_v29, %v2175_v24 }
 0x684   : > { %2052 = vrot.lane.b32.xlu1 %v6277_v35, %s3235_s22 }
 0x685   : > { %2092 = vrot.lane.b32.xlu0 %v6288_v50, %s3236_s23  ;;  %2090 = vrot.lane.b32.xlu2 %v6293_v8, %s3236_s23 }
 0x68c   : > { %2094 = vrot.lane.b32.xlu1 %v6315_v41, %s3236_s23 }
 0x68d   : > { %2140 = vrot.lane.b32.xlu0 %v6310_v18, %s3235_s22  ;;  %2096 = vrot.lane.b32.xlu2 %v6323_v45, %s3236_s23 }
 0x694   : > { %2142 = vrot.lane.b32.xlu1 %v6336_v49, %s3235_s22 }
 0x695   : > { %2146 = vrot.lane.b32.xlu0 %v6341_v7, %s3235_s22  ;;  %2144 = vrot.lane.b32.xlu2 %v6347_v56, %s3235_s22 }
 0x69c   : > { %2180 = vrot.lane.b32.xlu1 %v6364_v43, %s3236_s23 }
 0x69d   : > { %2184 = vrot.lane.b32.xlu0 %v6369_v42, %s3236_s23  ;;  %2182 = vrot.lane.b32.xlu2 %v6373_v0, %s3236_s23 }
 0x6a4   : > { %2186 = vrot.lane.b32.xlu1 %v6383_v37, %s3236_s23 }
 0x6a5   : > { %2210 = vrot.lane.b32.xlu0 %v7686_v58, %s3237_s30  ;;  %2208 = vrot.lane.b32.xlu2 %v7687_v47, %s3237_s30 }
 0x6ac   : > { %2212 = vrot.lane.b32.xlu1 %v7688_v5, %s3237_s30 }
 0x6ad   : > { %2214 = vrot.lane.b32.xlu2 %v7689_v4, %s3237_s30 }
 0x6d7   : > { %v2049_v24 = vpop.permute.xlu2 %2048 }
 0x6df   : > { %v2091_v59 = vpop.permute.xlu2 %2090 }
 0x6e7   : > { %v2097_v3 = vpop.permute.xlu2 %2096 }
 0x6ee   : > { %v2047_v27 = vpop.permute.xlu1 %2046 }
 0x6ef   : > { %v2051_v52 = vpop.permute.xlu0 %2050 }
 0x6f0   : > { %v2054_v30 = vsel %vm252_vm6, %v2047_v27, %v2051_v52  ;;  %v2056_v48 = vsel %vm252_vm6, %v2051_v52, %v2047_v27 }
 0x6f1   : > { %v2058_v47 = vsel %vm3693_vm8, %v6249_v32, %v2054_v30  ;;  %v2059_v5 = vsel %vm3962_vm11, %v6257_v9, %v2056_v48 }
 0x6f2   : > { %v2062_v4 = vmul.f32 %v2058_v47, %v4102_v19  ;;  %v2063_v20 = vmul.f32 %v2059_v5, %v7690_v63  ;;  %v2145_v5 = vpop.permute.xlu2 %2144 }
 0x6f4   : > { %v2066_v27 = vadd.f32 %v2062_v4, %v6216_v40  ;;  %v2067_v52 = vadd.f32 %v2063_v20, %v6218_v11 }
 0x6f6   : > { %v2053_v57 = vpop.permute.xlu1 %2052  ;;  %v2074_v30 = vadd.f32 %v2070_v46, %v2066_v27  ;;  %v2075_v32 = vadd.f32 %v2071_v36, %v2067_v52 }
 0x6f7   : > { %v2055_v48 = vsel %vm252_vm6, %v2049_v24, %v2053_v57  ;;  %v2057_v9 = vsel %vm252_vm6, %v2053_v57, %v2049_v24  ;;  %v2093_v47 = vpop.permute.xlu0 %2092 }
 0x6f8   : > { %v2060_v51 = vsel %vm3693_vm8, %v6262_v13, %v2055_v48  ;;  %v2061_v40 = vsel %vm3962_vm11, %v6277_v35, %v2057_v9  ;;  %v2099_v46 = vsel %vm312_vm7, %v2093_v47, %v2097_v3  ;;  %v2101_v36 = vsel %vm312_vm7, %v2097_v3, %v2093_v47 }
 0x6f9   : > { %v2064_v20 = vmul.f32 %v2060_v51, %v4102_v19  ;;  %v2065_v57 = vmul.f32 %v2061_v40, %v7690_v63  ;;  %v2104_v11 = vsel %vm3717_vm9, %v6288_v50, %v2101_v36  ;;  %v2105_v44 = vsel %vm4002_vm12, %v6323_v45, %v2099_v46 }
 0x6fa   : > { %v2072_v13 = vmul.f32 %v6234_v15, %v4056_v14  ;;  %v2073_v35 = vmul.f32 %v6242_v12, %v4058_v25  ;;  %v2108_v52 = vmul.f32 %v2104_v11, %v7641_v33  ;;  %v2109_v50 = vmul.f32 %v2105_v44, %v7642_v10  ;;  %v2183_v36 = vpop.permute.xlu2 %2182 }
 0x6fb   : > { %v2068_v24 = vadd.f32 %v2064_v20, %v6202_v38  ;;  %v2069_v3 = vadd.f32 %v2065_v57, %v6204_v16 }
 0x6fd   : > { %v2076_v4 = vadd.f32 %v2072_v13, %v2068_v24  ;;  %v2077_v27 = vadd.f32 %v2073_v35, %v2069_v3  ;;  %v2160_v24 = vmul.f32 %v6279_v2, %v7623_v6  ;;  %v2161_v3 = vmul.f32 %v6304_v29, %v7562_v17 }
 0x6fe   : > { %v2095_v48 = vpop.permute.xlu1 %2094 }
 0x6ff   : > { %v2112_v45 = vadd.f32 %v2108_v52, %v2076_v4  ;;  %v2113_v9 = vadd.f32 %v2109_v50, %v2077_v27  ;;  %v2098_v15 = vsel %vm312_vm7, %v2091_v59, %v2095_v48  ;;  %v2100_v38 = vsel %vm312_vm7, %v2095_v48, %v2091_v59  ;;  %v2141_v12 = vpop.permute.xlu0 %2140 }
 0x700   : > { %v2102_v16 = vsel %vm3717_vm9, %v6293_v8, %v2100_v38  ;;  %v2103_v47 = vsel %vm4002_vm12, %v6315_v41, %v2098_v15  ;;  %v2148_v51 = vsel %vm252_vm6, %v2141_v12, %v2145_v5  ;;  %v2150_v40 = vsel %vm252_vm6, %v2145_v5, %v2141_v12 }
 0x701   : > { %2116 = vst [vmem:[%s4209_s24 + $0xb0] sm:$0xff] %v2112_v45  ;;  %v2106_v46 = vmul.f32 %v2102_v16, %v7641_v33  ;;  %v2107_v59 = vmul.f32 %v2103_v47, %v7642_v10  ;;  %v2152_v5 = vsel %vm3693_vm8, %v6310_v18, %v2148_v51  ;;  %v2153_v13 = vsel %vm3962_vm11, %v6347_v56, %v2150_v40 }
 0x702   : > { %2117 = vst [vmem:[%s4209_s24 + $0xb8] sm:$0xff] %v2113_v9  ;;  %v2157_v35 = vmul.f32 %v2153_v13, %v7645_v22  ;;  %v2162_v38 = vmul.f32 %v6281_v34, %v7623_v6 }
 0x703   : > { %v2110_v20 = vadd.f32 %v2106_v46, %v2074_v30  ;;  %v2111_v57 = vadd.f32 %v2107_v59, %v2075_v32  ;;  %v2209_v30 = vpop.permute.xlu2 %2208  ;;  %v2156_v32 = vmul.f32 %v2152_v5, %v7628_v54 }
 0x705   : > { %2114 = vst [vmem:[%s4209_s24 + $0xa0] sm:$0xff] %v2110_v20  ;;  %v2164_v48 = vadd.f32 %v2160_v24, %v2156_v32 }
 0x706   : > { %2115 = vst [vmem:[%s4209_s24 + $0xa8] sm:$0xff] %v2111_v57  ;;  %v2143_v8 = vpop.permute.xlu1 %2142 }
 0x707   : > { %v2147_v11 = vpop.permute.xlu0 %2146 }
 0x708   : > { %v2149_v41 = vsel %vm252_vm6, %v2143_v8, %v2147_v11  ;;  %v2151_v44 = vsel %vm252_vm6, %v2147_v11, %v2143_v8 }
 0x709   : > { %v2154_v18 = vsel %vm3693_vm8, %v6336_v49, %v2149_v41  ;;  %v2155_v56 = vsel %vm3962_vm11, %v6341_v7, %v2151_v44  ;;  %v2165_v49 = vadd.f32 %v2161_v3, %v2157_v35 }
 0x70a   : > { %v2158_v9 = vmul.f32 %v2154_v18, %v7628_v54  ;;  %v2159_v15 = vmul.f32 %v2155_v56, %v7645_v22 }
 0x70c   : > { %v2166_v51 = vadd.f32 %v2162_v38, %v2158_v9 }
 0x70e   : > { %v2181_v4 = vpop.permute.xlu1 %2180 }
 0x70f   : > { %v2185_v27 = vpop.permute.xlu0 %2184 }
 0x710   : > { %v2188_v52 = vsel %vm312_vm7, %v2181_v4, %v2185_v27  ;;  %v2190_v50 = vsel %vm312_vm7, %v2185_v27, %v2181_v4  ;;  %v3098_v27 = vld [vmem:[%s5724_s3] sm:$0xff]  ;;  %s2944_s3 = sshll.u32 %s7744_s28, 4  ;;  %s3012_s28 = sshll.u32 %s2420_s26, 4 }
 0x711   : > { %v2192_v2 = vsel %vm3717_vm9, %v6364_v43, %v2190_v50  ;;  %v2193_v29 = vsel %vm4002_vm12, %v6369_v42, %v2188_v52  ;;  %v2163_v43 = vmul.f32 %v6306_v26, %v7562_v17  ;;  %v2215_v42 = vpop.permute.xlu2 %2214  ;;  %s2310_s4 = sshra.s32 %s2944_s3, 3  ;;  %s2424_s3 = scalar_lea.vmem [#allocation2], %s3012_s28 }
 0x712   : > { %v2196_v45 = vmul.f32 %v2192_v2, %v7630_v53  ;;  %v2197_v7 = vmul.f32 %v2193_v29, %v7569_v55  ;;  %s3009_s7 = sshll.u32 %s2310_s4, 4 }
 0x713   : > { %v2167_v40 = vadd.f32 %v2163_v43, %v2159_v15  ;;  %s2314_s16 = scalar_lea.vmem [#allocation2], %s3009_s7  ;;  %s2721_s7 = scalar_lea.sflag [#allocation4], %s153_s8 }
 0x714   : > { %v2200_v12 = vadd.f32 %v2196_v45, %v2164_v48  ;;  %v2201_v16 = vadd.f32 %v2197_v7, %v2165_v49 }
 0x716   : > { %v2187_v47 = vpop.permute.xlu1 %2186 }
 0x717   : > { %v2189_v46 = vsel %vm312_vm7, %v2183_v36, %v2187_v47  ;;  %v2191_v59 = vsel %vm312_vm7, %v2187_v47, %v2183_v36  ;;  %v2211_v20 = vpop.permute.xlu0 %2210 }
 0x718   : > { %v2194_v34 = vsel %vm3717_vm9, %v6373_v0, %v2191_v59  ;;  %v2195_v26 = vsel %vm4002_vm12, %v6383_v37, %v2189_v46  ;;  %v2217_v57 = vsel %vm167_vm4, %v2211_v20, %v2215_v42  ;;  %v2219_v36 = vsel %vm167_vm4, %v2215_v42, %v2211_v20  ;;  %v2315_v46 = vld [vmem:[%s2314_s16] sm:$0xff] }
 0x719   : > { %v2198_v8 = vmul.f32 %v2194_v34, %v7630_v53  ;;  %v2199_v11 = vmul.f32 %v2195_v26, %v7569_v55  ;;  %v2222_v0 = vsel %vm167_vm4, %v7686_v58, %v2219_v36  ;;  %v2227_v41 = vmul.f32 %v2217_v57, %v7593_v62  ;;  %v2318_v34 = vld [vmem:[%s2314_s16 + $0x18] sm:$0xff]  ;;  %v2317_v26 = vld [vmem:[%s2314_s16 + $0x10] sm:$0xff] }
 0x71a   : > { %v2226_v37 = vmul.f32 %v2222_v0, %v7633_v60  ;;  %v2235_v35 = vrot.slane %v2217_v57, 1  ;;  %v2234_v4 = vrot.slane %v2222_v0, 1  ;;  %v2270_v9 = vrot.slane %v2222_v0, 7 }
 0x71b   : > { %v2202_v44 = vadd.f32 %v2198_v8, %v2166_v51  ;;  %v2203_v5 = vadd.f32 %v2199_v11, %v2167_v40  ;;  %v2271_v47 = vrot.slane %v2217_v57, 7 }
 0x71d   : > { %v6528_v13 = vadd.f32 %v2227_v41, %v2203_v5  ;;  %v6531_v32 = vadd.f32 %v2226_v37, %v2202_v44  ;;  %v7691_v5 = vld [vmem:[#allocation22_spill] sm:$0xff] }
 0x71e   : > { %v2213_v24 = vpop.permute.xlu1 %2212 }
 0x71f   : > { %v2216_v3 = vsel %vm167_vm4, %v2209_v30, %v2213_v24  ;;  %v2218_v58 = vsel %vm167_vm4, %v2213_v24, %v2209_v30  ;;  %v7692_v24 = vld [vmem:[#allocation23_spill] sm:$0xff] }
 0x720   : > { %v2220_v18 = vsel %vm167_vm4, %v3098_v27, %v2218_v58  ;;  %v2225_v56 = vmul.f32 %v2216_v3, %v7593_v62  ;;  %v2233_v52 = vrot.slane %v2216_v3, 1  ;;  %v2269_v51 = vrot.slane %v2216_v3, 7 }
 0x721   : > { %v2224_v50 = vmul.f32 %v2220_v18, %v7633_v60  ;;  %v2232_v2 = vrot.slane %v2220_v18, 1  ;;  %v2268_v7 = vrot.slane %v2220_v18, 7 }
 0x722   : > { %v2229_v29 = vadd.f32 %v2225_v56, %v2201_v16  ;;  %v2237_v48 = vsel %vm231_vm0, %v2233_v52, %v2235_v35  ;;  %v2239_v38 = vsel %vm231_vm0, %v2235_v35, %v2233_v52  ;;  %v2275_v40 = vsel %vm291_vm1, %v2271_v47, %v2269_v51 }
 0x723   : > { %2248 = vrot.lane.b32.xlu2 %v2237_v48, %s3235_s22  ;;  %v2236_v30 = vsel %vm231_vm0, %v2232_v2, %v2234_v4  ;;  %v2238_v49 = vsel %vm231_vm0, %v2234_v4, %v2232_v2  ;;  %v2228_v15 = vadd.f32 %v2224_v50, %v2200_v12  ;;  %v2274_v43 = vsel %vm291_vm1, %v2270_v9, %v2268_v7 }
 0x724   : > { %2244 = vrot.lane.b32.xlu0 %v2236_v30, %s3235_s22  ;;  %v2242_v45 = vsel %vm166_vm2, %v2222_v0, %v2238_v49  ;;  %v2272_v16 = vsel %vm291_vm1, %v2268_v7, %v2270_v9  ;;  %v2243_v42 = vsel %vm166_vm2, %v2217_v57, %v2239_v38  ;;  %v2276_v12 = vsel %vm163_vm3, %v2220_v18, %v2274_v43  ;;  %v2316_v57 = vld [vmem:[%s2314_s16 + $0x8] sm:$0xff] }
 0x725   : > { %2246 = vrot.lane.b32.xlu1 %v2242_v45, %s3235_s22  ;;  %v2277_v59 = vsel %vm163_vm3, %v2216_v3, %v2275_v40  ;;  %v2273_v20 = vsel %vm291_vm1, %v2269_v51, %v2271_v47 }
 0x72b   : > { %2282 = vrot.lane.b32.xlu2 %v2272_v16, %s3236_s23 }
 0x72c   : > { %2250 = vrot.lane.b32.xlu0 %v2243_v42, %s3235_s22 }
 0x72d   : > { %2280 = vrot.lane.b32.xlu1 %v2276_v12, %s3236_s23 }
 0x733   : > { %2319 = vrot.lane.b32.xlu2 %v2315_v46, %s3238_s21  ;;  %v7694_v46 = vld [vmem:[#allocation24_spill] sm:$0xff] }
 0x734   : > { %2284 = vrot.lane.b32.xlu0 %v2277_v59, %s3236_s23 }
 0x735   : > { %2286 = vrot.lane.b32.xlu1 %v2273_v20, %s3236_s23 }
 0x73b   : > { %2325 = vrot.lane.b32.xlu2 %v2318_v34, %s3238_s21 }
 0x73c   : > { %2321 = vrot.lane.b32.xlu0 %v2317_v26, %s3238_s21 }
 0x73d   : > { %2323 = vrot.lane.b32.xlu1 %v2316_v57, %s3238_s21 }
 0x77d   : > { %v2249_v36 = vpop.permute.xlu2 %2248 }
 0x785   : > { %v2283_v58 = vpop.permute.xlu2 %2282 }
 0x78d   : > { %v2320_v7 = vpop.permute.xlu2 %2319 }
 0x796   : > { %v2245_v8 = vpop.permute.xlu0 %2244 }
 0x797   : > { %v2252_v11 = vsel %vm252_vm6, %v2245_v8, %v2249_v36  ;;  %v2254_v0 = vsel %vm252_vm6, %v2249_v36, %v2245_v8  ;;  %v2247_v41 = vpop.permute.xlu1 %2246 }
 0x798   : > { %v2256_v37 = vsel %vm3693_vm8, %v2236_v30, %v2252_v11  ;;  %v2257_v44 = vsel %vm3962_vm11, %v2237_v48, %v2254_v0 }
 0x799   : > { %v2260_v35 = vmul.f32 %v2256_v37, %v7691_v5  ;;  %v2261_v3 = vmul.f32 %v2257_v44, %v7692_v24  ;;  %v2326_v44 = vpop.permute.xlu2 %2325 }
 0x79b   : > { %v2264_v4 = vadd.f32 %v2260_v35, %v2228_v15  ;;  %v2265_v27 = vadd.f32 %v2261_v3, %v2229_v29 }
 0x79e   : > { %v2251_v18 = vpop.permute.xlu0 %2250 }
 0x79f   : > { %v2253_v56 = vsel %vm252_vm6, %v2247_v41, %v2251_v18  ;;  %v2255_v52 = vsel %vm252_vm6, %v2251_v18, %v2247_v41  ;;  %v2281_v50 = vpop.permute.xlu1 %2280 }
 0x7a0   : > { %v2258_v2 = vsel %vm3693_vm8, %v2242_v45, %v2253_v56  ;;  %v2259_v48 = vsel %vm3962_vm11, %v2243_v42, %v2255_v52 }
 0x7a1   : > { %v2262_v30 = vmul.f32 %v2258_v2, %v7691_v5  ;;  %v2263_v49 = vmul.f32 %v2259_v48, %v7692_v24 }
 0x7a3   : > { %v2266_v29 = vadd.f32 %v2262_v30, %v6531_v32  ;;  %v2267_v9 = vadd.f32 %v2263_v49, %v6528_v13  ;;  %v7693_v32 = vld [vmem:[#allocation31_spill] sm:$0xff] }
 0x7a6   : > { %v2285_v15 = vpop.permute.xlu0 %2284 }
 0x7a7   : > { %v2288_v38 = vsel %vm312_vm7, %v2281_v50, %v2285_v15  ;;  %v2290_v43 = vsel %vm312_vm7, %v2285_v15, %v2281_v50  ;;  %v2287_v45 = vpop.permute.xlu1 %2286 }
 0x7a8   : > { %v2292_v42 = vsel %vm3717_vm9, %v2276_v12, %v2290_v43  ;;  %v2293_v47 = vsel %vm4002_vm12, %v2277_v59, %v2288_v38  ;;  %v2289_v51 = vsel %vm312_vm7, %v2283_v58, %v2287_v45  ;;  %v2291_v13 = vsel %vm312_vm7, %v2287_v45, %v2283_v58 }
 0x7a9   : > { %v2296_v40 = vmul.f32 %v2292_v42, %v7693_v32  ;;  %v2297_v26 = vmul.f32 %v2293_v47, %v7694_v46  ;;  %v2294_v36 = vsel %vm3717_vm9, %v2272_v16, %v2291_v13  ;;  %v2295_v8 = vsel %vm4002_vm12, %v2273_v20, %v2289_v51 }
 0x7aa   : > { %v2298_v12 = vmul.f32 %v2294_v36, %v7693_v32  ;;  %v2299_v59 = vmul.f32 %v2295_v8, %v7694_v46  ;;  %v7698_v36 = vld [vmem:[#allocation53_spill] sm:$0xff]  ;;  %v2616_v8 = vld [vmem:[%s2615_s27] sm:$0xff] }
 0x7ab   : > { %v6623_v11 = vadd.f32 %v2296_v40, %v2264_v4  ;;  %v6625_v0 = vadd.f32 %v2297_v26, %v2265_v27  ;;  %v7696_v40 = vld [vmem:[#allocation51_spill] sm:$0xff]  ;;  %v7697_v26 = vld [vmem:[#allocation54_spill] sm:$0xff] }
 0x7ac   : > { %v6627_v41 = vadd.f32 %v2298_v12, %v2266_v29  ;;  %v6629_v37 = vadd.f32 %v2299_v59, %v2267_v9  ;;  %v7699_v12 = vld [vmem:[#allocation52_spill] sm:$0xff]  ;;  %v2618_v59 = vld [vmem:[%s2615_s27 + $0x10] sm:$0xff] }
 0x7ae   : > { %v2322_v35 = vpop.permute.xlu0 %2321 }
 0x7af   : > { %v2324_v3 = vpop.permute.xlu1 %2323  ;;  %v6633_v16 = vsel %vm491_vm5, %v2322_v35, %v2326_v44  ;;  %v2330_v20 = vsel %vm491_vm5, %v2326_v44, %v2322_v35  ;;  %v6724_v44 = vld [vmem:[%s2615_s27 + $0x8] sm:$0xff]  ;;  %v6727_v35 = vld [vmem:[%s2424_s3] sm:$0xff] }
 0x7b0   : > { %v6639_v58 = vsel %vm491_vm5, %v2320_v7, %v2324_v3  ;;  %v2329_v4 = vsel %vm491_vm5, %v2324_v3, %v2320_v7  ;;  %v2337_v27 = vrot.slane %v6633_v16, 1  ;;  %v6651_v50 = vsel %vm170_vm10, %v2318_v34, %v2330_v20  ;;  %v6729_v3 = vld [vmem:[%s2424_s3 + $0x10] sm:$0xff]  ;;  %v6731_v20 = vld [vmem:[%s2615_s27 + $0x18] sm:$0xff] }
 0x7b1   : > { %v6646_v56 = vsel %vm170_vm10, %v2316_v57, %v2329_v4  ;;  %v2335_v52 = vrot.slane %v6639_v58, 1  ;;  %v2338_v30 = vrot.slane %v6651_v50, 1  ;;  %v2379_v49 = vrot.slane %v6639_v58, 7 }
 0x7b2   : > { %v2336_v48 = vrot.slane %v6646_v56, 1  ;;  %v2381_v7 = vrot.slane %v6633_v16, 7  ;;  %v2380_v43 = vrot.slane %v6646_v56, 7  ;;  %v2382_v45 = vrot.slane %v6651_v50, 7 }
 0x7b3   : > { %v6655_v2 = vsel %vm231_vm0, %v2335_v52, %v2337_v27  ;;  %v2341_v57 = vsel %vm231_vm0, %v2337_v27, %v2335_v52  ;;  %v2429_v4 = vrot.slane %v6727_v35, 1  ;;  %v2431_v27 = vrot.slane %v6729_v3, 1  ;;  %v6739_v52 = vld [vmem:[%s2424_s3 + $0x8] sm:$0xff] }
 0x7b4   : > { %2347 = vrot.lane.b32.xlu0 %v6655_v2, %s3235_s22  ;;  %v6667_v34 = vsel %vm166_vm2, %v6633_v16, %v2341_v57  ;;  %v6673_v29 = vsel %vm231_vm0, %v2336_v48, %v2338_v30  ;;  %v2342_v9 = vsel %vm231_vm0, %v2338_v30, %v2336_v48  ;;  %v2385_v15 = vsel %vm291_vm1, %v2381_v7, %v2379_v49  ;;  %v6741_v48 = vld [vmem:[%s2424_s3 + $0x18] sm:$0xff] }
 0x7b5   : > { %2349 = vrot.lane.b32.xlu1 %v6667_v34, %s3235_s22  ;;  %2351 = vrot.lane.b32.xlu2 %v6673_v29, %s3235_s22  ;;  %v6686_v38 = vsel %vm166_vm2, %v6651_v50, %v2342_v9  ;;  %v6695_v42 = vsel %vm163_vm3, %v6639_v58, %v2385_v15  ;;  %v6699_v47 = vsel %vm291_vm1, %v2379_v49, %v2381_v7  ;;  %v2430_v7 = vrot.slane %v6739_v52, 1 }
 0x7b6   : > { %v2386_v51 = vsel %vm291_vm1, %v2382_v45, %v2380_v43  ;;  %v2435_v30 = vsel %vm231_vm0, %v2431_v27, %v2429_v4  ;;  %v6747_v57 = vsel %vm291_vm1, %v2380_v43, %v2382_v45  ;;  %v6751_v49 = vsel %vm231_vm0, %v2429_v4, %v2431_v27 }
 0x7b7   : > { %v6710_v13 = vsel %vm163_vm3, %v6646_v56, %v2386_v51  ;;  %v2432_v9 = vrot.slane %v6741_v48, 1  ;;  %v6760_v15 = vsel %vm166_vm2, %v6729_v3, %v2435_v30  ;;  %v2469_v43 = vrot.slane %v6727_v35, 7 }
 0x7b8   : > { %v2471_v45 = vrot.slane %v6729_v3, 7  ;;  %v2472_v4 = vrot.slane %v6741_v48, 7  ;;  %v2371_v5 = vmul.f32 %v6639_v58, %v4056_v14  ;;  %v2372_v62 = vmul.f32 %v6646_v56, %v4058_v25 }
 0x7b9   : > { %v2436_v51 = vsel %vm231_vm0, %v2432_v9, %v2430_v7 }
 0x7bc   : > { %2353 = vrot.lane.b32.xlu0 %v6686_v38, %s3235_s22 }
 0x7bd   : > { %2391 = vrot.lane.b32.xlu1 %v6695_v42, %s3236_s23  ;;  %2393 = vrot.lane.b32.xlu2 %v6699_v47, %s3236_s23 }
 0x7c4   : > { %2395 = vrot.lane.b32.xlu0 %v6710_v13, %s3236_s23 }
 0x7c5   : > { %2509 = vrot.lane.b32.xlu1 %v7696_v40, %s3237_s30  ;;  %2511 = vrot.lane.b32.xlu2 %v7697_v26, %s3237_s30 }
 0x7cc   : > { %2513 = vrot.lane.b32.xlu0 %v7698_v36, %s3237_s30  ;;  %v6772_v36 = vsel %vm231_vm0, %v2430_v7, %v2432_v9  ;;  %v6798_v7 = vsel %vm291_vm1, %v2469_v43, %v2471_v45 }
 0x7cd   : > { %2515 = vrot.lane.b32.xlu1 %v7699_v12, %s3237_s30  ;;  %2620 = vrot.lane.b32.xlu2 %v2616_v8, %s3238_s21  ;;  %v2475_v8 = vsel %vm291_vm1, %v2471_v45, %v2469_v43  ;;  %v6779_v12 = vsel %vm166_vm2, %v6741_v48, %v2436_v51 }
 0x7ce   : > { %v6788_v27 = vsel %vm163_vm3, %v6727_v35, %v2475_v8 }
 0x7d4   : > { %2622 = vrot.lane.b32.xlu0 %v2618_v59, %s3238_s21  ;;  %v2470_v59 = vrot.slane %v6739_v52, 7 }
 0x7d5   : > { %2624 = vrot.lane.b32.xlu1 %v6724_v44, %s3238_s21  ;;  %2626 = vrot.lane.b32.xlu2 %v6731_v20, %s3238_s21  ;;  %s2733_s21 = scalar_lea.hbm %s7278_s2, %s3017_s6 }
 0x7d6   : > { %v2476_v30 = vsel %vm291_vm1, %v2472_v4, %v2470_v59  ;;  %v6809_v51 = vsel %vm291_vm1, %v2470_v59, %v2472_v4  ;;  %s2736_s4 = sshll.u32 %s2733_s21, 4  ;;  %s2737_s4 = int_to_ptr.hbm [resolvable:$true] %s2736_s4 }
 0x7d7   : > { %v6803_v9 = vsel %vm163_vm3, %v6739_v52, %v2476_v30  ;;  %s3173_s16 = sshra.s32 %s2737_s4, 4  ;;  %s3174_s16 = int_to_ptr.hbm [resolvable:$true] %s3173_s16 }
 0x7d8   : > { %s3175_s17 = scalar_lea.hbm %s3174_s16, 256  ;;  %p3180_p12 = scmp.lt.s32.totalorder %s3174_s16, %s7278_s2 }
 0x7d9   : > { %p3176_p9 = scmp.ne.s32.totalorder %s3174_s16, %s3175_s17  ;;  %p3181_p13 = scmp.lt.s32.totalorder %s3179_s5, %s3175_s17 }
 0x7db   : > { %p3177_p10 = pnand %p3176_p9, %p3293_p5  ;;  %p3182_p0 = por %p3181_p13, %p3180_p12 }
 0x7dc   : > { %2397 = vrot.lane.b32.xlu0 %v6747_v57, %s3236_s23 }
 0x7dd   : > { %2441 = vrot.lane.b32.xlu1 %v6751_v49, %s3235_s22  ;;  %2443 = vrot.lane.b32.xlu2 %v6760_v15, %s3235_s22  ;;  %p3178_p11 = pneg %p3177_p10 }
 0x7df   : > { %p3183_p1 = pnand %p3182_p0, %p3178_p11 }
 0x7e4   : > { %2445 = vrot.lane.b32.xlu0 %v6772_v36, %s3235_s22 }
 0x7e5   : > { %2447 = vrot.lane.b32.xlu1 %v6779_v12, %s3235_s22  ;;  %2481 = vrot.lane.b32.xlu2 %v6788_v27, %s3236_s23 }
 0x7ec   : > { %2483 = vrot.lane.b32.xlu0 %v6798_v7, %s3236_s23 }
 0x7ed   : > { %2485 = vrot.lane.b32.xlu1 %v6803_v9, %s3236_s23  ;;  %2487 = vrot.lane.b32.xlu2 %v6809_v51, %s3236_s23 }
 0x80f   : > { %v2352_v43 = vpop.permute.xlu2 %2351 }
 0x826   : > { %v2348_v45 = vpop.permute.xlu0 %2347 }
 0x827   : > { %v2355_v8 = vsel %vm252_vm6, %v2348_v45, %v2352_v43  ;;  %v2357_v30 = vsel %vm252_vm6, %v2352_v43, %v2348_v45  ;;  %v2350_v4 = vpop.permute.xlu1 %2349 }
 0x828   : > { %v2359_v46 = vsel %vm3693_vm8, %v6655_v2, %v2355_v8  ;;  %v2360_v59 = vsel %vm3962_vm11, %v6673_v29, %v2357_v30  ;;  %v6837_v30 = vpop.permute.xlu2 %2393 }
 0x829   : > { %v2363_v32 = vmul.f32 %v2359_v46, %v4102_v19  ;;  %v2364_v24 = vmul.f32 %v2360_v59, %v7690_v63 }
 0x82b   : > { %v2367_v43 = vadd.f32 %v2363_v32, %v6623_v11  ;;  %v2368_v45 = vadd.f32 %v2364_v24, %v6625_v0  ;;  %v2373_v11 = vmul.f32 %v6633_v16, %v4056_v14 }
 0x82d   : > { %v2375_v2 = vadd.f32 %v2371_v5, %v2367_v43  ;;  %v2376_v8 = vadd.f32 %v2372_v62, %v2368_v45 }
 0x82e   : > { %v2354_v60 = vpop.permute.xlu0 %2353 }
 0x82f   : > { %v2356_v29 = vsel %vm252_vm6, %v2350_v4, %v2354_v60  ;;  %v2358_v46 = vsel %vm252_vm6, %v2354_v60, %v2350_v4  ;;  %v2392_v24 = vpop.permute.xlu1 %2391  ;;  %v2374_v60 = vmul.f32 %v6651_v50, %v4058_v25 }
 0x830   : > { %v2361_v58 = vsel %vm3693_vm8, %v6667_v34, %v2356_v29  ;;  %v2362_v32 = vsel %vm3962_vm11, %v6686_v38, %v2358_v46  ;;  %v2512_v43 = vpop.permute.xlu2 %2511 }
 0x831   : > { %v2365_v62 = vmul.f32 %v2361_v58, %v4102_v19  ;;  %v2366_v5 = vmul.f32 %v2362_v32, %v7690_v63 }
 0x833   : > { %v2369_v0 = vadd.f32 %v2365_v62, %v6627_v41  ;;  %v2370_v56 = vadd.f32 %v2366_v5, %v6629_v37 }
 0x835   : > { %v6853_v34 = vadd.f32 %v2373_v11, %v2369_v0  ;;  %v6855_v38 = vadd.f32 %v2374_v60, %v2370_v56 }
 0x836   : > { %v2396_v59 = vpop.permute.xlu0 %2395 }
 0x837   : > { %v2399_v4 = vsel %vm312_vm7, %v2392_v24, %v2396_v59  ;;  %v2401_v16 = vsel %vm312_vm7, %v2396_v59, %v2392_v24  ;;  %v2510_v37 = vpop.permute.xlu1 %2509 }
 0x838   : > { %v2403_v50 = vsel %vm3717_vm9, %v6695_v42, %v2401_v16  ;;  %v2404_v41 = vsel %vm4002_vm12, %v6710_v13, %v2399_v4  ;;  %v2621_v60 = vpop.permute.xlu2 %2620 }
 0x839   : > { %v2407_v45 = vmul.f32 %v2403_v50, %v7641_v33  ;;  %v2408_v29 = vmul.f32 %v2404_v41, %v7642_v10 }
 0x83b   : > { %v2411_v46 = vadd.f32 %v2407_v45, %v2375_v2  ;;  %v2412_v58 = vadd.f32 %v2408_v29, %v2376_v8 }
 0x83d   : > { %2415 = vst [vmem:[%s4209_s24 + $0xc0] sm:$0xff] %v2411_v46 }
 0x83e   : > { %2416 = vst [vmem:[%s4209_s24 + $0xc8] sm:$0xff] %v2412_v58  ;;  %v2514_v32 = vpop.permute.xlu0 %2513 }
 0x83f   : > { %v6873_v24 = vsel %vm167_vm4, %v2510_v37, %v2514_v32  ;;  %v2519_v42 = vsel %vm167_vm4, %v2514_v32, %v2510_v37  ;;  %v2516_v5 = vpop.permute.xlu1 %2515 }
 0x840   : > { %v6880_v13 = vsel %vm167_vm4, %v7696_v40, %v2519_v42  ;;  %v2534_v62 = vrot.slane %v6873_v24, 1  ;;  %v6885_v2 = vsel %vm167_vm4, %v2512_v43, %v2516_v5  ;;  %v2520_v8 = vsel %vm167_vm4, %v2516_v5, %v2512_v43  ;;  %v2627_v29 = vpop.permute.xlu2 %2626 }
 0x841   : > { %v2533_v11 = vrot.slane %v6880_v13, 1  ;;  %v6893_v0 = vsel %vm167_vm4, %v7697_v26, %v2520_v8  ;;  %v2536_v40 = vrot.slane %v6885_v2, 1  ;;  %v2569_v50 = vrot.slane %v6880_v13, 7 }
 0x842   : > { %v2535_v56 = vrot.slane %v6893_v0, 1  ;;  %v2571_v41 = vrot.slane %v6893_v0, 7  ;;  %v2570_v32 = vrot.slane %v6873_v24, 7  ;;  %v2572_v8 = vrot.slane %v6885_v2, 7 }
 0x843   : > { %v6899_v59 = vsel %vm231_vm0, %v2534_v62, %v2536_v40  ;;  %v2540_v37 = vsel %vm231_vm0, %v2536_v40, %v2534_v62 }
 0x844   : > { %2549 = vrot.lane.b32.xlu2 %v6899_v59, %s3235_s22  ;;  %v6905_v4 = vsel %vm231_vm0, %v2533_v11, %v2535_v56  ;;  %v2539_v16 = vsel %vm231_vm0, %v2535_v56, %v2533_v11  ;;  %v2575_v45 = vsel %vm291_vm1, %v2571_v41, %v2569_v50  ;;  %v6926_v58 = vsel %vm291_vm1, %v2569_v50, %v2571_v41 }
 0x845   : > { %2545 = vrot.lane.b32.xlu0 %v6905_v4, %s3235_s22  ;;  %v6914_v26 = vsel %vm166_vm2, %v6893_v0, %v2539_v16  ;;  %v6942_v62 = vsel %vm166_vm2, %v6885_v2, %v2540_v37  ;;  %v6952_v56 = vsel %vm163_vm3, %v6880_v13, %v2575_v45 }
 0x846   : > { %v2623_v43 = vpop.permute.xlu0 %2622  ;;  %2547 = vrot.lane.b32.xlu1 %v6914_v26, %s3235_s22 }
 0x847   : > { %v2625_v46 = vpop.permute.xlu1 %2624  ;;  %v6931_v42 = vsel %vm491_vm5, %v2623_v43, %v2627_v29  ;;  %v2631_v25 = vsel %vm491_vm5, %v2627_v29, %v2623_v43 }
 0x848   : > { %v6935_v5 = vsel %vm491_vm5, %v2621_v60, %v2625_v46  ;;  %v2638_v11 = vrot.slane %v6931_v42, 1  ;;  %v2630_v14 = vsel %vm491_vm5, %v2625_v46, %v2621_v60  ;;  %v6985_v43 = vsel %vm170_vm10, %v6731_v20, %v2631_v25 }
 0x849   : > { %v2636_v40 = vrot.slane %v6935_v5, 1  ;;  %v6990_v60 = vsel %vm170_vm10, %v6724_v44, %v2630_v14  ;;  %v2639_v29 = vrot.slane %v6985_v43, 1  ;;  %v7007_v14 = vsel %vm291_vm1, %v2570_v32, %v2572_v8 }
 0x84a   : > { %v2637_v46 = vrot.slane %v6990_v60, 1  ;;  %v2683_v44 = vrot.slane %v6985_v43, 7  ;;  %v2681_v20 = vrot.slane %v6990_v60, 7 }
 0x84c   : > { %2583 = vrot.lane.b32.xlu2 %v6926_v58, %s3236_s23  ;;  %v2643_v25 = vsel %vm231_vm0, %v2639_v29, %v2637_v46 }
 0x84d   : > { %2551 = vrot.lane.b32.xlu0 %v6942_v62, %s3235_s22  ;;  %v7018_v18 = vsel %vm166_vm2, %v6985_v43, %v2643_v25 }
 0x84e   : > { %v2398_v16 = vpop.permute.xlu0 %2397  ;;  %2581 = vrot.lane.b32.xlu1 %v6952_v56, %s3236_s23 }
 0x84f   : > { %v2400_v50 = vsel %vm312_vm7, %v6837_v30, %v2398_v16  ;;  %v2402_v41 = vsel %vm312_vm7, %v2398_v16, %v6837_v30  ;;  %v6976_v30 = vsel %vm231_vm0, %v2636_v40, %v2638_v11 }
 0x850   : > { %v2405_v37 = vsel %vm3717_vm9, %v6699_v47, %v2402_v41  ;;  %v2406_v45 = vsel %vm4002_vm12, %v6747_v57, %v2400_v50  ;;  %v2576_v47 = vsel %vm291_vm1, %v2572_v8, %v2570_v32  ;;  %v2680_v32 = vrot.slane %v6935_v5, 7 }
 0x851   : > { %v2409_v63 = vmul.f32 %v2405_v37, %v7641_v33  ;;  %v2410_v19 = vmul.f32 %v2406_v45, %v7642_v10  ;;  %v7035_v8 = vsel %vm231_vm0, %v2637_v46, %v2639_v29  ;;  %v7065_v37 = vsel %vm291_vm1, %v2681_v20, %v2683_v44  ;;  %v2444_v45 = vpop.permute.xlu2 %2443 }
 0x852   : > { %7701 = vst [vmem:[#allocation50_spill] sm:$0xff] %v7065_v37 }
 0x853   : > { %v2413_v57 = vadd.f32 %v2409_v63, %v6853_v34  ;;  %v2414_v16 = vadd.f32 %v2410_v19, %v6855_v38  ;;  %v7000_v19 = vsel %vm163_vm3, %v6873_v24, %v2576_v47  ;;  %v2642_v63 = vsel %vm231_vm0, %v2638_v11, %v2636_v40  ;;  %v2442_v47 = vpop.permute.xlu1 %2441 }
 0x854   : > { %2648 = vrot.lane.b32.xlu2 %v6976_v30, %s3235_s22  ;;  %v7027_v34 = vsel %vm166_vm2, %v6931_v42, %v2642_v63  ;;  %v2682_v38 = vrot.slane %v6931_v42, 7  ;;  %v2687_v11 = vsel %vm291_vm1, %v2683_v44, %v2681_v20 }
 0x855   : > { %2417 = vst [vmem:[%s4209_s24 + $0xd0] sm:$0xff] %v2413_v57  ;;  %2585 = vrot.lane.b32.xlu0 %v7000_v19, %s3236_s23  ;;  %v7046_v40 = vsel %vm163_vm3, %v6990_v60, %v2687_v11 }
 0x856   : > { %2418 = vst [vmem:[%s4209_s24 + $0xd8] sm:$0xff] %v2414_v16  ;;  %2587 = vrot.lane.b32.xlu1 %v7007_v14, %s3236_s23  ;;  %v2686_v31 = vsel %vm291_vm1, %v2682_v38, %v2680_v32  ;;  %v7059_v41 = vsel %vm291_vm1, %v2680_v32, %v2682_v38  ;;  %v2446_v16 = vpop.permute.xlu0 %2445 }
 0x857   : > { %v7053_v50 = vsel %vm163_vm3, %v6935_v5, %v2686_v31  ;;  %7700 = vst [vmem:[#allocation55_spill] sm:$0xff] %v7059_v41  ;;  %v2449_v11 = vsel %vm252_vm6, %v2442_v47, %v2446_v16  ;;  %v2451_v21 = vsel %vm252_vm6, %v2446_v16, %v2442_v47 }
 0x858   : > { %v2454_v10 = vsel %vm3962_vm11, %v6772_v36, %v2451_v21 }
 0x859   : > { %v2482_v57 = vpop.permute.xlu2 %2481 }
 0x85b   : > { %v2448_v29 = vpop.permute.xlu1 %2447 }
 0x85c   : > { %2654 = vrot.lane.b32.xlu2 %v7018_v18, %s3235_s22  ;;  %v2450_v20 = vsel %vm252_vm6, %v2444_v45, %v2448_v29  ;;  %v2452_v31 = vsel %vm252_vm6, %v2448_v29, %v2444_v45  ;;  %v2461_v45 = vmul.f32 %v6727_v35, %v7623_v6  ;;  %v2462_v29 = vmul.f32 %v6739_v52, %v7562_v17 }
 0x85d   : > { %2650 = vrot.lane.b32.xlu0 %v7027_v34, %s3235_s22  ;;  %v2455_v47 = vsel %vm3693_vm8, %v6760_v15, %v2450_v20  ;;  %v2456_v16 = vsel %vm3962_vm11, %v6779_v12, %v2452_v31  ;;  %v2458_v15 = vmul.f32 %v2454_v10, %v7645_v22  ;;  %v2463_v20 = vmul.f32 %v6729_v3, %v7623_v6 }
 0x85e   : > { %2652 = vrot.lane.b32.xlu1 %v7035_v8, %s3235_s22  ;;  %v2484_v25 = vpop.permute.xlu0 %2483  ;;  %v2459_v35 = vmul.f32 %v2455_v47, %v7628_v54  ;;  %v2460_v52 = vmul.f32 %v2456_v16, %v7645_v22 }
 0x860   : > { %v2467_v3 = vadd.f32 %v2463_v20, %v2459_v35  ;;  %v7704_v20 = vld [vmem:[#allocation22_spill] sm:$0xff] }
 0x861   : > { %v2488_v46 = vpop.permute.xlu2 %2487 }
 0x862   : > { %v2492_v36 = vsel %vm312_vm7, %v2488_v46, %v2484_v25 }
 0x863   : > { %v2486_v38 = vpop.permute.xlu1 %2485  ;;  %v2495_v10 = vsel %vm3717_vm9, %v6798_v7, %v2492_v36  ;;  %v7703_v36 = vld [vmem:[#allocation40_spill] sm:$0xff] }
 0x864   : > { %2696 = vrot.lane.b32.xlu2 %v7046_v40, %s3236_s23  ;;  %v2489_v21 = vsel %vm312_vm7, %v2482_v57, %v2486_v38  ;;  %v2491_v12 = vsel %vm312_vm7, %v2486_v38, %v2482_v57  ;;  %v2499_v38 = vmul.f32 %v2495_v10, %v7630_v53 }
 0x865   : > { %2692 = vrot.lane.b32.xlu0 %v7053_v50, %s3236_s23  ;;  %v2494_v6 = vsel %vm4002_vm12, %v6803_v9, %v2489_v21 }
 0x866   : > { %2694 = vrot.lane.b32.xlu1 %v7059_v41, %s3236_s23  ;;  %v2453_v41 = vsel %vm3693_vm8, %v6751_v49, %v2449_v11  ;;  %v2490_v49 = vsel %vm312_vm7, %v2484_v25, %v2488_v46  ;;  %v2464_v46 = vmul.f32 %v6741_v48, %v7562_v17  ;;  %v2466_v17 = vadd.f32 %v2462_v29, %v2458_v15  ;;  %v7702_v29 = vld [vmem:[#allocation44_spill] sm:$0xff] }
 0x867   : > { %v2457_v11 = vmul.f32 %v2453_v41, %v7628_v54  ;;  %v2496_v41 = vsel %vm4002_vm12, %v6809_v51, %v2490_v49  ;;  %v2493_v54 = vsel %vm3717_vm9, %v6788_v27, %v2491_v12  ;;  %v2498_v47 = vmul.f32 %v2494_v6, %v7569_v55 }
 0x868   : > { %v2468_v48 = vadd.f32 %v2464_v46, %v2460_v52  ;;  %v2500_v7 = vmul.f32 %v2496_v41, %v7569_v55  ;;  %v2497_v51 = vmul.f32 %v2493_v54, %v7630_v53  ;;  %v2525_v49 = vmul.f32 %v6880_v13, %v7702_v29 }
 0x869   : > { %v2465_v22 = vadd.f32 %v2461_v45, %v2457_v11  ;;  %v2526_v53 = vmul.f32 %v6873_v24, %v7703_v36  ;;  %v2527_v55 = vmul.f32 %v6893_v0, %v7702_v29  ;;  %v2528_v11 = vmul.f32 %v6885_v2, %v7703_v36 }
 0x86a   : > { %v2503_v15 = vadd.f32 %v2499_v38, %v2467_v3  ;;  %v2502_v12 = vadd.f32 %v2498_v47, %v2466_v17  ;;  %v7706_v17 = vld [vmem:[#allocation31_spill] sm:$0xff]  ;;  %v7707_v3 = vld [vmem:[#allocation24_spill] sm:$0xff] }
 0x86c   : > { %v2531_v54 = vadd.f32 %v2527_v55, %v2503_v15 }
 0x86d   : > { %2698 = vrot.lane.b32.xlu0 %v7065_v37, %s3236_s23 }
 0x89e   : > { %v2550_v63 = vpop.permute.xlu2 %2549 }
 0x8a6   : > { %v2584_v37 = vpop.permute.xlu2 %2583 }
 0x8ae   : > { %v2649_v31 = vpop.permute.xlu2 %2648 }
 0x8b6   : > { %v2655_v38 = vpop.permute.xlu2 %2654 }
 0x8b7   : > { %v2546_v32 = vpop.permute.xlu0 %2545 }
 0x8b8   : > { %v2548_v44 = vpop.permute.xlu1 %2547  ;;  %v2553_v9 = vsel %vm252_vm6, %v2546_v32, %v2550_v63  ;;  %v2555_v45 = vsel %vm252_vm6, %v2550_v63, %v2546_v32  ;;  %v2501_v32 = vadd.f32 %v2497_v51, %v2465_v22 }
 0x8b9   : > { %v2557_v24 = vsel %vm3693_vm8, %v6905_v4, %v2553_v9  ;;  %v2558_v2 = vsel %vm3962_vm11, %v6899_v59, %v2555_v45  ;;  %v7705_v4 = vld [vmem:[#allocation23_spill] sm:$0xff] }
 0x8ba   : > { %v2561_v41 = vmul.f32 %v2557_v24, %v7704_v20 }
 0x8bf   : > { %v2552_v25 = vpop.permute.xlu0 %2551 }
 0x8c0   : > { %v2582_v57 = vpop.permute.xlu1 %2581  ;;  %v2554_v27 = vsel %vm252_vm6, %v2548_v44, %v2552_v25  ;;  %v2556_v16 = vsel %vm252_vm6, %v2552_v25, %v2548_v44  ;;  %v2504_v44 = vadd.f32 %v2500_v7, %v2468_v48  ;;  %v2530_v7 = vadd.f32 %v2526_v53, %v2502_v12 }
 0x8c1   : > { %v2559_v21 = vsel %vm3693_vm8, %v6914_v26, %v2554_v27  ;;  %v2560_v63 = vsel %vm3962_vm11, %v6942_v62, %v2556_v16 }
 0x8c2   : > { %v2563_v46 = vmul.f32 %v2559_v21, %v7704_v20  ;;  %v2564_v25 = vmul.f32 %v2560_v63, %v7705_v4  ;;  %v2532_v6 = vadd.f32 %v2528_v11, %v2504_v44  ;;  %v7708_v21 = vld [vmem:[#allocation70_spill] sm:$0xff] }
 0x8c4   : > { %v2567_v51 = vadd.f32 %v2563_v46, %v2531_v54  ;;  %v2568_v47 = vadd.f32 %v2564_v25, %v2532_v6  ;;  %v2697_v25 = vpop.permute.xlu2 %2696  ;;  %v7712_v54 = vld [vmem:[#allocation72_spill] sm:$0xff] }
 0x8c7   : > { %v2586_v13 = vpop.permute.xlu0 %2585 }
 0x8c8   : > { %v2588_v0 = vpop.permute.xlu1 %2587  ;;  %v2589_v35 = vsel %vm312_vm7, %v2582_v57, %v2586_v13  ;;  %v2591_v26 = vsel %vm312_vm7, %v2586_v13, %v2582_v57  ;;  %v2562_v57 = vmul.f32 %v2558_v2, %v7705_v4  ;;  %v7709_v13 = vld [vmem:[#allocation71_spill] sm:$0xff] }
 0x8c9   : > { %v2590_v62 = vsel %vm312_vm7, %v2584_v37, %v2588_v0  ;;  %v2592_v52 = vsel %vm312_vm7, %v2588_v0, %v2584_v37  ;;  %v2593_v37 = vsel %vm3717_vm9, %v6952_v56, %v2591_v26  ;;  %v2594_v22 = vsel %vm4002_vm12, %v7000_v19, %v2589_v35  ;;  %v7710_v35 = vld [vmem:[#allocation68_spill] sm:$0xff]  ;;  %v7711_v26 = vld [vmem:[#allocation69_spill] sm:$0xff] }
 0x8ca   : > { %v2595_v59 = vsel %vm3717_vm9, %v6926_v58, %v2592_v52  ;;  %v2596_v10 = vsel %vm4002_vm12, %v7007_v14, %v2590_v62  ;;  %v2529_v14 = vadd.f32 %v2525_v49, %v2501_v32  ;;  %v2566_v16 = vadd.f32 %v2562_v57, %v2530_v7 }
 0x8cb   : > { %v2599_v58 = vmul.f32 %v2595_v59, %v7706_v17  ;;  %v2600_v48 = vmul.f32 %v2596_v10, %v7707_v3  ;;  %v2597_v9 = vmul.f32 %v2593_v37, %v7706_v17  ;;  %v2598_v45 = vmul.f32 %v2594_v22, %v7707_v3  ;;  %v7713_v3 = vld [vmem:[#allocation55_spill] sm:$0xff] }
 0x8cc   : > { %v2565_v27 = vadd.f32 %v2561_v41, %v2529_v14  ;;  %v2675_v62 = vmul.f32 %v6985_v43, %v7711_v26  ;;  %v2672_v39 = vmul.f32 %v6935_v5, %v7710_v35  ;;  %v2673_v28 = vmul.f32 %v6990_v60, %v7711_v26 }
 0x8cd   : > { %v2603_v29 = vadd.f32 %v2599_v58, %v2567_v51  ;;  %v2604_v36 = vadd.f32 %v2600_v48, %v2568_v47 }
 0x8ce   : > { %v2601_v24 = vadd.f32 %v2597_v9, %v2565_v27 }
 0x8cf   : > { %v2651_v56 = vpop.permute.xlu0 %2650 }
 0x8d0   : > { %v2657_v19 = vsel %vm252_vm6, %v2651_v56, %v2655_v38  ;;  %v2659_v55 = vsel %vm252_vm6, %v2655_v38, %v2651_v56  ;;  %v2653_v11 = vpop.permute.xlu1 %2652  ;;  %v7714_v38 = vld [vmem:[#allocation50_spill] sm:$0xff] }
 0x8d1   : > { %v2662_v49 = vsel %vm3693_vm8, %v7027_v34, %v2657_v19  ;;  %v2663_v53 = vsel %vm3962_vm11, %v7018_v18, %v2659_v55  ;;  %v2656_v15 = vsel %vm252_vm6, %v2649_v31, %v2653_v11  ;;  %v2658_v44 = vsel %vm252_vm6, %v2653_v11, %v2649_v31 }
 0x8d2   : > { %v2666_v63 = vmul.f32 %v2662_v49, %v7708_v21  ;;  %v2667_v32 = vmul.f32 %v2663_v53, %v7709_v13  ;;  %v2660_v12 = vsel %vm3693_vm8, %v6976_v30, %v2656_v15  ;;  %v2661_v34 = vsel %vm3962_vm11, %v7035_v8, %v2658_v44 }
 0x8d3   : > { %v2602_v18 = vadd.f32 %v2598_v45, %v2566_v16  ;;  %v2664_v2 = vmul.f32 %v2660_v12, %v7708_v21  ;;  %v2665_v0 = vmul.f32 %v2661_v34, %v7709_v13  ;;  %v2674_v31 = vmul.f32 %v6931_v42, %v7710_v35 }
 0x8d4   : > { %v2670_v52 = vadd.f32 %v2666_v63, %v2603_v29  ;;  %v2671_v20 = vadd.f32 %v2667_v32, %v2604_v36 }
 0x8d5   : > { %v2668_v30 = vadd.f32 %v2664_v2, %v2601_v24  ;;  %v2669_v8 = vadd.f32 %v2665_v0, %v2602_v18 }
 0x8d6   : > { %v2678_v46 = vadd.f32 %v2674_v31, %v2670_v52  ;;  %v2679_v4 = vadd.f32 %v2675_v62, %v2671_v20 }
 0x8d7   : > { %v2693_v42 = vpop.permute.xlu0 %2692  ;;  %v2676_v59 = vadd.f32 %v2672_v39, %v2668_v30  ;;  %v2677_v10 = vadd.f32 %v2673_v28, %v2669_v8 }
 0x8d8   : > { %v2700_v43 = vsel %vm312_vm7, %v2693_v42, %v2697_v25  ;;  %v2702_v5 = vsel %vm312_vm7, %v2697_v25, %v2693_v42  ;;  %v2695_v17 = vpop.permute.xlu1 %2694 }
 0x8d9   : > { %v2704_v60 = vsel %vm3717_vm9, %v7053_v50, %v2702_v5  ;;  %v2705_v41 = vsel %vm4002_vm12, %v7046_v40, %v2700_v43 }
 0x8da   : > { %v2708_v57 = vmul.f32 %v2704_v60, %v7641_v33  ;;  %v2709_v6 = vmul.f32 %v2705_v41, %v7712_v54 }
 0x8dc   : > { %v2712_v37 = vadd.f32 %v2708_v57, %v2676_v59  ;;  %v2713_v22 = vadd.f32 %v2709_v6, %v2677_v10 }
 0x8de   : > { %2716 = vst [vmem:[%s4209_s24 + $0xe0] sm:$0xff] %v2712_v37 }
 0x8df   : > { %2717 = vst [vmem:[%s4209_s24 + $0xe8] sm:$0xff] %v2713_v22  ;;  %v2699_v58 = vpop.permute.xlu0 %2698 }
 0x8e0   : > { %v2701_v40 = vsel %vm312_vm7, %v2695_v17, %v2699_v58  ;;  %v2703_v50 = vsel %vm312_vm7, %v2699_v58, %v2695_v17 }
 0x8e1   : > { %v2706_v48 = vsel %vm3717_vm9, %v7713_v3, %v2703_v50  ;;  %v2707_v14 = vsel %vm4002_vm12, %v7714_v38, %v2701_v40 }
 0x8e2   : > { %v2710_v7 = vmul.f32 %v2706_v48, %v7641_v33  ;;  %v2711_v51 = vmul.f32 %v2707_v14, %v7712_v54 }
 0x8e4   : > { %v2714_v47 = vadd.f32 %v2710_v7, %v2678_v46  ;;  %v2715_v27 = vadd.f32 %v2711_v51, %v2679_v4 }
 0x8e6   : > { %2718 = vst [vmem:[%s4209_s24 + $0xf0] sm:$0xff] %v2714_v47 }
 0x8e7   : > { %2719 = vst [vmem:[%s4209_s24 + $0xf8] sm:$0xff] %v2715_v27 }
 0x8e8   : > { %3186 = shalt.err (!%p3183_p1)
}
 0x8e9   : > { %s3239_s8 = smov 256  }
 0x8ea   : > { %3033 = dma.vmem_to_hbm [thread:$0]  (%p3293_p5), %s2735_s13, 4096, %s2737_s4, %s2721_s7, %s3239_s8, %s3239_s8, %s3237_s30  }
 0x8eb PF: > { %p3050_p2 = scmp.ge.s32.totalorder %s3229_s12, 2  ;;  %s2751_s24 = sand.u32 1, %s3217_s9  }
 0x8ec   : > { %s2752_s27 = scalar_lea.sflag [#allocation4], %s2751_s24 }
 0x8ed   : > { %p3043_p3 = pnand %p3050_p2, %p3297_p6 }
 0x8ef   : > { %p3044_p4 = pneg %p3043_p3 }
 0x8f1   : > { %3212 = dma.done.wait (%p3044_p4), %s2752_s27, 4096  }
 0x8f2   : > { %3214 = vsyncadd (%p3044_p4), %s2752_s27, 4294963200  ;;  %p14_p7 = scmp.ge.s32.totalorder %s3280_s15, 4   ;;  %s7715_s9 = smov %s3221_s10 }
 0x8f3   : > { %s7716_s10 = smov %s3225_s11  ;;  %s7717_s11 = smov %s3291_s18 }
 0x8f4   : > { %s7718_s12 = smov %s3280_s15  ;;  %16 = sbr.rel (!%p14_p7) target bundleno = 5 (0x5), region = 95 }
 0x8f9   :  { %2758 = vsyncpa [#allocation3], 1 }
 0x8fa   :  { %2760 = vsyncpa [#allocation3 + $0x1], 1 }
 0x8fb   :  { %2761 = vsyncpa [#allocation6], 1 }
 0x8fc   :  { %2762 = vsyncpa [#allocation4], 1 }
 0x8fd   :  { %2764 = vsyncpa [#allocation4 + $0x1], 1 }

</bundles_post_ra>
